<compile_context>
chip_gen: v6e
topology: v6e:2x2x1
jax: 0.10.0
libtpu: 0.0.40
codegen_flags: <defaults>
</compile_context>

<pallas_src>
import functools

import numpy as np

import jax
import jax.numpy as jnp
from jax.experimental import pallas as pl
from jax.experimental.pallas import tpu as pltpu


# ---------------------------------------------------------------------------
# BARF positional encoding (full-weight), canonical column order used by the
# reference / PyTorch checkpoint layout: per octave l -> [sin(2^l x), cos(2^l x)].
# TODO(synk): the BARF coarse-to-fine annealing window driven by `index` is not
#             modeled (the PyTorch forward() never applies it either).
# ---------------------------------------------------------------------------
def barf_encoding(x, L):
    d = x.shape[-1]
    freqs = 2.0 ** jnp.arange(L, dtype=x.dtype)                 # (L,)
    xb = x[..., None, :] * freqs[:, None]                       # (..., L, d)
    enc = jnp.concatenate([jnp.sin(xb), jnp.cos(xb)], axis=-1)  # (..., L, 2d)
    return enc.reshape(x.shape[:-1] + (2 * L * d,))


# ---------------------------------------------------------------------------
# Weight-norm linear (PyTorch nn.utils.weight_norm init: g = ||v|| row-wise),
# stored transposed as (in, out) for x @ W + b.
# ---------------------------------------------------------------------------
def make_weightnorm_linear(key, fan_in, fan_out):
    kv, kb = jax.random.split(key)
    bound = 1.0 / np.sqrt(fan_in)
    v = jax.random.uniform(kv, (fan_out, fan_in), jnp.float32, -bound, bound)
    b = jax.random.uniform(kb, (fan_out,), jnp.float32, -bound, bound)
    norm = jnp.linalg.norm(v, axis=1, keepdims=True)
    g = norm                                   # PyTorch weight_norm init
    w_eff = g * v / norm                       # == v at init; reparam kept explicit
    return w_eff.T, b[None, :]                 # (in, out) f32, (1, out) f32


# ---------------------------------------------------------------------------
# Pallas kernel: fused BARF encoding + 3-layer MLP (relu, relu, sigmoid).
# One grid step processes a tm-row tile; all weights live in VMEM.
# ---------------------------------------------------------------------------
def _render_mlp_kernel(pts_ref, vd_ref, gr_ref, feat_ref, cmap_ref, freq_ref,
                       w0p_ref, w0v_ref, w0g_ref, w0f_ref, w0s_ref, w0c_ref,
                       b0_ref, w1_ref, b1_ref, w2_ref, b2_ref, o_ref,
                       *, squeeze_out):
    f32, bf16 = jnp.float32, jnp.bfloat16

    pts = pts_ref[...]          # (tm, d)          f32
    vd = vd_ref[...]            # (tm, d)          f32
    gr = gr_ref[...]            # (tm, d)          f32
    ft = feat_ref[...]          # (tm, d_feature)  f32

    # ---- fused BARF encoding --------------------------------------------
    # Expand the 3*d raw coordinate columns into the P phase columns with a
    # short per-lane-constant select chain (pure VPU, keeps f32 precision for
    # the high-frequency phases), then a single sin and a single cos over the
    # whole (tm, P) block (keeps the transcendental work vreg-dense).
    cand = ([pts[:, c:c + 1] for c in range(pts.shape[1])]
            + [vd[:, c:c + 1] for c in range(vd.shape[1])]
            + [gr[:, c:c + 1] for c in range(gr.shape[1])])
    cmap = cmap_ref[...]        # (1, P) int32: which raw column feeds lane j
    sel = cand[-1]
    for c in range(len(cand) - 2, -1, -1):
        sel = jnp.where(cmap == c, cand[c], sel)                # (tm, P)
    ph = sel * freq_ref[...]                                    # (tm, P) f32
    sn = jnp.sin(ph)
    cs = jnp.cos(ph)

    # ---- layer 0: sum of partial bf16 dots vs row-blocks of w0 ------------
    def dot(a, w_ref):
        return jnp.dot(a.astype(bf16), w_ref[...], preferred_element_type=f32)

    h = (dot(pts, w0p_ref) + dot(vd, w0v_ref) + dot(gr, w0g_ref)
         + dot(ft, w0f_ref) + dot(sn, w0s_ref) + dot(cs, w0c_ref)
         + b0_ref[...])
    h = jnp.maximum(h, 0.0)

    # ---- layers 1, 2 ------------------------------------------------------
    h = jnp.maximum(dot(h, w1_ref) + b1_ref[...], 0.0)
    h = dot(h, w2_ref) + b2_ref[...]

    if squeeze_out:
        # sigmoid = exp (EUP) + approximate reciprocal (EUP) -> no VPU divide.
        h = pl.reciprocal(1.0 + jnp.exp(-h), approx=True)
    o_ref[...] = h


def _round_up(x, m):
    return (x + m - 1) // m * m


def render_mlp_pallas(points, view_dirs, gradients, feature_vectors, params,
                      *, tm=1024, squeeze_out=True):
    N = points.shape[0]
    d_out = params["w2"].shape[1]

    # Large row tile for pipeline-overhead amortization, but capped so the
    # "parallel" grid keeps >= 2 steps (v7x has 2 TensorCores per chip).
    tm = int(min(tm, max(8, _round_up(pl.cdiv(N, 2), 8))))
    Np = _round_up(N, tm)
    pad = (lambda a: a if Np == N else jnp.pad(a, ((0, Np - N), (0, 0))))
    pts, vd, gr, ft = pad(points), pad(view_dirs), pad(gradients), pad(feature_vectors)

    row = lambda a: pl.BlockSpec((tm, a.shape[1]), lambda i: (i, 0))
    full = lambda a: pl.BlockSpec(a.shape, lambda i: (0, 0))

    kernel = functools.partial(_render_mlp_kernel, squeeze_out=squeeze_out)
    out = pl.pallas_call(
        kernel,
        out_shape=jax.ShapeDtypeStruct((Np, d_out), jnp.float32),
        grid_spec=pltpu.PrefetchScalarGridSpec(
            num_scalar_prefetch=0,
            grid=(Np // tm,),
            in_specs=[
                row(pts), row(vd), row(gr), row(ft),
                full(params["cmap"]), full(params["freq"]),
                full(params["w0p"]), full(params["w0v"]), full(params["w0g"]),
                full(params["w0f"]), full(params["w0s"]), full(params["w0c"]),
                full(params["b0"]),
                full(params["w1"]), full(params["b1"]),
                full(params["w2"]), full(params["b2"]),
            ],
            # Narrow (tm, d_out) output kept on purpose (see header comment).
            out_specs=pl.BlockSpec((tm, d_out), lambda i: (i, 0)),
        ),
        compiler_params=pltpu.CompilerParams(
            dimension_semantics=("parallel",)),
    )(pts, vd, gr, ft, params["cmap"], params["freq"],
      params["w0p"], params["w0v"], params["w0g"], params["w0f"],
      params["w0s"], params["w0c"], params["b0"],
      params["w1"], params["b1"], params["w2"], params["b2"])
    return out[:N]


# ---------------------------------------------------------------------------
# Module wrapper: canonical (PyTorch-ordered) parameters + kernel-layout
# repack (row permutation / split of w0, bf16 cast, per-lane phase tables).
# ---------------------------------------------------------------------------
class RenderingNetworkOBJPallas:
    def __init__(self, key, d_feature, d_in, d_out, d_hidden, n_layers,
                 v_multires=10, r_multires=4, grad_multires=4,
                 squeeze_out=True, tm=1024):
        self.v_multires = v_multires
        self.r_multires = r_multires
        self.grad_multires = grad_multires
        self.squeeze_out = squeeze_out
        self.tm = tm
        self.d_in = d_in
        self.d_feature = d_feature

        dims = [d_in] + [d_hidden] * n_layers + [d_out]
        input_ch_view = grad_multires * 2 * d_in + d_in
        input_ch = r_multires * 2 * d_in + d_in
        input_p = v_multires * 2 * d_in + d_in
        dims[0] = input_ch + input_p + d_feature + input_ch_view
        self.dims = dims
        assert len(dims) == 4, "kernel is specialized to 3 linear layers"

        keys = jax.random.split(key, len(dims) - 1)
        # Canonical (checkpoint-layout) weight-normalized parameters, f32.
        self.weights = [
            make_weightnorm_linear(keys[l], dims[l], dims[l + 1])
            for l in range(len(dims) - 1)
        ]
        self.params = self._make_kernel_params()

    def _make_kernel_params(self):
        d, F = self.d_in, self.d_feature
        Lp, Lv, Lg = self.v_multires, self.r_multires, self.grad_multires
        off_p = 0
        off_v = d * (2 * Lp + 1)
        off_f = off_v + d * (2 * Lv + 1)
        off_g = off_f + F

        raw_p = list(range(off_p, off_p + d))
        raw_v = list(range(off_v, off_v + d))
        raw_g = list(range(off_g, off_g + d))
        feat_rows = list(range(off_f, off_f + F))

        sin_rows, cos_rows, cmap, freq = [], [], [], []
        # Kernel phase-column order: source-major (points, view, grad),
        # then octave l, then coordinate c.  Canonical w0 rows are gathered in
        # exactly this order so the fused layout matches the PyTorch concat.
        for src_i, (off, L) in enumerate([(off_p, Lp), (off_v, Lv), (off_g, Lg)]):
            for l in range(L):
                for c in range(d):
                    sin_rows.append(off + d + 2 * d * l + c)
                    cos_rows.append(off + 2 * d + 2 * d * l + c)
                    cmap.append(src_i * d + c)
                    freq.append(2.0 ** l)

        (w0, b0), (w1, b1), (w2, b2) = self.weights
        take = lambda rows: w0[np.asarray(rows, np.int32)].astype(jnp.bfloat16)
        return dict(
            w0p=take(raw_p), w0v=take(raw_v), w0g=take(raw_g),
            w0f=take(feat_rows), w0s=take(sin_rows), w0c=take(cos_rows),
            b0=b0,
            w1=w1.astype(jnp.bfloat16), b1=b1,
            w2=w2.astype(jnp.bfloat16), b2=b2,
            cmap=jnp.asarray(np.asarray(cmap, np.int32))[None, :],
            freq=jnp.asarray(np.asarray(freq, np.float32))[None, :],
        )

    def __call__(self, points, view_dirs, feature_vectors, gradients, index=None):
        # TODO(synk): `index` (BARF coarse-to-fine window) is ignored, matching
        #             the reference forward() which never uses it.
        return render_mlp_pallas(points, view_dirs, gradients, feature_vectors,
                                 self.params, tm=self.tm,
                                 squeeze_out=self.squeeze_out)

    # Pure-JAX f32 reference (canonical column order / canonical weights).
    def reference(self, points, view_dirs, feature_vectors, gradients):
        vd = jnp.concatenate(
            [view_dirs, barf_encoding(view_dirs, self.r_multires)], axis=-1)
        ge = jnp.concatenate(
            [gradients, barf_encoding(gradients, self.grad_multires)], axis=-1)
        pe = jnp.concatenate(
            [points, barf_encoding(points, self.v_multires)], axis=-1)
        x = jnp.concatenate([pe, vd, feature_vectors, ge], axis=-1)
        for l, (w, b) in enumerate(self.weights):
            x = x @ w + b
            if l < len(self.weights) - 1:
                x = jnp.maximum(x, 0.0)
        return jax.nn.sigmoid(x) if self.squeeze_out else x


if __name__ == "__main__":
    key = jax.random.PRNGKey(0)
    k_param, k_p, k_v, k_f, k_g = jax.random.split(key, 5)

    # Small, module-consistent shapes.
    N = 256            # number of sample points
    d_in = 3           # xyz / view dir / gradient dimensionality
    d_feature = 16
    d_hidden = 64
    d_out = 3
    n_layers = 2       # -> dims [133, 64, 64, 3] => 3 linear layers

    net = RenderingNetworkOBJPallas(
        k_param, d_feature=d_feature, d_in=d_in, d_out=d_out,
        d_hidden=d_hidden, n_layers=n_layers,
        v_multires=10, r_multires=4, grad_multires=4, squeeze_out=True)

    points = jax.random.normal(k_p, (N, d_in), jnp.float32)
    view_dirs = jax.random.normal(k_v, (N, d_in), jnp.float32)
    feature_vectors = jax.random.normal(k_f, (N, d_feature), jnp.float32)
    gradients = jax.random.normal(k_g, (N, d_in), jnp.float32)

    out = net(points, view_dirs, feature_vectors, gradients, index=0)
    out = jax.block_until_ready(out)

    ref = net.reference(points, view_dirs, feature_vectors, gradients)
    assert out.shape == (N, d_out)
    # bf16 matmul operands + approx reciprocal -> loosened tolerance vs f32 ref.
    assert jnp.allclose(out, ref, atol=3e-2, rtol=3e-2), "mismatch vs reference"

    print("KERNEL_OK")
</pallas_src>

<mosaic_0001>
module attributes {stable_mosaic.version = 11 : i64} {
  func.func @_render_mlp_kernel(%arg0: i32, %arg1: memref<128x3xf32, #tpu.memory_space<vmem>>, %arg2: memref<128x3xf32, #tpu.memory_space<vmem>>, %arg3: memref<128x3xf32, #tpu.memory_space<vmem>>, %arg4: memref<128x16xf32, #tpu.memory_space<vmem>>, %arg5: memref<1x54xi32, #tpu.memory_space<vmem>>, %arg6: memref<1x54xf32, #tpu.memory_space<vmem>>, %arg7: memref<3x64xbf16, #tpu.memory_space<vmem>>, %arg8: memref<3x64xbf16, #tpu.memory_space<vmem>>, %arg9: memref<3x64xbf16, #tpu.memory_space<vmem>>, %arg10: memref<16x64xbf16, #tpu.memory_space<vmem>>, %arg11: memref<54x64xbf16, #tpu.memory_space<vmem>>, %arg12: memref<54x64xbf16, #tpu.memory_space<vmem>>, %arg13: memref<1x64xf32, #tpu.memory_space<vmem>>, %arg14: memref<64x64xbf16, #tpu.memory_space<vmem>>, %arg15: memref<1x64xf32, #tpu.memory_space<vmem>>, %arg16: memref<64x3xbf16, #tpu.memory_space<vmem>>, %arg17: memref<1x3xf32, #tpu.memory_space<vmem>>, %arg18: memref<128x3xf32, #tpu.memory_space<vmem>>) attributes {dimension_semantics = [#tpu.dimension_semantics<parallel>], iteration_bounds = array<i64: 2>, scalar_prefetch = 0 : i64, scratch_operands = 0 : i64, tpu.core_type = #tpu.core_type<tc>, window_params = [{transform_indices = @transform_0, window_bounds = array<i64: 128, 3>}, {transform_indices = @transform_1, window_bounds = array<i64: 128, 3>}, {transform_indices = @transform_2, window_bounds = array<i64: 128, 3>}, {transform_indices = @transform_3, window_bounds = array<i64: 128, 16>}, {pipeline_mode = #tpu.pipeline_mode<synchronous>, transform_indices = @transform_4, window_bounds = array<i64: 1, 54>}, {pipeline_mode = #tpu.pipeline_mode<synchronous>, transform_indices = @transform_5, window_bounds = array<i64: 1, 54>}, {pipeline_mode = #tpu.pipeline_mode<synchronous>, transform_indices = @transform_6, window_bounds = array<i64: 3, 64>}, {pipeline_mode = #tpu.pipeline_mode<synchronous>, transform_indices = @transform_7, window_bounds = array<i64: 3, 64>}, {pipeline_mode = #tpu.pipeline_mode<synchronous>, transform_indices = @transform_8, window_bounds = array<i64: 3, 64>}, {pipeline_mode = #tpu.pipeline_mode<synchronous>, transform_indices = @transform_9, window_bounds = array<i64: 16, 64>}, {pipeline_mode = #tpu.pipeline_mode<synchronous>, transform_indices = @transform_10, window_bounds = array<i64: 54, 64>}, {pipeline_mode = #tpu.pipeline_mode<synchronous>, transform_indices = @transform_11, window_bounds = array<i64: 54, 64>}, {pipeline_mode = #tpu.pipeline_mode<synchronous>, transform_indices = @transform_12, window_bounds = array<i64: 1, 64>}, {pipeline_mode = #tpu.pipeline_mode<synchronous>, transform_indices = @transform_13, window_bounds = array<i64: 64, 64>}, {pipeline_mode = #tpu.pipeline_mode<synchronous>, transform_indices = @transform_14, window_bounds = array<i64: 1, 64>}, {pipeline_mode = #tpu.pipeline_mode<synchronous>, transform_indices = @transform_15, window_bounds = array<i64: 64, 3>}, {pipeline_mode = #tpu.pipeline_mode<synchronous>, transform_indices = @transform_16, window_bounds = array<i64: 1, 3>}, {transform_indices = @transform_17, window_bounds = array<i64: 128, 3>}]} {
    %c0 = arith.constant 0 : index
    %c0_0 = arith.constant 0 : index
    %0 = vector.load %arg1[%c0, %c0_0] : memref<128x3xf32, #tpu.memory_space<vmem>>, vector<128x3xf32>
    %c0_1 = arith.constant 0 : index
    %c0_2 = arith.constant 0 : index
    %1 = vector.load %arg2[%c0_1, %c0_2] : memref<128x3xf32, #tpu.memory_space<vmem>>, vector<128x3xf32>
    %c0_3 = arith.constant 0 : index
    %c0_4 = arith.constant 0 : index
    %2 = vector.load %arg3[%c0_3, %c0_4] : memref<128x3xf32, #tpu.memory_space<vmem>>, vector<128x3xf32>
    %c0_5 = arith.constant 0 : index
    %c0_6 = arith.constant 0 : index
    %3 = vector.load %arg4[%c0_5, %c0_6] : memref<128x16xf32, #tpu.memory_space<vmem>>, vector<128x16xf32>
    %4 = vector.extract_strided_slice %0 {offsets = [0, 0], sizes = [128, 1], strides = [1, 1]} : vector<128x3xf32> to vector<128x1xf32>
    %5 = vector.extract_strided_slice %0 {offsets = [0, 1], sizes = [128, 1], strides = [1, 1]} : vector<128x3xf32> to vector<128x1xf32>
    %6 = vector.extract_strided_slice %0 {offsets = [0, 2], sizes = [128, 1], strides = [1, 1]} : vector<128x3xf32> to vector<128x1xf32>
    %7 = vector.extract_strided_slice %1 {offsets = [0, 0], sizes = [128, 1], strides = [1, 1]} : vector<128x3xf32> to vector<128x1xf32>
    %8 = vector.extract_strided_slice %1 {offsets = [0, 1], sizes = [128, 1], strides = [1, 1]} : vector<128x3xf32> to vector<128x1xf32>
    %9 = vector.extract_strided_slice %1 {offsets = [0, 2], sizes = [128, 1], strides = [1, 1]} : vector<128x3xf32> to vector<128x1xf32>
    %10 = vector.extract_strided_slice %2 {offsets = [0, 0], sizes = [128, 1], strides = [1, 1]} : vector<128x3xf32> to vector<128x1xf32>
    %11 = vector.extract_strided_slice %2 {offsets = [0, 1], sizes = [128, 1], strides = [1, 1]} : vector<128x3xf32> to vector<128x1xf32>
    %12 = vector.extract_strided_slice %2 {offsets = [0, 2], sizes = [128, 1], strides = [1, 1]} : vector<128x3xf32> to vector<128x1xf32>
    %c0_7 = arith.constant 0 : index
    %c0_8 = arith.constant 0 : index
    %13 = vector.load %arg5[%c0_7, %c0_8] : memref<1x54xi32, #tpu.memory_space<vmem>>, vector<1x54xi32>
    %c7_i32 = arith.constant 7 : i32
    %14 = vector.broadcast %c7_i32 : i32 to vector<1x54xi32>
    %15 = arith.cmpi eq, %13, %14 : vector<1x54xi32>
    %16 = vector.shape_cast %15 : vector<1x54xi1> to vector<1x54xi1>
    %17 = vector.broadcast %16 : vector<1x54xi1> to vector<128x54xi1>
    %18 = vector.shape_cast %11 : vector<128x1xf32> to vector<128x1xf32>
    %19 = vector.broadcast %18 : vector<128x1xf32> to vector<128x54xf32>
    %20 = vector.shape_cast %12 : vector<128x1xf32> to vector<128x1xf32>
    %21 = vector.broadcast %20 : vector<128x1xf32> to vector<128x54xf32>
    %22 = arith.select %17, %19, %21 : vector<128x54xi1>, vector<128x54xf32>
    %c6_i32 = arith.constant 6 : i32
    %23 = vector.broadcast %c6_i32 : i32 to vector<1x54xi32>
    %24 = arith.cmpi eq, %13, %23 : vector<1x54xi32>
    %25 = vector.shape_cast %24 : vector<1x54xi1> to vector<1x54xi1>
    %26 = vector.broadcast %25 : vector<1x54xi1> to vector<128x54xi1>
    %27 = vector.shape_cast %10 : vector<128x1xf32> to vector<128x1xf32>
    %28 = vector.broadcast %27 : vector<128x1xf32> to vector<128x54xf32>
    %29 = arith.select %26, %28, %22 : vector<128x54xi1>, vector<128x54xf32>
    %c5_i32 = arith.constant 5 : i32
    %30 = vector.broadcast %c5_i32 : i32 to vector<1x54xi32>
    %31 = arith.cmpi eq, %13, %30 : vector<1x54xi32>
    %32 = vector.shape_cast %31 : vector<1x54xi1> to vector<1x54xi1>
    %33 = vector.broadcast %32 : vector<1x54xi1> to vector<128x54xi1>
    %34 = vector.shape_cast %9 : vector<128x1xf32> to vector<128x1xf32>
    %35 = vector.broadcast %34 : vector<128x1xf32> to vector<128x54xf32>
    %36 = arith.select %33, %35, %29 : vector<128x54xi1>, vector<128x54xf32>
    %c4_i32 = arith.constant 4 : i32
    %37 = vector.broadcast %c4_i32 : i32 to vector<1x54xi32>
    %38 = arith.cmpi eq, %13, %37 : vector<1x54xi32>
    %39 = vector.shape_cast %38 : vector<1x54xi1> to vector<1x54xi1>
    %40 = vector.broadcast %39 : vector<1x54xi1> to vector<128x54xi1>
    %41 = vector.shape_cast %8 : vector<128x1xf32> to vector<128x1xf32>
    %42 = vector.broadcast %41 : vector<128x1xf32> to vector<128x54xf32>
    %43 = arith.select %40, %42, %36 : vector<128x54xi1>, vector<128x54xf32>
    %c3_i32 = arith.constant 3 : i32
    %44 = vector.broadcast %c3_i32 : i32 to vector<1x54xi32>
    %45 = arith.cmpi eq, %13, %44 : vector<1x54xi32>
    %46 = vector.shape_cast %45 : vector<1x54xi1> to vector<1x54xi1>
    %47 = vector.broadcast %46 : vector<1x54xi1> to vector<128x54xi1>
    %48 = vector.shape_cast %7 : vector<128x1xf32> to vector<128x1xf32>
    %49 = vector.broadcast %48 : vector<128x1xf32> to vector<128x54xf32>
    %50 = arith.select %47, %49, %43 : vector<128x54xi1>, vector<128x54xf32>
    %c2_i32 = arith.constant 2 : i32
    %51 = vector.broadcast %c2_i32 : i32 to vector<1x54xi32>
    %52 = arith.cmpi eq, %13, %51 : vector<1x54xi32>
    %53 = vector.shape_cast %52 : vector<1x54xi1> to vector<1x54xi1>
    %54 = vector.broadcast %53 : vector<1x54xi1> to vector<128x54xi1>
    %55 = vector.shape_cast %6 : vector<128x1xf32> to vector<128x1xf32>
    %56 = vector.broadcast %55 : vector<128x1xf32> to vector<128x54xf32>
    %57 = arith.select %54, %56, %50 : vector<128x54xi1>, vector<128x54xf32>
    %c1_i32 = arith.constant 1 : i32
    %58 = vector.broadcast %c1_i32 : i32 to vector<1x54xi32>
    %59 = arith.cmpi eq, %13, %58 : vector<1x54xi32>
    %60 = vector.shape_cast %59 : vector<1x54xi1> to vector<1x54xi1>
    %61 = vector.broadcast %60 : vector<1x54xi1> to vector<128x54xi1>
    %62 = vector.shape_cast %5 : vector<128x1xf32> to vector<128x1xf32>
    %63 = vector.broadcast %62 : vector<128x1xf32> to vector<128x54xf32>
    %64 = arith.select %61, %63, %57 : vector<128x54xi1>, vector<128x54xf32>
    %c0_i32 = arith.constant 0 : i32
    %65 = vector.broadcast %c0_i32 : i32 to vector<1x54xi32>
    %66 = arith.cmpi eq, %13, %65 : vector<1x54xi32>
    %67 = vector.shape_cast %66 : vector<1x54xi1> to vector<1x54xi1>
    %68 = vector.broadcast %67 : vector<1x54xi1> to vector<128x54xi1>
    %69 = vector.shape_cast %4 : vector<128x1xf32> to vector<128x1xf32>
    %70 = vector.broadcast %69 : vector<128x1xf32> to vector<128x54xf32>
    %71 = arith.select %68, %70, %64 : vector<128x54xi1>, vector<128x54xf32>
    %c0_9 = arith.constant 0 : index
    %c0_10 = arith.constant 0 : index
    %72 = vector.load %arg6[%c0_9, %c0_10] : memref<1x54xf32, #tpu.memory_space<vmem>>, vector<1x54xf32>
    %73 = vector.broadcast %72 : vector<1x54xf32> to vector<128x54xf32>
    %74 = arith.mulf %71, %73 : vector<128x54xf32>
    %75 = math.sin %74 : vector<128x54xf32>
    %76 = math.cos %74 : vector<128x54xf32>
    %77 = arith.truncf %0 : vector<128x3xf32> to vector<128x3xbf16>
    %c0_11 = arith.constant 0 : index
    %c0_12 = arith.constant 0 : index
    %78 = vector.load %arg7[%c0_11, %c0_12] : memref<3x64xbf16, #tpu.memory_space<vmem>>, vector<3x64xbf16>
    %cst = arith.constant dense<0.000000e+00> : vector<128x64xf32>
    %79 = tpu.matmul %77, %78, %cst {dimension_numbers = #tpu.dot_dimension_numbers<[1], [0], [0], [1], [0, 0, 1, 1], [], []>} : vector<128x3xbf16>, vector<3x64xbf16>, vector<128x64xf32> -> vector<128x64xf32>
    %80 = arith.truncf %1 : vector<128x3xf32> to vector<128x3xbf16>
    %c0_13 = arith.constant 0 : index
    %c0_14 = arith.constant 0 : index
    %81 = vector.load %arg8[%c0_13, %c0_14] : memref<3x64xbf16, #tpu.memory_space<vmem>>, vector<3x64xbf16>
    %cst_15 = arith.constant dense<0.000000e+00> : vector<128x64xf32>
    %82 = tpu.matmul %80, %81, %cst_15 {dimension_numbers = #tpu.dot_dimension_numbers<[1], [0], [0], [1], [0, 0, 1, 1], [], []>} : vector<128x3xbf16>, vector<3x64xbf16>, vector<128x64xf32> -> vector<128x64xf32>
    %83 = arith.addf %79, %82 : vector<128x64xf32>
    %84 = arith.truncf %2 : vector<128x3xf32> to vector<128x3xbf16>
    %c0_16 = arith.constant 0 : index
    %c0_17 = arith.constant 0 : index
    %85 = vector.load %arg9[%c0_16, %c0_17] : memref<3x64xbf16, #tpu.memory_space<vmem>>, vector<3x64xbf16>
    %cst_18 = arith.constant dense<0.000000e+00> : vector<128x64xf32>
    %86 = tpu.matmul %84, %85, %cst_18 {dimension_numbers = #tpu.dot_dimension_numbers<[1], [0], [0], [1], [0, 0, 1, 1], [], []>} : vector<128x3xbf16>, vector<3x64xbf16>, vector<128x64xf32> -> vector<128x64xf32>
    %87 = arith.addf %83, %86 : vector<128x64xf32>
    %88 = arith.truncf %3 : vector<128x16xf32> to vector<128x16xbf16>
    %c0_19 = arith.constant 0 : index
    %c0_20 = arith.constant 0 : index
    %89 = vector.load %arg10[%c0_19, %c0_20] : memref<16x64xbf16, #tpu.memory_space<vmem>>, vector<16x64xbf16>
    %cst_21 = arith.constant dense<0.000000e+00> : vector<128x64xf32>
    %90 = tpu.matmul %88, %89, %cst_21 {dimension_numbers = #tpu.dot_dimension_numbers<[1], [0], [0], [1], [0, 0, 1, 1], [], []>} : vector<128x16xbf16>, vector<16x64xbf16>, vector<128x64xf32> -> vector<128x64xf32>
    %91 = arith.addf %87, %90 : vector<128x64xf32>
    %92 = arith.truncf %75 : vector<128x54xf32> to vector<128x54xbf16>
    %c0_22 = arith.constant 0 : index
    %c0_23 = arith.constant 0 : index
    %93 = vector.load %arg11[%c0_22, %c0_23] : memref<54x64xbf16, #tpu.memory_space<vmem>>, vector<54x64xbf16>
    %cst_24 = arith.constant dense<0.000000e+00> : vector<128x64xf32>
    %94 = tpu.matmul %92, %93, %cst_24 {dimension_numbers = #tpu.dot_dimension_numbers<[1], [0], [0], [1], [0, 0, 1, 1], [], []>} : vector<128x54xbf16>, vector<54x64xbf16>, vector<128x64xf32> -> vector<128x64xf32>
    %95 = arith.addf %91, %94 : vector<128x64xf32>
    %96 = arith.truncf %76 : vector<128x54xf32> to vector<128x54xbf16>
    %c0_25 = arith.constant 0 : index
    %c0_26 = arith.constant 0 : index
    %97 = vector.load %arg12[%c0_25, %c0_26] : memref<54x64xbf16, #tpu.memory_space<vmem>>, vector<54x64xbf16>
    %cst_27 = arith.constant dense<0.000000e+00> : vector<128x64xf32>
    %98 = tpu.matmul %96, %97, %cst_27 {dimension_numbers = #tpu.dot_dimension_numbers<[1], [0], [0], [1], [0, 0, 1, 1], [], []>} : vector<128x54xbf16>, vector<54x64xbf16>, vector<128x64xf32> -> vector<128x64xf32>
    %99 = arith.addf %95, %98 : vector<128x64xf32>
    %c0_28 = arith.constant 0 : index
    %c0_29 = arith.constant 0 : index
    %100 = vector.load %arg13[%c0_28, %c0_29] : memref<1x64xf32, #tpu.memory_space<vmem>>, vector<1x64xf32>
    %101 = vector.broadcast %100 : vector<1x64xf32> to vector<128x64xf32>
    %102 = arith.addf %99, %101 : vector<128x64xf32>
    %cst_30 = arith.constant 0.000000e+00 : f32
    %103 = vector.broadcast %cst_30 : f32 to vector<128x64xf32>
    %104 = arith.maximumf %102, %103 : vector<128x64xf32>
    %105 = arith.truncf %104 : vector<128x64xf32> to vector<128x64xbf16>
    %c0_31 = arith.constant 0 : index
    %c0_32 = arith.constant 0 : index
    %106 = vector.load %arg14[%c0_31, %c0_32] : memref<64x64xbf16, #tpu.memory_space<vmem>>, vector<64x64xbf16>
    %cst_33 = arith.constant dense<0.000000e+00> : vector<128x64xf32>
    %107 = tpu.matmul %105, %106, %cst_33 {dimension_numbers = #tpu.dot_dimension_numbers<[1], [0], [0], [1], [0, 0, 1, 1], [], []>} : vector<128x64xbf16>, vector<64x64xbf16>, vector<128x64xf32> -> vector<128x64xf32>
    %c0_34 = arith.constant 0 : index
    %c0_35 = arith.constant 0 : index
    %108 = vector.load %arg15[%c0_34, %c0_35] : memref<1x64xf32, #tpu.memory_space<vmem>>, vector<1x64xf32>
    %109 = vector.broadcast %108 : vector<1x64xf32> to vector<128x64xf32>
    %110 = arith.addf %107, %109 : vector<128x64xf32>
    %cst_36 = arith.constant 0.000000e+00 : f32
    %111 = vector.broadcast %cst_36 : f32 to vector<128x64xf32>
    %112 = arith.maximumf %110, %111 : vector<128x64xf32>
    %113 = arith.truncf %112 : vector<128x64xf32> to vector<128x64xbf16>
    %c0_37 = arith.constant 0 : index
    %c0_38 = arith.constant 0 : index
    %114 = vector.load %arg16[%c0_37, %c0_38] : memref<64x3xbf16, #tpu.memory_space<vmem>>, vector<64x3xbf16>
    %cst_39 = arith.constant dense<0.000000e+00> : vector<128x3xf32>
    %115 = tpu.matmul %113, %114, %cst_39 {dimension_numbers = #tpu.dot_dimension_numbers<[1], [0], [0], [1], [0, 0, 1, 1], [], []>} : vector<128x64xbf16>, vector<64x3xbf16>, vector<128x3xf32> -> vector<128x3xf32>
    %c0_40 = arith.constant 0 : index
    %c0_41 = arith.constant 0 : index
    %116 = vector.load %arg17[%c0_40, %c0_41] : memref<1x3xf32, #tpu.memory_space<vmem>>, vector<1x3xf32>
    %117 = vector.broadcast %116 : vector<1x3xf32> to vector<128x3xf32>
    %118 = arith.addf %115, %117 : vector<128x3xf32>
    %cst_42 = arith.constant 0.000000e+00 : f32
    %119 = vector.broadcast %cst_42 : f32 to vector<128x3xf32>
    %120 = arith.subf %119, %118 : vector<128x3xf32>
    %121 = math.exp %120 : vector<128x3xf32>
    %cst_43 = arith.constant 1.000000e+00 : f32
    %122 = vector.broadcast %cst_43 : f32 to vector<128x3xf32>
    %123 = arith.addf %122, %121 : vector<128x3xf32>
    %124 = tpu.reciprocal %123 {approx = true} : vector<128x3xf32> -> vector<128x3xf32>
    %c0_44 = arith.constant 0 : index
    %c0_45 = arith.constant 0 : index
    %125 = vector.load %arg18[%c0_44, %c0_45] : memref<128x3xf32, #tpu.memory_space<vmem>>, vector<128x3xf32>
    tpu.vector_store %arg18[%c0_44, %c0_45], %124 {strides = array<i32>} : memref<128x3xf32, #tpu.memory_space<vmem>>, vector<128x3xf32>,
    return
  }
  func.func @transform_0(%arg0: i32) -> (i32, i32) {
    %c0_i32 = arith.constant 0 : i32
    %c0_i32_0 = arith.constant 0 : i32
    return %arg0, %c0_i32 : i32, i32
  }
  func.func @transform_1(%arg0: i32) -> (i32, i32) {
    %c0_i32 = arith.constant 0 : i32
    %c0_i32_0 = arith.constant 0 : i32
    return %arg0, %c0_i32 : i32, i32
  }
  func.func @transform_2(%arg0: i32) -> (i32, i32) {
    %c0_i32 = arith.constant 0 : i32
    %c0_i32_0 = arith.constant 0 : i32
    return %arg0, %c0_i32 : i32, i32
  }
  func.func @transform_3(%arg0: i32) -> (i32, i32) {
    %c0_i32 = arith.constant 0 : i32
    %c0_i32_0 = arith.constant 0 : i32
    return %arg0, %c0_i32 : i32, i32
  }
  func.func @transform_4(%arg0: i32) -> (i32, i32) {
    %c0_i32 = arith.constant 0 : i32
    %c0_i32_0 = arith.constant 0 : i32
    %c0_i32_1 = arith.constant 0 : i32
    return %c0_i32, %c0_i32_0 : i32, i32
  }
  func.func @transform_5(%arg0: i32) -> (i32, i32) {
    %c0_i32 = arith.constant 0 : i32
    %c0_i32_0 = arith.constant 0 : i32
    %c0_i32_1 = arith.constant 0 : i32
    return %c0_i32, %c0_i32_0 : i32, i32
  }
  func.func @transform_6(%arg0: i32) -> (i32, i32) {
    %c0_i32 = arith.constant 0 : i32
    %c0_i32_0 = arith.constant 0 : i32
    %c0_i32_1 = arith.constant 0 : i32
    return %c0_i32, %c0_i32_0 : i32, i32
  }
  func.func @transform_7(%arg0: i32) -> (i32, i32) {
    %c0_i32 = arith.constant 0 : i32
    %c0_i32_0 = arith.constant 0 : i32
    %c0_i32_1 = arith.constant 0 : i32
    return %c0_i32, %c0_i32_0 : i32, i32
  }
  func.func @transform_8(%arg0: i32) -> (i32, i32) {
    %c0_i32 = arith.constant 0 : i32
    %c0_i32_0 = arith.constant 0 : i32
    %c0_i32_1 = arith.constant 0 : i32
    return %c0_i32, %c0_i32_0 : i32, i32
  }
  func.func @transform_9(%arg0: i32) -> (i32, i32) {
    %c0_i32 = arith.constant 0 : i32
    %c0_i32_0 = arith.constant 0 : i32
    %c0_i32_1 = arith.constant 0 : i32
    return %c0_i32, %c0_i32_0 : i32, i32
  }
  func.func @transform_10(%arg0: i32) -> (i32, i32) {
    %c0_i32 = arith.constant 0 : i32
    %c0_i32_0 = arith.constant 0 : i32
    %c0_i32_1 = arith.constant 0 : i32
    return %c0_i32, %c0_i32_0 : i32, i32
  }
  func.func @transform_11(%arg0: i32) -> (i32, i32) {
    %c0_i32 = arith.constant 0 : i32
    %c0_i32_0 = arith.constant 0 : i32
    %c0_i32_1 = arith.constant 0 : i32
    return %c0_i32, %c0_i32_0 : i32, i32
  }
  func.func @transform_12(%arg0: i32) -> (i32, i32) {
    %c0_i32 = arith.constant 0 : i32
    %c0_i32_0 = arith.constant 0 : i32
    %c0_i32_1 = arith.constant 0 : i32
    return %c0_i32, %c0_i32_0 : i32, i32
  }
  func.func @transform_13(%arg0: i32) -> (i32, i32) {
    %c0_i32 = arith.constant 0 : i32
    %c0_i32_0 = arith.constant 0 : i32
    %c0_i32_1 = arith.constant 0 : i32
    return %c0_i32, %c0_i32_0 : i32, i32
  }
  func.func @transform_14(%arg0: i32) -> (i32, i32) {
    %c0_i32 = arith.constant 0 : i32
    %c0_i32_0 = arith.constant 0 : i32
    %c0_i32_1 = arith.constant 0 : i32
    return %c0_i32, %c0_i32_0 : i32, i32
  }
  func.func @transform_15(%arg0: i32) -> (i32, i32) {
    %c0_i32 = arith.constant 0 : i32
    %c0_i32_0 = arith.constant 0 : i32
    %c0_i32_1 = arith.constant 0 : i32
    return %c0_i32, %c0_i32_0 : i32, i32
  }
  func.func @transform_16(%arg0: i32) -> (i32, i32) {
    %c0_i32 = arith.constant 0 : i32
    %c0_i32_0 = arith.constant 0 : i32
    %c0_i32_1 = arith.constant 0 : i32
    return %c0_i32, %c0_i32_0 : i32, i32
  }
  func.func @transform_17(%arg0: i32) -> (i32, i32) {
    %c0_i32 = arith.constant 0 : i32
    %c0_i32_0 = arith.constant 0 : i32
    return %arg0, %c0_i32 : i32, i32
  }
}

</mosaic_0001>

<bundles_post_ra>
// kernel: tpu_custom_call.1
= control target key start
LH: loop header
LB: loop body
LE: loop exit
PB: predicated region body
PF: predicated region fallthrough
CT: control target
= control target key end

     0   :  { %s7221_s24 = smov 0   ;;  %s10628_s0 = inlined_call_operand.vmem [shape: f32[256,3], index: 0, kind: input, shape index: {}]   ;;  %s10629_s1 = inlined_call_operand.vmem [shape: f32[256,3], index: 1, kind: input, shape index: {}]   ;;  %s10630_s2 = inlined_call_operand.vmem [shape: f32[256,3], index: 2, kind: input, shape index: {}]   ;;  %s10631_s3 = inlined_call_operand.vmem [shape: f32[256,16], index: 3, kind: input, shape index: {}]   ;;  %s10632_s4 = inlined_call_operand.vmem [shape: s32[1,54], index: 4, kind: input, shape index: {}]   ;;  %s10633_s5 = inlined_call_operand.vmem [shape: f32[1,54], index: 5, kind: input, shape index: {}]   ;;  %s10634_s6 = inlined_call_operand.vmem [shape: bf16[3,64], index: 6, kind: input, shape index: {}]   ;;  %s10635_s7 = inlined_call_operand.vmem [shape: bf16[3,64], index: 7, kind: input, shape index: {}]   ;;  %s10636_s8 = inlined_call_operand.vmem [shape: bf16[3,64], index: 8, kind: input, shape index: {}]   ;;  %s10637_s9 = inlined_call_operand.vmem [shape: bf16[16,64], index: 9, kind: input, shape index: {}]   ;;  %s10638_s10 = inlined_call_operand.vmem [shape: bf16[54,64], index: 10, kind: input, shape index: {}]   ;;  %s10639_s11 = inlined_call_operand.vmem [shape: bf16[54,64], index: 11, kind: input, shape index: {}]   ;;  %s10640_s12 = inlined_call_operand.vmem [shape: f32[1,64], index: 12, kind: input, shape index: {}]   ;;  %s10641_s13 = inlined_call_operand.vmem [shape: bf16[64,64], index: 13, kind: input, shape index: {}]   ;;  %s10642_s14 = inlined_call_operand.vmem [shape: f32[1,64], index: 14, kind: input, shape index: {}]   ;;  %s10643_s15 = inlined_call_operand.vmem [shape: bf16[64,3], index: 15, kind: input, shape index: {}]   ;;  %s10644_s16 = inlined_call_operand.vmem [shape: f32[1,3], index: 16, kind: input, shape index: {}]   ;;  %s10645_s17 = inlined_call_operand.vmem [shape: f32[256,3], index: 17, kind: output, shape index: {}]  }
   0x1   :  { %10761 = sst [smem:[#allocation59_spill]] %s10628_s0 }
   0x2   :  { %10762 = sst [smem:[#allocation60_spill]] %s10629_s1 }
   0x3 LB: > { %s6335_s25 = sadd.s32 4294967295, %s7119_s24   ;;  %p6339_p0 = scmp.ge.s32.totalorder %s7119_s24, 1  ;;  %s7119_s24 = sphi %s7221_s24, %s27_s24  }
   0x4   : > { %p521_p1 = scmp.lt.s32.totalorder %s7119_s24, 3 }
   0x6   : > { %p522_p2 = pnand %p6339_p0, %p521_p1 }
   0x8   : > { %525 = sbr.rel (%p522_p2) target bundleno = 1432 (0x598), region = 88 }
   0xd   : > { %s6340_s26 = sshll.u32 %s6335_s25, 4  ;;  %v10650_v0 = vmov 2   ;;  %s10763_s19 = sld [smem:[#allocation60_spill]]  ;;  %v10648_v7 = vmov 1   ;;  %v10646_v11 = vmov 0   ;;  %vm4870_vm0 = vcmask 1040384  }
   0xe   : > { %6903 = vset.pattern.permute.xlu0 %v10650_v0  ;;  %6901 = vset.pattern.permute.xlu1 %v10650_v0  ;;  %p589_p3 = scmp.lt.s32.totalorder %s6340_s26, 31  ;;  %s10764_s22 = sld [smem:[#allocation59_spill]]  ;;  %vm4871_vm1 = vcmask 1041408   ;;  %vm10690_vm5 = vcmask 23552  }
  0x10   : > { %s11167_s26 = smov (!%p589_p3, %s6340_s26), 31 }
  0x11   : > { %s7231_s27 = sshll.u32 %s11167_s26, 3 }
  0x12   : > { %s7237_s0 = scalar_lea.vmem %s10630_s2, %s7231_s27  ;;  %s7854_s30 = scalar_lea.vmem %s10631_s3, %s7231_s27 }
  0x13   : > { %v7240_v1 = vld [vmem:[%s7237_s0 + $0x10] sm:$0xff]  ;;  %v7243_v2 = vld [vmem:[%s7237_s0] sm:$0xff]  ;;  %s7249_s1 = scalar_lea.vmem %s10763_s19, %s7231_s27  ;;  %v7254_v3 = vld [vmem:[%s7237_s0 + $0x8] sm:$0xff]  ;;  %s10583_s25 = scalar_lea.vmem %s10645_s17, %s7231_s27 }
  0x14   : > { %780 = vperm.xlu0 %6903, %v7240_v1   ;;  %772 = vperm.xlu1 %6901, %v7243_v2   ;;  %v7257_v4 = vld [vmem:[%s7249_s1] sm:$0xff]  ;;  %v7262_v5 = vld [vmem:[%s7249_s1 + $0x18] sm:$0xff]  ;;  %s7271_s23 = scalar_lea.vmem %s10764_s22, %s7231_s27  ;;  %v7287_v10 = vld [vmem:[%s7237_s0 + $0x30] sm:$0xff] }
  0x15   : > { %v7265_v6 = vld [vmem:[%s7237_s0 + $0x18] sm:$0xff]  ;;  %v7277_v8 = vld [vmem:[%s7271_s23 + $0x8] sm:$0xff]  ;;  %v7282_v9 = vld [vmem:[%s7237_s0 + $0x20] sm:$0xff]  ;;  %10766 = vst [vmem:[#allocation3_spill] sm:$0xff] %v7287_v10 }
  0x16   : > { %10765 = vst [vmem:[#allocation2_spill] sm:$0xff] %v7282_v9  ;;  %v7293_v12 = vld [vmem:[%s7249_s1 + $0x20] sm:$0xff]  ;;  %v7298_v13 = vld [vmem:[%s7249_s1 + $0x38] sm:$0xff]  ;;  %v7303_v14 = vld [vmem:[%s7249_s1 + $0x8] sm:$0xff] }
  0x17   : > { %v7306_v15 = vld [vmem:[%s7271_s23 + $0x28] sm:$0xff]  ;;  %v7312_v16 = vld [vmem:[%s7249_s1 + $0x10] sm:$0xff]  ;;  %v7315_v17 = vld [vmem:[%s7237_s0 + $0x40] sm:$0xff] }
  0x18   : > { %776 = vperm.xlu1 %6901, %v7254_v3   ;;  %947 = vperm.xlu0 %6903, %v7257_v4   ;;  %v7320_v18 = vld [vmem:[%s7237_s0 + $0x50] sm:$0xff]  ;;  %v7326_v19 = vld [vmem:[%s7249_s1 + $0x40] sm:$0xff]  ;;  %v7331_v20 = vld [vmem:[%s7249_s1 + $0x58] sm:$0xff] }
  0x19   : > { %v7336_v21 = vld [vmem:[%s7271_s23 + $0x48] sm:$0xff]  ;;  %v663_v22 = vld [vmem:[%s7237_s0 + $0x60] sm:$0xff]  ;;  %v665_v23 = vld [vmem:[%s7237_s0 + $0x70] sm:$0xff] }
  0x1a   : > { %v7345_v24 = vld [vmem:[%s7271_s23] sm:$0xff]  ;;  %v7354_v26 = vld [vmem:[%s7271_s23 + $0x10] sm:$0xff]  ;;  %v7357_v27 = vld [vmem:[%s7249_s1 + $0x78] sm:$0xff] }
  0x1b   : > { %v7348_v25 = vld [vmem:[%s7249_s1 + $0x60] sm:$0xff]  ;;  %v7362_v28 = vld [vmem:[%s7271_s23 + $0x18] sm:$0xff]  ;;  %v7365_v29 = vld [vmem:[%s7271_s23 + $0x68] sm:$0xff] }
  0x1c   : > { %6902 = vset.pattern.permute.xlu1 %v10648_v7  ;;  %962 = vperm.xlu0 %6903, %v7262_v5   ;;  %v7382_v30 = vld [vmem:[%s7237_s0 + $0x28] sm:$0xff]  ;;  %v7394_v32 = vld [vmem:[%s7271_s23 + $0x20] sm:$0xff]  ;;  %v7400_v33 = vld [vmem:[%s7271_s23 + $0x38] sm:$0xff] }
  0x1d   : > { %708 = vperm.xlu1 %6902, %v7265_v6   ;;  %10767 = vst [vmem:[#allocation4_spill] sm:$0xff] %v7382_v30  ;;  %v7389_v31 = vld [vmem:[%s7249_s1 + $0x28] sm:$0xff]  ;;  %v7409_v35 = vld [vmem:[%s7237_s0 + $0x38] sm:$0xff]  ;;  %v7414_v36 = vld [vmem:[%s7271_s23 + $0x40] sm:$0xff] }
  0x1e   : > { %v7406_v34 = vld [vmem:[%s7249_s1 + $0x48] sm:$0xff]  ;;  %10768 = vst [vmem:[#allocation5_spill] sm:$0xff] %v7409_v35  ;;  %v7420_v37 = vld [vmem:[%s7271_s23 + $0x58] sm:$0xff]  ;;  %v7434_v41 = vld [vmem:[%s7271_s23 + $0x60] sm:$0xff] }
  0x1f   : > { %v7425_v38 = vld [vmem:[%s7249_s1 + $0x68] sm:$0xff]  ;;  %v7443_v44 = vld [vmem:[%s7271_s23 + $0x78] sm:$0xff]  ;;  %v7459_v49 = vld [vmem:[%s7249_s1 + $0x30] sm:$0xff] }
  0x20   : > { %1229 = vperm.xlu0 %6903, %v7277_v8  }
  0x21   : > { %6904 = vset.pattern.permute.xlu1 %v10650_v0 }
  0x22   : > { %784 = vperm.xlu1 %6904, %v7265_v6  }
  0x24   : > { %788 = vperm.xlu0 %6903, %v7282_v9  }
  0x26   : > { %6905 = vset.pattern.permute.xlu1 %v10646_v11 }
  0x27   : > { %859 = vperm.xlu1 %6905, %v7243_v2  }
  0x28   : > { %796 = vperm.xlu0 %6903, %v7287_v10  }
  0x2b   : > { %867 = vperm.xlu1 %6905, %v7240_v1  }
  0x2c   : > { %967 = vperm.xlu0 %6903, %v7293_v12  }
  0x2f   : > { %871 = vperm.xlu1 %6905, %v7265_v6  }
  0x30   : > { %982 = vperm.xlu0 %6903, %v7298_v13  }
  0x33   : > { %6906 = vset.pattern.permute.xlu1 %v10650_v0 }
  0x34   : > { %952 = vperm.xlu1 %6906, %v7303_v14   ;;  %1249 = vperm.xlu0 %6903, %v7306_v15  }
  0x38   : > { %957 = vperm.xlu1 %6906, %v7312_v16   ;;  %804 = vperm.xlu0 %6903, %v7315_v17  }
  0x3c   : > { %6907 = vset.pattern.permute.xlu1 %v10648_v7  ;;  %812 = vperm.xlu0 %6903, %v7320_v18  }
  0x3d   : > { %1049 = vperm.xlu1 %6907, %v7257_v4  }
  0x40   : > { %987 = vperm.xlu0 %6903, %v7326_v19  }
  0x41   : > { %1057 = vperm.xlu1 %6907, %v7312_v16  }
  0x44   : > { %1002 = vperm.xlu0 %6903, %v7331_v20  }
  0x45   : > { %1061 = vperm.xlu1 %6907, %v7262_v5  }
  0x48   : > { %1269 = vperm.xlu0 %6903, %v7336_v21  }
  0x49   : > { %6908 = vset.pattern.permute.xlu1 %v10646_v11 }
  0x4a   : > { %1140 = vperm.xlu1 %6908, %v7303_v14  }
  0x4c   : > { %820 = vperm.xlu0 %6903, %v663_v22  }
  0x4e   : > { %1144 = vperm.xlu1 %6908, %v7312_v16  }
  0x50   : > { %828 = vperm.xlu0 %6903, %v665_v23   ;;  %v7510_v23 = vld [vmem:[%s7271_s23 + $0x30] sm:$0xff] }
  0x52   : > { %6909 = vset.pattern.permute.xlu1 %v10650_v0 }
  0x53   : > { %1224 = vperm.xlu1 %6909, %v7345_v24  }
  0x54   : > { %1007 = vperm.xlu0 %6903, %v7348_v25  }
  0x57   : > { %1234 = vperm.xlu1 %6909, %v7354_v26  }
  0x58   : > { %1022 = vperm.xlu0 %6903, %v7357_v27  }
  0x5b   : > { %1239 = vperm.xlu1 %6909, %v7362_v28  }
  0x5c   : > { %1289 = vperm.xlu0 %6903, %v7365_v29  }
  0x5f   : > { %6910 = vset.pattern.permute.xlu1 %v10648_v7 }
  0x60   : > { %6946 = vset.pattern.permute.xlu0 %v10648_v7  ;;  %1330 = vperm.xlu1 %6910, %v7277_v8  }
  0x61   : > { %693 = vperm.xlu0 %6946, %v7243_v2  }
  0x64   : > { %1334 = vperm.xlu1 %6910, %v7354_v26  }
  0x65   : > { %698 = vperm.xlu0 %6946, %v7254_v3  }
  0x68   : > { %6911 = vset.pattern.permute.xlu1 %v10646_v11 }
  0x69   : > { %703 = vperm.xlu0 %6946, %v7240_v1   ;;  %1413 = vperm.xlu1 %6911, %v7345_v24  }
  0x6d   : > { %1053 = vperm.xlu0 %6946, %v7303_v14   ;;  %6912 = vset.pattern.permute.xlu1 %v10648_v7 }
  0x6e   : > { %713 = vperm.xlu1 %6912, %v7282_v9  }
  0x71   : > { %1326 = vperm.xlu0 %6946, %v7345_v24  }
  0x72   : > { %718 = vperm.xlu1 %6912, %v7382_v30  }
  0x75   : > { %1338 = vperm.xlu0 %6946, %v7362_v28  }
  0x76   : > { %6913 = vset.pattern.permute.xlu1 %v10650_v0 }
  0x77   : > { %792 = vperm.xlu1 %6913, %v7382_v30  }
  0x79   : > { %1069 = vperm.xlu0 %6946, %v7389_v31  }
  0x7b   : > { %6914 = vset.pattern.permute.xlu1 %v10646_v11 }
  0x7c   : > { %1421 = vperm.xlu1 %6914, %v7354_v26  }
  0x7d   : > { %1342 = vperm.xlu0 %6946, %v7394_v32  }
  0x80   : > { %6915 = vset.pattern.permute.xlu1 %v10648_v7 }
  0x81   : > { %1354 = vperm.xlu0 %6946, %v7400_v33   ;;  %723 = vperm.xlu1 %6915, %v7287_v10  }
  0x85   : > { %1085 = vperm.xlu0 %6946, %v7406_v34   ;;  %728 = vperm.xlu1 %6915, %v7409_v35  }
  0x89   : > { %1358 = vperm.xlu0 %6946, %v7414_v36   ;;  %6916 = vset.pattern.permute.xlu1 %v10650_v0 }
  0x8a   : > { %800 = vperm.xlu1 %6916, %v7409_v35  }
  0x8d   : > { %1370 = vperm.xlu0 %6946, %v7420_v37  }
  0x8e   : > { %6917 = vset.pattern.permute.xlu1 %v10646_v11 }
  0x8f   : > { %v7427_v39 = vpop.permute.xlu1 %772  ;;  %875 = vperm.xlu1 %6917, %v7282_v9   ;;  %v7430_v40 = vpop.permute.xlu0 %780 }
  0x91   : > { %1101 = vperm.xlu0 %6946, %v7425_v38  }
  0x93   : > { %v7436_v42 = vpop.permute.xlu1 %776  ;;  %883 = vperm.xlu1 %6917, %v7287_v10   ;;  %v7439_v43 = vpop.permute.xlu0 %947 }
  0x95   : > { %1374 = vperm.xlu0 %6946, %v7434_v41  }
  0x97   : > { %887 = vperm.xlu1 %6917, %v7409_v35   ;;  %v7446_v45 = vpop.permute.xlu0 %962 }
  0x98   : > { %10769 = vst [vmem:[#allocation6_spill] sm:$0xff] %v7446_v45  ;;  %v7448_v46 = vpop.permute.xlu1 %708 }
  0x99   : > { %1386 = vperm.xlu0 %6946, %v7443_v44  }
  0x9b   : > { %6918 = vset.pattern.permute.xlu1 %v10650_v0  ;;  %v7452_v47 = vpop.permute.xlu0 %1229 }
  0x9c   : > { %10770 = vst [vmem:[#allocation7_spill] sm:$0xff] %v7452_v47  ;;  %972 = vperm.xlu1 %6918, %v7389_v31  }
  0x9d   : > { %v7455_v48 = vpop.permute.xlu1 %784  ;;  %6948 = vset.pattern.permute.xlu0 %v10646_v11 }
  0x9e   : > { %863 = vperm.xlu0 %6948, %v7254_v3  }
  0x9f   : > { %v7462_v50 = vpop.permute.xlu0 %788 }
  0xa0   : > { %10771 = vst [vmem:[#allocation8_spill] sm:$0xff] %v7462_v50  ;;  %977 = vperm.xlu1 %6918, %v7459_v49  }
  0xa2   : > { %v7465_v51 = vpop.permute.xlu1 %859  ;;  %1136 = vperm.xlu0 %6948, %v7257_v4  }
  0xa3   : > { %v7468_v52 = vpop.permute.xlu0 %796 }
  0xa4   : > { %10772 = vst [vmem:[#allocation9_spill] sm:$0xff] %v7468_v52  ;;  %6919 = vset.pattern.permute.xlu1 %v10648_v7 }
  0xa5   : > { %1065 = vperm.xlu1 %6919, %v7293_v12  }
  0xa6   : > { %v7472_v53 = vpop.permute.xlu1 %867  ;;  %1148 = vperm.xlu0 %6948, %v7262_v5  }
  0xa7   : > { %v7475_v54 = vpop.permute.xlu0 %967 }
  0xa8   : > { %10773 = vst [vmem:[#allocation10_spill] sm:$0xff] %v7475_v54 }
  0xa9   : > { %1073 = vperm.xlu1 %6919, %v7459_v49  }
  0xaa   : > { %v7478_v55 = vpop.permute.xlu1 %871  ;;  %1417 = vperm.xlu0 %6948, %v7277_v8  }
  0xab   : > { %10774 = vst [vmem:[#allocation11_spill] sm:$0xff] %v7478_v55  ;;  %v7481_v56 = vpop.permute.xlu0 %982  ;;  %v4837_v55 = vpack.c.bf16 %v7262_v5, %v7312_v16  ;;  %v10796_v5 = vmov 0 }
  0xac   : > { %10775 = vst [vmem:[#allocation12_spill] sm:$0xff] %v7481_v56 }
  0xad   : > { %1077 = vperm.xlu1 %6919, %v7298_v13  }
  0xae   : > { %1425 = vperm.xlu0 %6948, %v7362_v28  }
  0xaf   : > { %v7485_v57 = vpop.permute.xlu1 %952  ;;  %v7487_v58 = vpop.permute.xlu0 %1249 }
  0xb0   : > { %10776 = vst [vmem:[#allocation13_spill] sm:$0xff] %v7487_v58  ;;  %v10789_v58 = vmov 0  }
  0xb1   : > { %6920 = vset.pattern.permute.xlu1 %v10646_v11 }
  0xb2   : > { %879 = vperm.xlu0 %6948, %v7382_v30   ;;  %1156 = vperm.xlu1 %6920, %v7389_v31   ;;  %v686_v30 = vlaneseq }
  0xb3   : > { %v7492_v59 = vpop.permute.xlu1 %957  ;;  %v7494_v60 = vpop.permute.xlu0 %804 }
  0xb4   : > { %10777 = vst [vmem:[#allocation14_spill] sm:$0xff] %v7494_v60  ;;  %v10784_v60 = vmov 1   ;;  %v687_v45 = vshrl.u32 %v686_v30, 7 }
  0xb6   : > { %1152 = vperm.xlu0 %6948, %v7293_v12   ;;  %1160 = vperm.xlu1 %6920, %v7459_v49  }
  0xb7   : > { %v7498_v61 = vpop.permute.xlu0 %812 }
  0xb8   : > { %10778 = vst [vmem:[#allocation15_spill] sm:$0xff] %v7498_v61  ;;  %v7500_v62 = vpop.permute.xlu1 %1049 }
  0xba   : > { %1164 = vperm.xlu0 %6948, %v7298_v13   ;;  %6921 = vset.pattern.permute.xlu1 %v10650_v0 }
  0xbb   : > { %1244 = vperm.xlu1 %6921, %v7394_v32   ;;  %v7505_v63 = vpop.permute.xlu0 %987 }
  0xbc   : > { %10779 = vst [vmem:[#allocation16_spill] sm:$0xff] %v7505_v63  ;;  %v7507_v22 = vpop.permute.xlu1 %1057  ;;  %v660_v63 = vld [vmem:[%s7237_s0 + $0x48] sm:$0xff] }
  0xbe   : > { %1433 = vperm.xlu0 %6948, %v7306_v15  }
  0xbf   : > { %1254 = vperm.xlu1 %6921, %v7510_v23   ;;  %v7514_v11 = vpop.permute.xlu0 %1002 }
  0xc0   : > { %10780 = vst [vmem:[#allocation17_spill] sm:$0xff] %v7514_v11  ;;  %v7516_v7 = vpop.permute.xlu1 %1061 }
  0xc1   : > { %10781 = vst [vmem:[#allocation18_spill] sm:$0xff] %v7516_v7  ;;  %v7561_v7 = vld [vmem:[%s10632_s4] sm:$0x1] }
  0xc2   : > { %1441 = vperm.xlu0 %6948, %v7400_v33   ;;  %vm684_vm2 = vcmp.eq.s32.totalorder %v7561_v7, 7  ;;  %vm851_vm3 = vcmp.eq.s32.totalorder %v7561_v7, 6  ;;  %vm938_vm4 = vcmp.eq.s32.totalorder %v7561_v7, 5  ;;  %vm1041_vm6 = vcmp.eq.s32.totalorder %v7561_v7, 4 }
  0xc3   : > { %1259 = vperm.xlu1 %6921, %v7400_v33   ;;  %v7520_v0 = vpop.permute.xlu0 %1269  ;;  %vm1128_vm8 = vcmp.eq.s32.totalorder %v7561_v7, 3  ;;  %vm1215_vm10 = vcmp.eq.s32.totalorder %v7561_v7, 2  ;;  %vm1318_vm12 = vcmp.eq.s32.totalorder %v7561_v7, 1  ;;  %vm1405_vm13 = vcmp.eq.s32.totalorder %v7561_v7, 0 }
  0xc4   : > { %10782 = vst [vmem:[#allocation19_spill] sm:$0xff] %v7520_v0  ;;  %v10812_v7 = vmov 0 }
  0xc5   : > { %v7522_v61 = vpop.permute.xlu1 %1140 }
  0xc6   : > { %10783 = vst [vmem:[#allocation20_spill] sm:$0xff] %v7522_v61  ;;  %895 = vperm.xlu0 %6948, %v660_v63   ;;  %v685_v61 = vsel %vm684_vm2, 1, %v10789_v58 }
  0xc7   : > { %6922 = vset.pattern.permute.xlu1 %v10784_v60  ;;  %v7526_v54 = vpop.permute.xlu0 %820 }
  0xc8   : > { %10785 = vst [vmem:[#allocation21_spill] sm:$0xff] %v7526_v54  ;;  %1346 = vperm.xlu1 %6922, %v7306_v15   ;;  %v7124_v54 = vmov 65535  }
  0xc9   : > { %v7529_v52 = vpop.permute.xlu1 %1144  ;;  %v4872_v56 = vsel %vm4870_vm0, 4294967295, %v7124_v54 }
  0xca   : > { %1168 = vperm.xlu0 %6948, %v7326_v19   ;;  %v7548_v10 = vsel %vm4871_vm1, %v4872_v56, 0 }
  0xcb   : > { %v7532_v11 = vpop.permute.xlu0 %828 }
  0xcc   : > { %10786 = vst [vmem:[#allocation22_spill] sm:$0xff] %v7532_v11  ;;  %1350 = vperm.xlu1 %6922, %v7510_v23   ;;  %v4844_v11 = vld [vmem:[%s10635_s7] sm:$0x3] }
  0xcd   : > { %v4875_v47 = vand.u32 %v7548_v10, %v4844_v11 }
  0xce   : > { %v7535_v50 = vpop.permute.xlu1 %1224  ;;  %1180 = vperm.xlu0 %6948, %v7331_v20  }
  0xcf   : > { %10787 = vst [vmem:[#allocation23_spill] sm:$0xff] %v7535_v50  ;;  %v7538_v0 = vpop.permute.xlu0 %1007  ;;  %6649 = vmatprep.subr.bf16.mxu0 %v4875_v47  ;;  %v10794_v50 = vmov 2  }
  0xd0   : > { %10788 = vst [vmem:[#allocation24_spill] sm:$0xff] %v7538_v0  ;;  %6923 = vset.pattern.permute.xlu1 %v10789_v58  ;;  %v4835_v0 = vld [vmem:[%s10634_s6] sm:$0x3]  ;;  %6650 = vmatpush3.bf16.msra.mxu0 %v4875_v47  ;;  %v852_v47 = vsel %vm851_vm3, 1, %v10789_v58 }
  0xd1   : > { %1429 = vperm.xlu1 %6923, %v7394_v32   ;;  %v4999_v54 = vand.u32 %v7548_v10, %v4835_v0  ;;  %v7570_v0 = vsub.s32 0, %v687_v45  ;;  %v4836_v45 = vpack.c.bf16 %v7303_v14, %v7257_v4  ;;  %v7598_v4 = vld [vmem:[%s7237_s0 + $0x68] sm:$0xff]  ;;  %v939_v14 = vsel %vm938_vm4, 1, %v10789_v58 }
  0xd2   : > { %v7542_v35 = vpop.permute.xlu1 %1234  ;;  %1449 = vperm.xlu0 %6948, %v7336_v21   ;;  %10795 = vst [vmem:[#allocation29_spill] sm:$0xff] %v7598_v4 }
  0xd3   : > { %v7553_v9 = vpop.permute.xlu0 %1022  ;;  %6667 = vmatprep.subr.bf16.mxu1 %v4999_v54  ;;  %v689_v30 = vrot.slane %v685_v61, %v7570_v0  ;;  %v4828_v61 = vpack.c.bf16 %v7362_v28, %v7354_v26  ;;  %6651 = vmatprep.mubr.msk.bf16.mxu0 %vm10690_vm5, %v4836_v45  ;;  %v943_v26 = vrot.slane %v939_v14, %v7570_v0  ;;  %v1042_v28 = vsel %vm1041_vm6, 1, %v10789_v58 }
  0xd4   : > { %10790 = vst [vmem:[#allocation25_spill] sm:$0xff] %v7553_v9  ;;  %6668 = vmatpush3.bf16.msra.mxu1 %v4999_v54  ;;  %6652 = vmatmul.mubr.msk.bf16.vlgmr.msra.gmra.mxu0 %vm10690_vm5, %v4837_v55  ;;  %v10800_v55 = vmov 0 }
  0xd5   : > { %6924 = vset.pattern.permute.xlu1 %v10784_v60  ;;  %vm7606_vm7 = vcmp.eq.s32.totalorder %v689_v30, 1  ;;  %vm7636_vm11 = vcmp.eq.s32.totalorder %v943_v26, 1  ;;  %v10808_v26 = vmov 0 }
  0xd6   : > { %733 = vperm.xlu1 %6924, %v7315_v17   ;;  %v7564_v56 = vpop.permute.xlu1 %1239  ;;  %1457 = vperm.xlu0 %6948, %v7420_v37   ;;  %v10797_v5 = vsel %vm7606_vm7, 4294967295, %v10796_v5 }
  0xd7   : > { %10791 = vst [vmem:[#allocation26_spill] sm:$0xff] %v7564_v56  ;;  %v7567_v9 = vpop.permute.xlu0 %1289  ;;  %10798 = vst [vmem:[#allocation30_spill] sm:$0xff] %v10797_v5 }
  0xd8   : > { %10792 = vst [vmem:[#allocation27_spill] sm:$0xff] %v7567_v9  ;;  %v4827_v9 = vpack.c.bf16 %v7277_v8, %v7345_v24  ;;  %v856_v8 = vrot.slane %v852_v47, %v7570_v0  ;;  %v1046_v47 = vrot.slane %v1042_v28, %v7570_v0 }
  0xda   : > { %738 = vperm.xlu1 %6924, %v660_v63   ;;  %6669 = vmatprep.mubr.msk.bf16.mxu1 %vm10690_vm5, %v4827_v9  ;;  %vm7619_vm9 = vcmp.eq.s32.totalorder %v856_v8, 1  ;;  %v662_v8 = vld [vmem:[%s7237_s0 + $0x58] sm:$0xff]  ;;  %vm7651_vm14 = vcmp.eq.s32.totalorder %v1046_v47, 1 }
  0xdb   : > { %v7572_v11 = vpop.permute.xlu1 %1330  ;;  %6670 = vmatmul.mubr.msk.bf16.vlgmr.msra.gmra.mxu1 %vm10690_vm5, %v4828_v61  ;;  %911 = vperm.xlu0 %6948, %v7598_v4   ;;  %v10801_v55 = vsel %vm7619_vm9, 4294967295, %v10800_v55  ;;  %v10804_v61 = vmov 0  ;;  %v10809_v26 = vsel %vm7651_vm14, 4294967295, %v10808_v26 }
  0xdc   : > { %10793 = vst [vmem:[#allocation28_spill] sm:$0xff] %v7572_v11  ;;  %v7576_v56 = vpop.permute.xlu0 %693  ;;  %10802 = vst [vmem:[#allocation32_spill] sm:$0xff] %v10801_v55  ;;  %v10805_v61 = vsel %vm7636_vm11, 4294967295, %v10804_v61 }
  0xdd   : > { %10806 = vst [vmem:[#allocation34_spill] sm:$0xff] %v10805_v61  ;;  %10810 = vst [vmem:[#allocation36_spill] sm:$0xff] %v10809_v26 }
  0xde   : > { %6925 = vset.pattern.permute.xlu1 %v10794_v50 }
  0xdf   : > { %808 = vperm.xlu1 %6925, %v660_v63   ;;  %v7581_v54 = vpop.permute.xlu1 %1334  ;;  %v1129_v63 = vsel %vm1128_vm8, 1, %v10789_v58  ;;  %1184 = vperm.xlu0 %6948, %v7348_v25  }
  0xe0   : > { %v7588_v11 = vpop.permute.xlu0 %698  ;;  %v1133_v14 = vrot.slane %v1129_v63, %v7570_v0 }
  0xe2   : > { %vm7662_vm15 = vcmp.eq.s32.totalorder %v1133_v14, 1 }
  0xe3   : > { %6926 = vset.pattern.permute.xlu1 %v10789_v58  ;;  %1196 = vperm.xlu0 %6948, %v7357_v27   ;;  %v10813_v7 = vsel %vm7662_vm15, 4294967295, %v10812_v7 }
  0xe4   : > { %v704_v9 = vpop.permute.xlu0 %703  ;;  %1437 = vperm.xlu1 %6926, %v7510_v23   ;;  %v7611_v16 = vpop.permute.xlu1 %1413  ;;  %10814 = vst [vmem:[#allocation38_spill] sm:$0xff] %v10813_v7  ;;  %v676_v7 = vld [vmem:[%s7854_s30 + $0x48] sm:$0xff] }
  0xe5   : > { %10799 = vst [vmem:[#allocation31_spill] sm:$0xff] %v7611_v16  ;;  %v837_v24 = vsel %vm7606_vm7, %v704_v9, %v7430_v40  ;;  %v1216_v9 = vsel %vm1215_vm10, 1, %v10789_v58 }
  0xe6   : > { %v924_v30 = vsel %vm7619_vm9, %v7472_v53, %v837_v24  ;;  %v1220_v63 = vrot.slane %v1216_v9, %v7570_v0 }
  0xe7   : > { %v1027_v53 = vsel %vm7636_vm11, %v7492_v59, %v924_v30  ;;  %v1406_v30 = vsel %vm1405_vm13, 1, %v10789_v58  ;;  %1465 = vperm.xlu0 %6948, %v7365_v29   ;;  %vm10689_vm13 = vcmask 130048  }
  0xe8   : > { %6927 = vset.pattern.permute.xlu1 %v10784_v60  ;;  %v7630_v40 = vpop.permute.xlu0 %1053  ;;  %v1114_v59 = vsel %vm7651_vm14, %v7507_v22, %v1027_v53  ;;  %vm7675_vm0 = vcmp.eq.s32.totalorder %v1220_v63, 1  ;;  %v10816_v22 = vmov 0  ;;  %v1410_v14 = vrot.slane %v1406_v30, %v7570_v0 }
  0xe9   : > { %743 = vperm.xlu1 %6927, %v7320_v18   ;;  %v7634_v45 = vpop.permute.xlu1 %713  ;;  %v1201_v9 = vsel %vm7662_vm15, %v7529_v52, %v1114_v59  ;;  %v10817_v22 = vsel %vm7675_vm0, 4294967295, %v10816_v22  ;;  %v10824_v52 = vmov 0  ;;  %v4829_v63 = vpack.c.bf16 %v7306_v15, %v7394_v32 }
  0xea   : > { %10803 = vst [vmem:[#allocation33_spill] sm:$0xff] %v7634_v45  ;;  %v1319_v45 = vsel %vm1318_vm12, 1, %v10789_v58  ;;  %10818 = vst [vmem:[#allocation40_spill] sm:$0xff] %v10817_v22  ;;  %vm7691_vm2 = vcmp.eq.s32.totalorder %v1410_v14, 1  ;;  %v4830_v59 = vpack.c.bf16 %v7400_v33, %v7510_v23 }
  0xeb   : > { %v1323_v4 = vrot.slane %v1319_v45, %v7570_v0  ;;  %v1304_v45 = vsel %vm7675_vm0, %v7542_v35, %v1201_v9  ;;  %v10825_v52 = vsel %vm7691_vm2, 4294967295, %v10824_v52  ;;  %v4838_v0 = vpack.c.bf16 %v7389_v31, %v7293_v12  ;;  %v7703_v35 = vld [vmem:[%s10633_s5] ss:$0 sm:$0xff]  ;;  %6673 = vmatprep.mubr.msk.bf16.mxu1 %vm10690_vm5, %v4829_v63 }
  0xec   : > { %v7649_v24 = vpop.permute.xlu0 %1326  ;;  %10826 = vst [vmem:[#allocation44_spill] sm:$0xff] %v10825_v52  ;;  %10827 = vst [vmem:[#allocation45_spill] sm:$0xff] %v7703_v35  ;;  %6674 = vmatmul.mubr.msk.bf16.gmra.mxu1 %vm10690_vm5, %v4830_v59 }
  0xed   : > { %10807 = vst [vmem:[#allocation35_spill] sm:$0xff] %v7649_v24  ;;  %748 = vperm.xlu1 %6927, %v662_v8   ;;  %v7655_v28 = vpop.permute.xlu1 %718  ;;  %vm7687_vm1 = vcmp.eq.s32.totalorder %v1323_v4, 1  ;;  %v4839_v4 = vpack.c.bf16 %v7298_v13, %v7459_v49  ;;  %6655 = vmatprep.mubr.msk.bf16.mxu0 %vm10690_vm5, %v4838_v0 }
  0xee   : > { %10811 = vst [vmem:[#allocation37_spill] sm:$0xff] %v7655_v28  ;;  %v1391_v12 = vsel %vm7687_vm1, %v7581_v54, %v1304_v45 }
  0xef   : > { %6656 = vmatmul.mubr.msk.bf16.gmra.mxu0 %vm10690_vm5, %v4839_v4 }
  0xf0   : > { %v7668_v47 = vpop.permute.xlu0 %1338 }
  0xf1   : > { %10815 = vst [vmem:[#allocation39_spill] sm:$0xff] %v7668_v47  ;;  %6928 = vset.pattern.permute.xlu1 %v10794_v50  ;;  %v10821_v47 = vmov 0 }
  0xf2   : > { %816 = vperm.xlu1 %6928, %v662_v8   ;;  %v7680_v53 = vpop.permute.xlu1 %792  ;;  %v10822_v47 = vsel %vm7687_vm1, 4294967295, %v10821_v47 }
  0xf3   : > { %10819 = vst [vmem:[#allocation41_spill] sm:$0xff] %v7680_v53  ;;  %10823 = vst [vmem:[#allocation43_spill] sm:$0xff] %v10822_v47 }
  0xf4   : > { %v7682_v28 = vpop.permute.xlu0 %1069 }
  0xf5   : > { %10820 = vst [vmem:[#allocation42_spill] sm:$0xff] %v7682_v28 }
  0xf6   : > { %6929 = vset.pattern.permute.xlu1 %v10789_v58 }
  0xf7   : > { %891 = vperm.xlu1 %6929, %v7315_v17   ;;  %v1422_v15 = vpop.permute.xlu1 %1421 }
  0xf8   : > { %v1478_v31 = vsel %vm7691_vm2, %v1422_v15, %v1391_v12  ;;  %v7716_v32 = vpop.permute.xlu0 %1342 }
  0xf9   : > { %10828 = vst [vmem:[#allocation46_spill] sm:$0xff] %v7716_v32  ;;  %v7721_v13 = vmul.f32 %v7703_v35, %v1478_v31 }
  0xfb   : > { %10829 = vst [vmem:[#allocation47_spill] sm:$0xff] %v7721_v13  ;;  %v1726_v17 = vand.u32 2139095040, %v7721_v13  ;;  %899 = vperm.xlu1 %6929, %v7320_v18   ;;  %v10660_v54 = vand.u32 2147483647, %v7721_v13 }
  0xfc   : > { %v7726_v33 = vpop.permute.xlu1 %723  ;;  %v7728_v49 = vpop.permute.xlu0 %1354 }
  0xfd   : > { %10830 = vst [vmem:[#allocation48_spill] sm:$0xff] %v7726_v33  ;;  %10831 = vst [vmem:[#allocation49_spill] sm:$0xff] %v7728_v49  ;;  %v1727_v23 = vshrl.u32 %v1726_v17, 23  ;;  %v1730_v0 = vand.u32 8388607, %v10660_v54 }
  0xfe   : > { %v10661_v17 = vmov 683565275  }
  0xff   : > { %v6359_v30 = vadd.s32 4294967169, %v1727_v23  ;;  %903 = vperm.xlu1 %6929, %v662_v8   ;;  %v7744_v8 = vld [vmem:[%s7249_s1 + $0x50] sm:$0xff]  ;;  %v1731_v12 = vor.u32 8388608, %v1730_v0  ;;  %v10673_v0 = vmov 2102212464  }
 0x100   : > { %v7731_v9 = vpop.permute.xlu1 %728  ;;  %v7733_v14 = vpop.permute.xlu0 %1085 }
 0x101   : > { %10832 = vst [vmem:[#allocation50_spill] sm:$0xff] %v7731_v9  ;;  %10833 = vst [vmem:[#allocation51_spill] sm:$0xff] %v7733_v14  ;;  %v1733_v45 = vadd.s32 1, %v6359_v30  ;;  %v10663_v30 = vmov 2475754826   ;;  %v1771_v52 = vshll.u32 %v1731_v12, 8 }
 0x102   : > { %v10671_v14 = vmov 2131351028   ;;  %v10680_v9 = vmov 1326507024  }
 0x103   : > { %vm1734_vm3 = vcmp.gt.s32.totalorder %v1733_v45, 0  ;;  %6930 = vset.pattern.permute.xlu1 %v10794_v50  ;;  %v10838_v50 = vmov 683565275  }
 0x104   : > { %v1735_v18 = vsel %vm1734_vm3, %v1733_v45, 0  ;;  %992 = vperm.xlu1 %6930, %v7406_v34   ;;  %v7739_v63 = vpop.permute.xlu0 %1358 }
 0x105   : > { %10834 = vst [vmem:[#allocation52_spill] sm:$0xff] %v7739_v63  ;;  %v1737_v4 = vand.u32 31, %v1735_v18  ;;  %v7741_v59 = vpop.permute.xlu1 %800  ;;  %v1736_v31 = vshrl.u32 %v1735_v18, 5 }
 0x106   : > { %10835 = vst [vmem:[#allocation53_spill] sm:$0xff] %v7741_v59 }
 0x107   : > { %v1738_v15 = vsub.s32 32, %v1737_v4  ;;  %v1740_v23 = vshll.u32 %v10661_v17, %v1737_v4  ;;  %v1743_v54 = vshll.u32 %v10663_v30, %v1737_v4  ;;  %v1746_v33 = vshll.u32 %v10671_v14, %v1737_v4 }
 0x108   : > { %997 = vperm.xlu1 %6930, %v7744_v8   ;;  %v7749_v45 = vpop.permute.xlu0 %1370  ;;  %v1749_v28 = vshll.u32 %v10673_v0, %v1737_v4  ;;  %v10678_v17 = vmov 920167782   ;;  %vm1755_vm4 = vcmp.lt.s32.totalorder %v1736_v31, 1  ;;  %vm1758_vm6 = vcmp.lt.s32.totalorder %v1736_v31, 4 }
 0x109   : > { %10836 = vst [vmem:[#allocation54_spill] sm:$0xff] %v7749_v45  ;;  %v1741_v63 = vshrl.u32 %v10663_v30, %v1738_v15  ;;  %v1744_v32 = vshrl.u32 %v10671_v14, %v1738_v15  ;;  %v1747_v18 = vshrl.u32 %v10673_v0, %v1738_v15  ;;  %v1750_v49 = vshrl.u32 %v10678_v17, %v1738_v15 }
 0x10a   : > { %v1752_v53 = vshll.u32 %v10678_v17, %v1737_v4  ;;  %v1753_v45 = vshrl.u32 %v10680_v9, %v1738_v15  ;;  %v7759_v59 = vpop.permute.xlu1 %875  ;;  %v1739_v47 = vshrl.u32 %v10838_v50, %v1738_v15  ;;  %vm1757_vm8 = vcmp.lt.s32.totalorder %v1736_v31, 3 }
 0x10b   : > { %v1742_v30 = vor.u32 %v1741_v63, %v1740_v23  ;;  %v1745_v13 = vor.u32 %v1744_v32, %v1743_v54  ;;  %v1748_v35 = vor.u32 %v1747_v18, %v1746_v33  ;;  %v1751_v14 = vor.u32 %v1750_v49, %v1749_v28 }
 0x10c   : > { %v1754_v16 = vor.u32 %v1753_v45, %v1752_v53  ;;  %6931 = vset.pattern.permute.xlu1 %v10784_v60  ;;  %v7762_v0 = vpop.permute.xlu0 %1101  ;;  %v4840_v28 = vpack.c.bf16 %v7406_v34, %v7326_v19  ;;  %vm1756_vm10 = vcmp.lt.s32.totalorder %v1736_v31, 2  ;;  %v4842_v31 = vpack.c.bf16 %v7425_v38, %v7348_v25 }
 0x10d   : > { %10837 = vst [vmem:[#allocation55_spill] sm:$0xff] %v7762_v0  ;;  %v1760_v4 = vsel %vm1758_vm6, %v1748_v35, 2102212464  ;;  %v1763_v17 = vsel %vm1755_vm4, %v1742_v30, %v1745_v13  ;;  %v1767_v24 = vsel %vm1755_vm4, %v1745_v13, %v1748_v35  ;;  %1081 = vperm.xlu1 %6931, %v7326_v19   ;;  %v1764_v63 = vsel %vm1758_vm6, %v1751_v14, 920167782 }
 0x10e   : > { %v1768_v32 = vsel %vm1758_vm6, %v1754_v16, 1326507024  ;;  %v7766_v33 = vpop.permute.xlu1 %883  ;;  %v1759_v53 = vsel %vm1755_vm4, %v1739_v47, %v1742_v30  ;;  %v1765_v49 = vsel %vm1757_vm8, %v1748_v35, %v1764_v63  ;;  %v1761_v12 = vsel %vm1757_vm8, %v1745_v13, %v1760_v4  ;;  %6659 = vmatprep.mubr.msk.bf16.mxu0 %vm10690_vm5, %v4840_v28  ;;  %v7786_v47 = vld [vmem:[%s7271_s23 + $0x50] sm:$0xff] }
 0x10f   : > { %v1769_v54 = vsel %vm1757_vm8, %v1751_v14, %v1768_v32  ;;  %v1766_v15 = vsel %vm1756_vm10, %v1763_v17, %v1765_v49  ;;  %v4831_v16 = vpack.c.bf16 %v7336_v21, %v7414_v36  ;;  %v4841_v35 = vpack.c.bf16 %v7331_v20, %v7744_v8  ;;  %v7811_v63 = vld [vmem:[%s7249_s1 + $0x70] sm:$0xff] }
 0x110   : > { %v1770_v23 = vsel %vm1756_vm10, %v1767_v24, %v1769_v54  ;;  %v7772_v45 = vpop.permute.xlu0 %1374  ;;  %v7780_v19 = vmul.u32.u64.low %v1771_v52, %v1766_v15  ;;  %v7781_v0 = vmul.u32.u64.high %v1771_v52, %v1766_v15, %v7780_v19  ;;  %v4832_v13 = vpack.c.bf16 %v7420_v37, %v7786_v47  ;;  %10841 = vst [vmem:[#allocation58_spill] sm:$0xff] %v7811_v63  ;;  %v633_v32 = vld [vmem:[%s7271_s23 + $0x70] sm:$0xff] }
 0x111   : > { %10839 = vst [vmem:[#allocation56_spill] sm:$0xff] %v7772_v45  ;;  %v7777_v18 = vmul.u32.u64.low %v1771_v52, %v1770_v23  ;;  %v7778_v9 = vmul.u32.u64.high %v1771_v52, %v1770_v23, %v7777_v18  ;;  %1089 = vperm.xlu1 %6931, %v7744_v8   ;;  %6677 = vmatprep.mubr.msk.bf16.mxu1 %vm10690_vm5, %v4831_v16  ;;  %v1762_v14 = vsel %vm1756_vm10, %v1759_v53, %v1761_v12  ;;  %v835_v17 = vsel %vm7606_vm7, %v7576_v56, %v7427_v39 }
 0x112   : > { %v7788_v24 = vpop.permute.xlu1 %887  ;;  %6660 = vmatmul.mubr.msk.bf16.gmra.mxu0 %vm10690_vm5, %v4841_v35  ;;  %6678 = vmatmul.mubr.msk.bf16.gmra.mxu1 %vm10690_vm5, %v4832_v13  ;;  %v1781_v4 = vadd.s32 1, %v7781_v0  ;;  %v1778_v39 = vmul.u32 %v1771_v52, %v1762_v14  ;;  %v4833_v56 = vpack.c.bf16 %v7365_v29, %v7434_v41  ;;  %v922_v28 = vsel %vm7619_vm9, %v7465_v51, %v835_v17  ;;  %v5106_v51 = vld [vmem:[%s10636_s8] sm:$0x3]  ;;  %v669_v18 = vld [vmem:[%s7854_s30 + $0x10] sm:$0xff]  ;;  %v670_v35 = vld [vmem:[%s7854_s30 + $0x18] sm:$0xff] }
 0x113   : > { %vm1780_vm12 = vc.u32 %v7778_v9, %v7780_v19  ;;  %6663 = vmatprep.mubr.msk.bf16.mxu0 %vm10690_vm5, %v4842_v31  ;;  %v4843_v25 = vpack.c.bf16 %v7357_v27, %v7811_v63  ;;  %v4834_v38 = vpack.c.bf16 %v7443_v44, %v633_v32  ;;  %v836_v29 = vsel %vm7606_vm7, %v7588_v11, %v7436_v42  ;;  %v6950_v42 = vld [vmem:[%s10637_s9] sm:$0xff]   ;;  %v10843_v17 = vld [vmem:[#allocation23_spill] sm:$0xff] }
 0x114   : > { %v7800_v30 = vpop.permute.xlu0 %1386  ;;  %v1782_v53 = vsel %vm1780_vm12, %v1781_v4, %v7781_v0  ;;  %6681 = vmatprep.mubr.msk.bf16.mxu1 %vm10690_vm5, %v4833_v56  ;;  %v1025_v27 = vsel %vm7636_vm11, %v7439_v43, %v922_v28  ;;  %v5132_v44 = vand.u32 %v5106_v51, %v7548_v10  ;;  %v667_v43 = vld [vmem:[%s7854_s30] sm:$0xff]  ;;  %6703 = vmatprep.subr.bf16.mxu1 %v6950_v42 }
 0x115   : > { %10840 = vst [vmem:[#allocation57_spill] sm:$0xff] %v7800_v30  ;;  %1093 = vperm.xlu1 %6931, %v7331_v20   ;;  %v1783_v20 = vadd.s32 %v1782_v53, %v1778_v39  ;;  %v1112_v12 = vsel %vm7651_vm14, %v7500_v62, %v1025_v27  ;;  %v5098_v23 = vpack.c.bf16 %v7254_v3, %v7243_v2  ;;  %v10842_v2 = vld [vmem:[#allocation11_spill] sm:$0xff]  ;;  %v10847_v28 = vld [vmem:[#allocation6_spill] sm:$0xff] }
 0x116   : > { %6685 = vmatprep.subr.bf16.mxu0 %v5132_v44  ;;  %v5099_v62 = vpack.c.bf16 %v7265_v6, %v7240_v1  ;;  %6704 = vmatpush3.bf16.msra.mxu1 %v6950_v42  ;;  %v10846_v1 = vld [vmem:[#allocation20_spill] sm:$0xff]  ;;  %v5248_v39 = vpack.c.bf16 %v670_v35, %v669_v18  ;;  %v671_v42 = vld [vmem:[%s7854_s30 + $0x20] sm:$0xff] }
 0x117   : > { %v7820_v49 = vpop.permute.xlu1 %972  ;;  %v1784_v52 = vadd.s32 536870912, %v1783_v20  ;;  %6686 = vmatpush3.bf16.msra.mxu0 %v5132_v44 }
 0x119   : > { %v864_v41 = vpop.permute.xlu0 %863  ;;  %6932 = vset.pattern.permute.xlu1 %v10789_v58  ;;  %v7856_v10 = vshrl.u32 %v1784_v52, 30 }
 0x11a   : > { %v923_v0 = vsel %vm7619_vm9, %v864_v41, %v836_v29  ;;  %1172 = vperm.xlu1 %6932, %v7406_v34   ;;  %6664 = vmatmul.mubr.msk.bf16.gmra.mxu0 %vm10690_vm5, %v4843_v25  ;;  %v10848_v25 = vmov 2   ;;  %v10850_v41 = vld [vmem:[#allocation7_spill] sm:$0xff] }
 0x11b   : > { %v1026_v11 = vsel %vm7636_vm11, %v7485_v57, %v923_v0  ;;  %v7848_v54 = vpop.permute.xlu1 %977  ;;  %6682 = vmatmul.mubr.msk.bf16.gmra.mxu1 %vm10690_vm5, %v4834_v38  ;;  %v668_v57 = vld [vmem:[%s7854_s30 + $0x8] sm:$0xff]  ;;  %v1786_v13 = vshll.u32 %v7856_v10, 30  ;;  %6687 = vmatprep.mubr.msk.bf16.mxu0 %vm10690_vm5, %v5098_v23  ;;  %v10849_v38 = vld [vmem:[#allocation18_spill] sm:$0xff]  ;;  %v674_v23 = vld [vmem:[%s7854_s30 + $0x38] sm:$0xff] }
 0x11c   : > { %v1113_v34 = vsel %vm7651_vm14, %v7630_v40, %v1026_v11  ;;  %v5247_v16 = vpack.c.bf16 %v668_v57, %v667_v43  ;;  %v838_v40 = vsel %vm7606_vm7, %v7448_v46, %v7455_v48  ;;  %v10844_v48 = vld [vmem:[#allocation35_spill] sm:$0xff]  ;;  %v1809_v43 = vsub.s32 4, %v7856_v10  ;;  %v10851_v57 = vld [vmem:[#allocation28_spill] sm:$0xff] }
 0x11d   : > { %v1137_v15 = vpop.permute.xlu0 %1136  ;;  %v925_v3 = vsel %vm7619_vm9, %v10842_v2, %v838_v40  ;;  %v7889_v46 = vsub.s32 %v1783_v20, %v1786_v13  ;;  %v1200_v6 = vsel %vm7662_vm15, %v10846_v1, %v1113_v34  ;;  %v672_v11 = vld [vmem:[%s7854_s30 + $0x28] sm:$0xff]  ;;  %v10854_v40 = vld [vmem:[#allocation26_spill] sm:$0xff]  ;;  %v10856_v2 = vld [vmem:[#allocation4_spill] sm:$0xff] }
 0x11e   : > { %v1199_v14 = vsel %vm7662_vm15, %v1137_v15, %v1112_v12  ;;  %1176 = vperm.xlu1 %6932, %v7744_v8   ;;  %6705 = vmatprep.mubr.msk.bf16.mxu1 %vm10689_vm13, %v5247_v16  ;;  %v1028_v53 = vsel %vm7636_vm11, %v10847_v28, %v925_v3  ;;  %v1303_v51 = vsel %vm7675_vm0, %v10850_v41, %v1200_v6  ;;  %v673_v15 = vld [vmem:[%s7854_s30 + $0x30] sm:$0xff]  ;;  %v10852_v16 = vld [vmem:[#allocation31_spill] sm:$0xff] }
 0x11f   : > { %v1302_v4 = vsel %vm7675_vm0, %v10843_v17, %v1199_v14  ;;  %v1789_v20 = vsub.s32 0, %v7889_v46  ;;  %v1115_v29 = vsel %vm7651_vm14, %v10849_v38, %v1028_v53  ;;  %v1390_v12 = vsel %vm7687_vm1, %v10851_v57, %v1303_v51 }
 0x120   : > { %v1389_v31 = vsel %vm7687_vm1, %v10844_v48, %v1302_v4  ;;  %v7894_v32 = vpop.permute.xlu1 %1065  ;;  %v10857_v4 = vld [vmem:[#allocation45_spill] sm:$0xff]  ;;  %v5249_v6 = vpack.c.bf16 %v672_v11, %v671_v42  ;;  %v5250_v53 = vpack.c.bf16 %v674_v23, %v673_v15  ;;  %v1779_v42 = vadd.s32 %v7780_v19, %v7778_v9 }
 0x121   : > { %v1149_v56 = vpop.permute.xlu0 %1148  ;;  %v6360_v52 = vmin.u32 %v1789_v20, %v7889_v46  ;;  %v1476_v35 = vsel %vm7691_vm2, %v10852_v16, %v1389_v31  ;;  %v10859_v31 = vld [vmem:[#allocation3_spill] sm:$0xff] }
 0x122   : > { %6933 = vset.pattern.permute.xlu1 %v10848_v25  ;;  %v1202_v0 = vsel %vm7662_vm15, %v1149_v56, %v1115_v29  ;;  %6688 = vmatmul.mubr.msk.bf16.vlgmr.msra.gmra.mxu0 %vm10690_vm5, %v5099_v62  ;;  %v10855_v62 = vld [vmem:[#allocation2_spill] sm:$0xff]  ;;  %v10861_v20 = vld [vmem:[#allocation47_spill] sm:$0xff] }
 0x123   : > { %1264 = vperm.xlu1 %6933, %v7414_v36   ;;  %6706 = vmatmul.mubr.msk.bf16.vlgmr.msra.gmra.mxu1 %vm10689_vm13, %v5248_v39  ;;  %v1791_v34 = vclz %v6360_v52  ;;  %v1305_v13 = vsel %vm7675_vm0, %v10854_v40, %v1202_v0  ;;  %v5100_v3 = vpack.c.bf16 %v10856_v2, %v10855_v62  ;;  %v10860_v39 = vld [vmem:[#allocation5_spill] sm:$0xff]  ;;  %vm1725_vm3 = vcmp.lt.s32.totalorder %v10861_v20, 0  ;;  %v10862_v29 = vld [vmem:[#allocation39_spill] sm:$0xff] }
 0x124   : > { %v7915_v27 = vpop.permute.xlu1 %1073  ;;  %v5101_v56 = vpack.c.bf16 %v10860_v39, %v10859_v31  ;;  %v1392_v41 = vsel %vm7687_vm1, %v10862_v29, %v1305_v13  ;;  %6709 = vmatprep.mubr.msk.bf16.mxu1 %vm10689_vm13, %v5249_v6  ;;  %v7953_v52 = vmul.f32 %v10857_v4, %v1476_v35  ;;  %v1810_v57 = vsel %vm1725_vm3, %v1809_v43, %v7856_v10  ;;  %v10869_v31 = vld [vmem:[#allocation53_spill] sm:$0xff]  ;;  %v10870_v39 = vld [vmem:[#allocation50_spill] sm:$0xff] }
 0x125   : > { %v1418_v44 = vpop.permute.xlu0 %1417  ;;  %v6361_v17 = vadd.s32 4294967294, %v1791_v34  ;;  %6691 = vmatprep.mubr.msk.bf16.mxu0 %vm10690_vm5, %v5100_v3 }
 0x126   : > { %v1477_v14 = vsel %vm7691_vm2, %v1418_v44, %v1390_v12  ;;  %10863 = vst [vmem:[#allocation23_spill] sm:$0xff] %v7953_v52  ;;  %v1518_v35 = vand.u32 2139095040, %v7953_v52 }
 0x127   : > { %1274 = vperm.xlu1 %6933, %v7786_v47   ;;  %v7939_v48 = vmul.f32 %v10857_v4, %v1477_v14  ;;  %vm6362_vm4 = vcmp.lt.s32.totalorder %v6361_v17, 0 }
 0x128   : > { %v7941_v1 = vpop.permute.xlu1 %1077  ;;  %v1794_v51 = vsel %vm6362_vm4, 0, %v6361_v17 }
 0x129   : > { %10858 = vst [vmem:[#allocation11_spill] sm:$0xff] %v7939_v48  ;;  %v1426_v28 = vpop.permute.xlu0 %1425  ;;  %v1622_v38 = vand.u32 2139095040, %v7939_v48  ;;  %v10682_v0 = vand.u32 2147483647, %v7939_v48  ;;  %v1795_v11 = vsub.s32 32, %v1794_v51  ;;  %v1799_v34 = vsub.s32 4294967266, %v1794_v51 }
 0x12a   : > { %v1479_v44 = vsel %vm7691_vm2, %v1426_v28, %v1392_v41  ;;  %6692 = vmatmul.mubr.msk.bf16.gmra.mxu0 %vm10690_vm5, %v5101_v56  ;;  %v1796_v19 = vshll.u32 %v7889_v46, %v1794_v51  ;;  %v842_v56 = vsel %vm7606_vm7, %v10870_v39, %v10869_v31  ;;  %v1519_v28 = vshrl.u32 %v1518_v35, 23 }
 0x12b   : > { %1279 = vperm.xlu1 %6933, %v7420_v37   ;;  %6710 = vmatmul.mubr.msk.bf16.gmra.mxu1 %vm10689_vm13, %v5250_v53  ;;  %v1623_v12 = vshrl.u32 %v1622_v38, 23  ;;  %v7967_v15 = vmul.f32 %v10857_v4, %v1479_v44  ;;  %v10865_v37 = vand.u32 2147483647, %v10861_v20  ;;  %v1797_v16 = vshrl.u32 %v1779_v42, %v1795_v11  ;;  %v10871_v44 = vld [vmem:[#allocation41_spill] sm:$0xff] }
 0x12c   : > { %v1800_v10 = vadd.s32 127, %v1799_v34  ;;  %v1626_v13 = vand.u32 8388607, %v10682_v0  ;;  %v10872_v42 = vld [vmem:[#allocation37_spill] sm:$0xff]  ;;  %v8005_v34 = vsel %vm7619_vm9, %v7788_v24, %v842_v56  ;;  %v10873_v31 = vmov 2475754826  }
 0x12d   : > { %10864 = vst [vmem:[#allocation35_spill] sm:$0xff] %v7967_v15  ;;  %v7969_v23 = vpop.permute.xlu1 %1156  ;;  %vm7973_vm6 = vcmp.le.f32.partialorder %v10865_v37, 0.7853982  ;;  %v6355_v40 = vadd.s32 4294967169, %v1623_v12  ;;  %v1798_v14 = vor.u32 %v1797_v16, %v1796_v19  ;;  %v10683_v2 = vand.u32 2147483647, %v7967_v15  ;;  %v880_v51 = vpop.permute.xlu0 %879 }
 0x12e   : > { %v1812_v43 = vsel %vm7973_vm6, 0, %v1810_v57  ;;  %v1801_v62 = vshll.u32 %v1800_v10, 23  ;;  %v1627_v53 = vor.u32 8388608, %v1626_v13  ;;  %v1830_v38 = vand.u32 2139095040, %v7967_v15 }
 0x12f   : > { %6934 = vset.pattern.permute.xlu1 %v10784_v60  ;;  %v1816_v17 = vadd.s32 3, %v1812_v43  ;;  %v1629_v6 = vadd.s32 1, %v6355_v40  ;;  %v1805_v41 = vcvt.s32.f32 %v1798_v14  ;;  %v840_v11 = vsel %vm7606_vm7, %v10872_v42, %v10871_v44 }
 0x130   : > { %1362 = vperm.xlu1 %6934, %v7336_v21   ;;  %v1802_v3 = vor.u32 4788187, %v1801_v62  ;;  %v7995_v21 = vand.u32 8388607, %v10683_v2  ;;  %v1831_v12 = vshrl.u32 %v1830_v38, 23  ;;  %v8009_v16 = vand.u32 3, %v1812_v43 }
 0x131   : > { %v7986_v46 = vpop.permute.xlu1 %1160  ;;  %vm1630_vm8 = vcmp.gt.s32.totalorder %v1629_v6, 0  ;;  %v8007_v19 = vand.u32 3, %v1816_v17  ;;  %v8013_v40 = vadd.s32 4294967169, %v1519_v28  ;;  %v8017_v14 = vshll.u32 %v1627_v53, 8  ;;  %v8044_v45 = vpop.permute.xlu0 %1152 }
 0x132   : > { %10868 = vst [vmem:[#allocation20_spill] sm:$0xff] %v7986_v46  ;;  %v1803_v29 = vand.u32 2147483647, %v1802_v3  ;;  %v1631_v57 = vsel %vm1630_vm8, %v1629_v6, 0  ;;  %v8021_v24 = vsel %vm7619_vm9, %v880_v51, %v840_v11  ;;  %v6363_v6 = vadd.s32 4294967169, %v1831_v12 }
 0x133   : > { %v1633_v10 = vand.u32 31, %v1631_v57  ;;  %v8015_v13 = vshrl.u32 %v1631_v57, 5  ;;  %v10874_v56 = vmov 2131351028   ;;  %v10875_v38 = vmov 2102212464  }
 0x134   : > { %1366 = vperm.xlu1 %6934, %v7786_v47   ;;  %v1806_v37 = vmul.f32 %v1805_v41, %v1803_v29  ;;  %v10876_v44 = vmov 920167782   ;;  %vm1818_vm13 = vcmp.lt.s32.totalorder %v8007_v19, 2  ;;  %vm3479_vm5 = vcmp.lt.s32.totalorder %v8009_v16, 2 }
 0x135   : > { %v1634_v3 = vsub.s32 32, %v1633_v10  ;;  %v1636_v43 = vshll.u32 %v10838_v50, %v1633_v10  ;;  %v1639_v39 = vshll.u32 %v10873_v31, %v1633_v10  ;;  %v1642_v28 = vshll.u32 %v10874_v56, %v1633_v10 }
 0x136   : > { %v8011_v35 = vpop.permute.xlu1 %1244  ;;  %v1807_v62 = vxor.u32 2147483648, %v1806_v37  ;;  %v1645_v53 = vshll.u32 %v10875_v38, %v1633_v10  ;;  %v1648_v42 = vshll.u32 %v10876_v44, %v1633_v10  ;;  %vm1651_vm10 = vcmp.lt.s32.totalorder %v8015_v13, 1 }
 0x137   : > { %v1637_v41 = vshrl.u32 %v10873_v31, %v1634_v3  ;;  %v1640_v51 = vshrl.u32 %v10874_v56, %v1634_v3  ;;  %v1643_v12 = vshrl.u32 %v10875_v38, %v1634_v3  ;;  %v1646_v0 = vshrl.u32 %v10876_v44, %v1634_v3 }
 0x138   : > { %6935 = vset.pattern.permute.xlu1 %v10789_v58  ;;  %v1808_v29 = vsel %vm1725_vm3, %v1807_v62, %v1806_v37  ;;  %v1635_v9 = vshrl.u32 %v10838_v50, %v1634_v3  ;;  %vm1653_vm12 = vcmp.lt.s32.totalorder %v8015_v13, 3  ;;  %vm1654_vm3 = vcmp.lt.s32.totalorder %v8015_v13, 4 }
 0x139   : > { %1445 = vperm.xlu1 %6935, %v7414_v36   ;;  %v1811_v57 = vsel %vm7973_vm6, %v10861_v20, %v1808_v29  ;;  %v10878_v36 = vmov 1326507024   ;;  %v1638_v37 = vor.u32 %v1637_v41, %v1636_v43  ;;  %v1641_v62 = vor.u32 %v1640_v51, %v1639_v39  ;;  %v8053_v39 = vld [vmem:[%s7237_s0 + $0x60] sm:$0xff] }
 0x13a   : > { %v8035_v11 = vpop.permute.xlu1 %1254  ;;  %v1649_v2 = vshrl.u32 %v10878_v36, %v1634_v3  ;;  %6967 = vcosq.f32 %v1811_v57  ;;  %v1644_v10 = vor.u32 %v1643_v12, %v1642_v28  ;;  %v1647_v17 = vor.u32 %v1646_v0, %v1645_v53 }
 0x13b   : > { %10877 = vst [vmem:[#allocation6_spill] sm:$0xff] %v8035_v11  ;;  %6969 = vsinq.f32 %v1811_v57  ;;  %v1659_v43 = vsel %vm1651_vm10, %v1638_v37, %v1641_v62  ;;  %vm1652_vm4 = vcmp.lt.s32.totalorder %v8015_v13, 2  ;;  %v1837_v51 = vadd.s32 1, %v6363_v6  ;;  %v10879_v6 = vld [vmem:[#allocation29_spill] sm:$0xff] }
 0x13c   : > { %v1650_v30 = vor.u32 %v1649_v2, %v1648_v42  ;;  %v1656_v0 = vsel %vm1654_vm3, %v1644_v10, 2102212464  ;;  %v1660_v2 = vsel %vm1654_vm3, %v1647_v17, 920167782  ;;  %v1663_v53 = vsel %vm1651_vm10, %v1641_v62, %v1644_v10 }
 0x13d   : > { %6936 = vset.pattern.permute.xlu1 %v10784_v60  ;;  %v1661_v3 = vsel %vm1653_vm12, %v1644_v10, %v1660_v2  ;;  %v1655_v42 = vsel %vm1651_vm10, %v1635_v9, %v1638_v37  ;;  %v1657_v57 = vsel %vm1653_vm12, %v1641_v62, %v1656_v0  ;;  %vm3483_vm6 = vcmp.eq.s32.totalorder %v8009_v16, 2  ;;  %v1165_v62 = vpop.permute.xlu0 %1164 }
 0x13e   : > { %753 = vperm.xlu1 %6936, %v8053_v39   ;;  %v1260_v28 = vpop.permute.xlu1 %1259  ;;  %v1664_v29 = vsel %vm1654_vm3, %v1650_v30, 1326507024  ;;  %v1662_v12 = vsel %vm1652_vm4, %v1659_v43, %v1661_v3  ;;  %vm1838_vm8 = vcmp.gt.s32.totalorder %v1837_v51, 0  ;;  %vm1819_vm10 = vcmp.eq.s32.totalorder %v8007_v19, 0 }
 0x13f   : > { %v1665_v41 = vsel %vm1653_vm12, %v1647_v17, %v1664_v29  ;;  %v8070_v30 = vmul.u32.u64.low %v8017_v14, %v1662_v12  ;;  %v8071_v46 = vmul.u32.u64.high %v8017_v14, %v1662_v12, %v8070_v30  ;;  %v10880_v17 = vld [vmem:[#allocation12_spill] sm:$0xff]  ;;  %vm1822_vm12 = vcmp.eq.s32.totalorder %v8007_v19, 2 }
 0x140   : > { %v1666_v52 = vsel %vm1652_vm4, %v1663_v53, %v1665_v41  ;;  %v1032_v37 = vsel %vm7636_vm11, %v10880_v17, %v8005_v34  ;;  %vm3480_vm3 = vcmp.eq.s32.totalorder %v8009_v16, 0  ;;  %v8090_v34 = vadd.s32 1, %v8013_v40 }
 0x141   : > { %v8066_v11 = vmul.u32.u64.low %v8017_v14, %v1666_v52  ;;  %v8067_v48 = vmul.u32.u64.high %v8017_v14, %v1666_v52, %v8066_v11  ;;  %v1658_v52 = vsel %vm1652_vm4, %v1655_v42, %v1657_v57  ;;  %v1119_v9 = vsel %vm7651_vm14, %v7941_v1, %v1032_v37  ;;  %v8137_v63 = vpop.permute.xlu0 %1433 }
 0x142   : > { %758 = vperm.xlu1 %6936, %v10879_v6   ;;  %v1839_v11 = vsel %vm1838_vm8, %v1837_v51, 0  ;;  %vm1815_vm4 = vweird.f32 %v10861_v20  ;;  %v1677_v13 = vadd.s32 1, %v8071_v46  ;;  %v10881_v40 = vor.u32 8388608, %v7995_v21 }
 0x143   : > { %v8080_v10 = vpop.permute.xlu1 %1346  ;;  %v1841_v43 = vand.u32 31, %v1839_v11  ;;  %vm1676_vm8 = vc.u32 %v8067_v48, %v8070_v30  ;;  %v1206_v1 = vsel %vm7662_vm15, %v1165_v62, %v1119_v9  ;;  %v1674_v53 = vmul.u32 %v8017_v14, %v1658_v52 }
 0x144   : > { %v8105_v2 = vshll.u32 %v10881_v40, 8  ;;  %v8111_v29 = vshrl.u32 %v1839_v11, 5  ;;  %v8115_v41 = vsel %vm7675_vm0, %v1260_v28, %v1206_v1  ;;  %v1678_v21 = vsel %vm1676_vm8, %v1677_v13, %v8071_v46 }
 0x145   : > { %v1842_v3 = vsub.s32 32, %v1841_v43  ;;  %v1844_v42 = vshll.u32 %v10838_v50, %v1841_v43  ;;  %v1847_v57 = vshll.u32 %v10873_v31, %v1841_v43  ;;  %v1850_v12 = vshll.u32 %v10874_v56, %v1841_v43 }
 0x146   : > { %6937 = vset.pattern.permute.xlu1 %v10848_v25  ;;  %v1679_v17 = vadd.s32 %v1678_v21, %v1674_v53  ;;  %v1853_v28 = vshll.u32 %v10875_v38, %v1841_v43  ;;  %vm1526_vm8 = vcmp.gt.s32.totalorder %v8090_v34, 0  ;;  %v1856_v53 = vshll.u32 %v10876_v44, %v1841_v43 }
 0x147   : > { %824 = vperm.xlu1 %6937, %v10879_v6   ;;  %v8118_v51 = vpop.permute.xlu1 %1350  ;;  %v6968_v14 = vpop.eup %6967  ;;  %v1845_v37 = vshrl.u32 %v10873_v31, %v1842_v3  ;;  %v1848_v62 = vshrl.u32 %v10874_v56, %v1842_v3  ;;  %v1851_v11 = vshrl.u32 %v10875_v38, %v1842_v3  ;;  %v1854_v46 = vshrl.u32 %v10876_v44, %v1842_v3 }
 0x148   : > { %10882 = vst [vmem:[#allocation18_spill] sm:$0xff] %v8118_v51  ;;  %v6970_v52 = vpop.eup %6969  ;;  %v1823_v6 = vxor.u32 2147483648, %v6968_v14  ;;  %v1857_v9 = vshrl.u32 %v10878_v36, %v1842_v3  ;;  %v1680_v40 = vadd.s32 536870912, %v1679_v17  ;;  %v1843_v19 = vshrl.u32 %v10838_v50, %v1842_v3  ;;  %v8174_v3 = vld [vmem:[%s7237_s0 + $0x70] sm:$0xff] }
 0x149   : > { %v1820_v13 = vxor.u32 2147483648, %v6970_v52  ;;  %v1846_v1 = vor.u32 %v1845_v37, %v1844_v42  ;;  %v1849_v51 = vor.u32 %v1848_v62, %v1847_v57  ;;  %v1852_v15 = vor.u32 %v1851_v11, %v1850_v12  ;;  %10885 = vst [vmem:[#allocation31_spill] sm:$0xff] %v8174_v3 }
 0x14a   : > { %v1824_v21 = vsel %vm1822_vm12, %v1823_v6, %v6970_v52  ;;  %v3485_v0 = vsel %vm3483_vm6, %v1823_v6, %v6970_v52  ;;  %v8146_v37 = vshrl.u32 %v1680_v40, 30  ;;  %v1855_v31 = vor.u32 %v1854_v46, %v1853_v28  ;;  %v10887_v40 = vld [vmem:[#allocation49_spill] sm:$0xff] }
 0x14b   : > { %6938 = vset.pattern.permute.xlu1 %v10789_v58  ;;  %v1821_v42 = vsel %vm1819_vm10, %v6968_v14, %v1820_v13  ;;  %v3482_v43 = vsel %vm3480_vm3, %v6968_v14, %v1820_v13  ;;  %v1858_v12 = vor.u32 %v1857_v9, %v1856_v53  ;;  %vm1859_vm6 = vcmp.lt.s32.totalorder %v8111_v29, 1 }
 0x14c   : > { %1453 = vperm.xlu1 %6938, %v7786_v47   ;;  %v8140_v56 = vpop.permute.xlu1 %1429  ;;  %v1825_v52 = vsel %vm1818_vm13, %v1821_v42, %v1824_v21  ;;  %v3486_v57 = vsel %vm3479_vm5, %v3482_v43, %v3485_v0  ;;  %v1682_v62 = vshll.u32 %v8146_v37, 30  ;;  %vm1860_vm13 = vcmp.lt.s32.totalorder %v8111_v29, 2  ;;  %v8188_v21 = vld [vmem:[%s7237_s0 + $0x78] sm:$0xff] }
 0x14d   : > { %v8155_v47 = vsel %vm1815_vm4, nan, %v1825_v52  ;;  %v8159_v14 = vsel %vm1815_vm4, nan, %v3486_v57  ;;  %vm1861_vm5 = vcmp.lt.s32.totalorder %v8111_v29, 3  ;;  %vm1862_vm10 = vcmp.lt.s32.totalorder %v8111_v29, 4  ;;  %10888 = vst [vmem:[#allocation2_spill] sm:$0xff] %v8188_v21 }
 0x14e   : > { %10883 = vst [vmem:[#allocation7_spill] sm:$0xff] %v8155_v47  ;;  %10884 = vst [vmem:[#allocation28_spill] sm:$0xff] %v8159_v14  ;;  %v1867_v16 = vsel %vm1859_vm6, %v1846_v1, %v1849_v51  ;;  %v8169_v0 = vsub.s32 %v1679_v17, %v1682_v62  ;;  %v1864_v20 = vsel %vm1862_vm10, %v1852_v15, 2102212464  ;;  %v1868_v28 = vsel %vm1862_vm10, %v1855_v31, 920167782  ;;  %v1442_v17 = vpop.permute.xlu0 %1441 }
 0x14f   : > { %v1871_v6 = vsel %vm1859_vm6, %v1849_v51, %v1852_v15  ;;  %v1863_v46 = vsel %vm1859_vm6, %v1843_v19, %v1846_v1  ;;  %v1869_v9 = vsel %vm1861_vm5, %v1852_v15, %v1868_v28  ;;  %v1872_v13 = vsel %vm1862_vm10, %v1858_v12, 1326507024 }
 0x150   : > { %6939 = vset.pattern.permute.xlu1 %v10784_v60  ;;  %v1396_v53 = vsel %vm7687_vm1, %v10887_v40, %v8115_v41  ;;  %v1685_v42 = vsub.s32 0, %v8169_v0  ;;  %v1865_v43 = vsel %vm1861_vm5, %v1849_v51, %v1864_v20  ;;  %v1870_v1 = vsel %vm1860_vm13, %v1867_v16, %v1869_v9  ;;  %v10890_v51 = vld [vmem:[#allocation42_spill] sm:$0xff] }
 0x151   : > { %763 = vperm.xlu1 %6939, %v8174_v3   ;;  %v8177_v11 = vpop.permute.xlu1 %733  ;;  %v1873_v15 = vsel %vm1861_vm5, %v1855_v31, %v1872_v13  ;;  %v8200_v57 = vmul.u32.u64.low %v8105_v2, %v1870_v1  ;;  %v8201_v12 = vmul.u32.u64.high %v8105_v2, %v1870_v1, %v8200_v57  ;;  %v10889_v41 = vsel %vm7636_vm11, %v7820_v49, %v8021_v24 }
 0x152   : > { %10886 = vst [vmem:[#allocation26_spill] sm:$0xff] %v8177_v11  ;;  %v1874_v52 = vsel %vm1860_vm13, %v1871_v6, %v1873_v15  ;;  %v1117_v62 = vsel %vm7651_vm14, %v10890_v51, %v10889_v41  ;;  %v6356_v19 = vmin.u32 %v1685_v42, %v8169_v0  ;;  %v1483_v20 = vsel %vm7691_vm2, %v1442_v17, %v1396_v53  ;;  %v10896_v15 = vld [vmem:[#allocation8_spill] sm:$0xff] }
 0x153   : > { %v8214_v31 = vmul.u32.u64.low %v8105_v2, %v1874_v52  ;;  %v8215_v16 = vmul.u32.u64.high %v8105_v2, %v1874_v52, %v8214_v31  ;;  %v1527_v49 = vsel %vm1526_vm8, %v8090_v34, 0  ;;  %v1866_v24 = vsel %vm1860_vm13, %v1863_v46, %v1865_v43  ;;  %v10894_v43 = vld [vmem:[#allocation13_spill] sm:$0xff] }
 0x154   : > { %v8228_v6 = vmul.f32 %v10857_v4, %v1483_v20  ;;  %v1687_v9 = vclz %v6356_v19  ;;  %v1204_v13 = vsel %vm7662_vm15, %v7969_v23, %v1117_v62  ;;  %v1885_v17 = vadd.s32 1, %v8201_v12  ;;  %v10897_v52 = vld [vmem:[#allocation33_spill] sm:$0xff] }
 0x155   : > { %768 = vperm.xlu1 %6939, %v8188_v21   ;;  %v8220_v28 = vpop.permute.xlu1 %738  ;;  %v8235_v53 = vand.u32 31, %v1527_v49  ;;  %v1882_v34 = vmul.u32 %v8105_v2, %v1866_v24  ;;  %vm1884_vm12 = vc.u32 %v8215_v16, %v8200_v57  ;;  %v1307_v23 = vsel %vm7675_vm0, %v10894_v43, %v1204_v13  ;;  %v10900_v13 = vld [vmem:[#allocation48_spill] sm:$0xff] }
 0x156   : > { %10891 = vst [vmem:[#allocation4_spill] sm:$0xff] %v8220_v28  ;;  %10892 = vst [vmem:[#allocation45_spill] sm:$0xff] %v8228_v6  ;;  %v2246_v40 = vand.u32 2139095040, %v8228_v6  ;;  %v6357_v42 = vadd.s32 4294967294, %v1687_v9  ;;  %v1886_v29 = vsel %vm1884_vm12, %v1885_v17, %v8201_v12  ;;  %v839_v2 = vsel %vm7606_vm7, %v10897_v52, %v10896_v15  ;;  %v10899_v9 = vld [vmem:[#allocation9_spill] sm:$0xff] }
 0x157   : > { %10893 = vst [vmem:[#allocation3_spill] sm:$0xff] %v8235_v53  ;;  %v1887_v41 = vadd.s32 %v1886_v29, %v1882_v34  ;;  %v1394_v12 = vsel %vm7687_vm1, %v8080_v10, %v1307_v23  ;;  %v926_v51 = vsel %vm7619_vm9, %v7759_v59, %v839_v2  ;;  %v10697_v62 = vand.u32 2147483647, %v8228_v6  ;;  %v10901_v29 = vld [vmem:[#allocation10_spill] sm:$0xff] }
 0x158   : > { %v2247_v46 = vshrl.u32 %v2246_v40, 23  ;;  %vm6358_vm3 = vcmp.lt.s32.totalorder %v6357_v42, 0  ;;  %v8264_v20 = vsub.s32 32, %v8235_v53  ;;  %v841_v10 = vsel %vm7606_vm7, %v10900_v13, %v10899_v9 }
 0x159   : > { %6940 = vset.pattern.permute.xlu1 %v10848_v25  ;;  %v1888_v24 = vadd.s32 536870912, %v1887_v41  ;;  %v1690_v17 = vsel %vm6358_vm3, 0, %v6357_v42  ;;  %v1481_v59 = vsel %vm7691_vm2, %v8137_v63, %v1394_v12  ;;  %v928_v34 = vsel %vm7619_vm9, %v7766_v33, %v841_v10 }
 0x15a   : > { %832 = vperm.xlu1 %6940, %v8188_v21   ;;  %v8246_v1 = vpop.permute.xlu1 %808  ;;  %v6379_v19 = vadd.s32 4294967169, %v2247_v46  ;;  %10898 = vst [vmem:[#allocation47_spill] sm:$0xff] %v8264_v20  ;;  %v1029_v46 = vsel %vm7636_vm11, %v10901_v29, %v926_v51  ;;  %v1031_v42 = vsel %vm7636_vm11, %v7848_v54, %v928_v34  ;;  %v2250_v23 = vand.u32 8388607, %v10697_v62  ;;  %v10903_v29 = vld [vmem:[#allocation46_spill] sm:$0xff] }
 0x15b   : > { %10895 = vst [vmem:[#allocation5_spill] sm:$0xff] %v8246_v1  ;;  %v8280_v43 = vshrl.u32 %v1888_v24, 30  ;;  %v1116_v63 = vsel %vm7651_vm14, %v7894_v32, %v1029_v46  ;;  %v1542_v33 = vshrl.u32 %v10876_v44, %v8264_v20  ;;  %v1695_v15 = vsub.s32 4294967266, %v1690_v17 }
 0x15c   : > { %v2253_v40 = vadd.s32 1, %v6379_v19  ;;  %v8299_v54 = vshrl.u32 %v10878_v36, %v8264_v20  ;;  %v8304_v32 = vsel %vm7651_vm14, %v7915_v27, %v1031_v42  ;;  %v1203_v2 = vsel %vm7662_vm15, %v8044_v45, %v1116_v63 }
 0x15d   : > { %v1890_v52 = vshll.u32 %v8280_v43, 30  ;;  %v8309_v51 = vshrl.u32 %v1527_v49, 5  ;;  %v1306_v24 = vsel %vm7675_vm0, %v8011_v35, %v1203_v2  ;;  %v8321_v27 = vshll.u32 %v10876_v44, %v8235_v53 }
 0x15e   : > { %6941 = vset.pattern.permute.xlu1 %v10789_v58  ;;  %vm2254_vm4 = vcmp.gt.s32.totalorder %v2253_v40, 0  ;;  %v1691_v9 = vsub.s32 32, %v1690_v17  ;;  %v2251_v45 = vor.u32 8388608, %v2250_v23  ;;  %v1696_v10 = vadd.s32 127, %v1695_v15 }
 0x15f   : > { %907 = vperm.xlu1 %6941, %v8053_v39   ;;  %v8295_v39 = vmul.f32 %v10857_v4, %v1481_v59  ;;  %v2255_v12 = vsel %vm2254_vm4, %v2253_v40, 0  ;;  %v1541_v4 = vshll.u32 %v10875_v38, %v8235_v53  ;;  %v8313_v19 = vsub.s32 %v1887_v41, %v1890_v52  ;;  %v8358_v31 = vpop.permute.xlu1 %1437  ;;  %v8361_v59 = vld [vmem:[%s7249_s1 + $0x68] sm:$0xff] }
 0x160   : > { %v2257_v13 = vand.u32 31, %v2255_v12  ;;  %v1675_v35 = vadd.s32 %v8070_v30, %v8067_v48  ;;  %v1393_v46 = vsel %vm7687_vm1, %v10903_v29, %v1306_v24  ;;  %v1692_v42 = vshll.u32 %v8169_v0, %v1690_v17 }
 0x161   : > { %10902 = vst [vmem:[#allocation39_spill] sm:$0xff] %v8295_v39  ;;  %v8323_v49 = vor.u32 %v1542_v33, %v1541_v4  ;;  %v1893_v40 = vsub.s32 0, %v8313_v19  ;;  %v2038_v41 = vand.u32 2139095040, %v8295_v39  ;;  %v1883_v63 = vadd.s32 %v8200_v57, %v8215_v16 }
 0x162   : > { %v2258_v34 = vsub.s32 32, %v2257_v13  ;;  %v8341_v33 = vsel %vm7691_vm2, %v8140_v56, %v1393_v46  ;;  %v1693_v48 = vshrl.u32 %v1675_v35, %v1691_v9  ;;  %v10904_v30 = vmov 2475754826  }
 0x163   : > { %915 = vperm.xlu1 %6941, %v8174_v3   ;;  %v6364_v23 = vmin.u32 %v1893_v40, %v8313_v19  ;;  %v8345_v52 = vshll.u32 %v2251_v45, 8  ;;  %v1697_v0 = vshll.u32 %v1696_v10, 23  ;;  %v2260_v57 = vshll.u32 %v10838_v50, %v2257_v13  ;;  %v10913_v3 = vld [vmem:[#allocation11_spill] sm:$0xff] }
 0x164   : > { %v2261_v15 = vshrl.u32 %v10904_v30, %v2258_v34  ;;  %v2039_v16 = vshrl.u32 %v2038_v41, 23  ;;  %v2263_v4 = vshll.u32 %v10904_v30, %v2257_v13  ;;  %v10905_v24 = vmov 2131351028  }
 0x165   : > { %v1895_v17 = vclz %v6364_v23  ;;  %v2264_v56 = vshrl.u32 %v10905_v24, %v2258_v34  ;;  %v2266_v40 = vshll.u32 %v10905_v24, %v2257_v13  ;;  %v2267_v9 = vshrl.u32 %v10875_v38, %v2258_v34 }
 0x166   : > { %v2256_v29 = vshrl.u32 %v2255_v12, 5  ;;  %v2269_v45 = vshll.u32 %v10875_v38, %v2257_v13  ;;  %v2270_v46 = vshrl.u32 %v10876_v44, %v2258_v34  ;;  %v8356_v10 = vor.u32 %v1693_v48, %v1692_v42 }
 0x167   : > { %919 = vperm.xlu1 %6941, %v8188_v21   ;;  %v6365_v35 = vadd.s32 4294967294, %v1895_v17  ;;  %v2262_v23 = vor.u32 %v2261_v15, %v2260_v57  ;;  %v2265_v41 = vor.u32 %v2264_v56, %v2263_v4  ;;  %v2268_v62 = vor.u32 %v2267_v9, %v2266_v40  ;;  %v10906_v9 = vld [vmem:[#allocation58_spill] sm:$0xff] }
 0x168   : > { %v2271_v17 = vor.u32 %v2270_v46, %v2269_v45  ;;  %v2272_v12 = vshll.u32 %v10876_v44, %v2257_v13  ;;  %v2273_v2 = vshrl.u32 %v10878_v36, %v2258_v34  ;;  %v1698_v26 = vor.u32 4788187, %v1697_v0 }
 0x169   : > { %vm6366_vm8 = vcmp.lt.s32.totalorder %v6365_v35, 0  ;;  %v2259_v42 = vshrl.u32 %v10838_v50, %v2258_v34  ;;  %v6371_v48 = vadd.s32 4294967169, %v2039_v16  ;;  %vm2275_vm6 = vcmp.lt.s32.totalorder %v2256_v29, 1 }
 0x16a   : > { %v1898_v61 = vsel %vm6366_vm8, 0, %v6365_v35  ;;  %v2274_v4 = vor.u32 %v2273_v2, %v2272_v12  ;;  %vm2277_vm13 = vcmp.lt.s32.totalorder %v2256_v29, 3  ;;  %vm2278_vm5 = vcmp.lt.s32.totalorder %v2256_v29, 4  ;;  %v8372_v35 = vpop.permute.xlu1 %743 }
 0x16b   : > { %6942 = vset.pattern.permute.xlu1 %v10848_v25  ;;  %v1899_v15 = vsub.s32 32, %v1898_v61  ;;  %v1903_v57 = vsub.s32 4294967266, %v1898_v61  ;;  %v1900_v56 = vshll.u32 %v8313_v19, %v1898_v61  ;;  %v2283_v40 = vsel %vm2275_vm6, %v2262_v23, %v2265_v41 }
 0x16c   : > { %1012 = vperm.xlu1 %6942, %v8361_v59   ;;  %v2280_v46 = vsel %vm2278_vm5, %v2268_v62, 2102212464  ;;  %v2284_v0 = vsel %vm2278_vm5, %v2271_v17, 920167782  ;;  %vm2276_vm10 = vcmp.lt.s32.totalorder %v2256_v29, 2  ;;  %v2287_v16 = vsel %vm2275_vm6, %v2265_v41, %v2268_v62 }
 0x16d   : > { %v1901_v13 = vshrl.u32 %v1883_v63, %v1899_v15  ;;  %v1904_v45 = vadd.s32 127, %v1903_v57  ;;  %v2285_v34 = vsel %vm2277_vm13, %v2268_v62, %v2284_v0  ;;  %v2288_v2 = vsel %vm2278_vm5, %v2274_v4, 1326507024  ;;  %v10907_v62 = vld [vmem:[#allocation35_spill] sm:$0xff] }
 0x16e   : > { %v2279_v12 = vsel %vm2275_vm6, %v2259_v42, %v2262_v23  ;;  %v2286_v14 = vsel %vm2276_vm10, %v2283_v40, %v2285_v34  ;;  %v2281_v63 = vsel %vm2277_vm13, %v2265_v41, %v2280_v46  ;;  %v2289_v15 = vsel %vm2277_vm13, %v2271_v17, %v2288_v2 }
 0x16f   : > { %v1902_v61 = vor.u32 %v1901_v13, %v1900_v56  ;;  %v1905_v19 = vshll.u32 %v1904_v45, 23  ;;  %v8379_v57 = vmul.u32.u64.low %v8345_v52, %v2286_v14  ;;  %v8380_v47 = vmul.u32.u64.high %v8345_v52, %v2286_v14, %v8379_v57  ;;  %v7098_v13 = vld [vmem:[%s7249_s1 + $0x60] sm:$0xff] }
 0x170   : > { %1017 = vperm.xlu1 %6942, %v10906_v9   ;;  %vm1829_vm12 = vcmp.lt.s32.totalorder %v10907_v62, 0  ;;  %v2290_v56 = vsel %vm2276_vm10, %v2287_v16, %v2289_v15  ;;  %v10908_v23 = vand.u32 2147483647, %v8295_v39  ;;  %v2045_v40 = vadd.s32 1, %v6371_v48  ;;  %v8396_v14 = vld [vmem:[%s10633_s5] ss:$0 sm:$0xff] }
 0x171   : > { %v1906_v4 = vor.u32 4788187, %v1905_v19  ;;  %v1699_v41 = vand.u32 2147483647, %v1698_v26  ;;  %v8390_v17 = vmul.u32.u64.low %v8345_v52, %v2290_v56  ;;  %v8391_v45 = vmul.u32.u64.high %v8345_v52, %v2290_v56, %v8390_v17  ;;  %v10912_v19 = vld [vmem:[#allocation20_spill] sm:$0xff] }
 0x172   : > { %v2042_v42 = vand.u32 8388607, %v10908_v23  ;;  %v8400_v46 = vmul.f32 %v8396_v14, %v8341_v33  ;;  %v1909_v34 = vcvt.s32.f32 %v1902_v61  ;;  %v2282_v48 = vsel %vm2276_vm10, %v2279_v12, %v2281_v63  ;;  %v8415_v61 = vpop.permute.xlu1 %748  ;;  %v7100_v12 = vld [vmem:[%s7249_s1 + $0x78] sm:$0xff] }
 0x173   : > { %v1907_v0 = vand.u32 2147483647, %v1906_v4  ;;  %vm2046_vm3 = vcmp.gt.s32.totalorder %v2045_v40, 0  ;;  %v1701_v26 = vcvt.s32.f32 %v8356_v10  ;;  %v10909_v16 = vand.u32 2147483647, %v10907_v62 }
 0x174   : > { %6943 = vset.pattern.permute.xlu1 %v10784_v60  ;;  %v2301_v33 = vadd.s32 1, %v8380_v47  ;;  %v2047_v4 = vsel %vm2046_vm3, %v2045_v40, 0  ;;  %v2043_v10 = vor.u32 8388608, %v2042_v42  ;;  %v2298_v23 = vmul.u32 %v8345_v52, %v2282_v48 }
 0x175   : > { %1097 = vperm.xlu1 %6943, %v7098_v13   ;;  %vm8406_vm4 = vcmp.le.f32.partialorder %v10909_v16, 0.7853982  ;;  %v1910_v29 = vmul.f32 %v1909_v34, %v1907_v0  ;;  %v2049_v63 = vand.u32 31, %v2047_v4  ;;  %v8419_v56 = vmul.f32 %v1701_v26, %v1699_v41 }
 0x176   : > { %vm2300_vm8 = vc.u32 %v8391_v45, %v8379_v57  ;;  %v1934_v34 = vand.u32 2139095040, %v8400_v46  ;;  %v2048_v16 = vshrl.u32 %v2047_v4, 5  ;;  %v8441_v39 = vshll.u32 %v2043_v10, 8 }
 0x177   : > { %v1911_v40 = vxor.u32 2147483648, %v1910_v29  ;;  %v2302_v17 = vsel %vm2300_vm8, %v2301_v33, %v8380_v47  ;;  %v2050_v0 = vsub.s32 32, %v2049_v63  ;;  %v2052_v15 = vshll.u32 %v10838_v50, %v2049_v63 }
 0x178   : > { %v2303_v42 = vadd.s32 %v2302_v17, %v2298_v23  ;;  %v2055_v41 = vshll.u32 %v10904_v30, %v2049_v63  ;;  %v2058_v48 = vshll.u32 %v10905_v24, %v2049_v63  ;;  %v2061_v13 = vshll.u32 %v10875_v38, %v2049_v63  ;;  %v8438_v17 = vpop.permute.xlu1 %816 }
 0x179   : > { %1105 = vperm.xlu1 %6943, %v10906_v9   ;;  %v2053_v26 = vshrl.u32 %v10904_v30, %v2050_v0  ;;  %v2056_v52 = vshrl.u32 %v10905_v24, %v2050_v0  ;;  %v1912_v47 = vsel %vm1829_vm12, %v1911_v40, %v1910_v29  ;;  %v2059_v4 = vshrl.u32 %v10875_v38, %v2050_v0 }
 0x17a   : > { %v2304_v33 = vadd.s32 536870912, %v2303_v42  ;;  %v2062_v23 = vshrl.u32 %v10876_v44, %v2050_v0  ;;  %v1703_v1 = vxor.u32 2147483648, %v8419_v56  ;;  %v1935_v21 = vshrl.u32 %v1934_v34, 23 }
 0x17b   : > { %v2054_v28 = vor.u32 %v2053_v26, %v2052_v15  ;;  %v2057_v6 = vor.u32 %v2056_v52, %v2055_v41  ;;  %v2060_v20 = vor.u32 %v2059_v4, %v2058_v48  ;;  %vm1621_vm6 = vcmp.lt.s32.totalorder %v10913_v3, 0 }
 0x17c   : > { %v8443_v53 = vshrl.u32 %v2304_v33, 30  ;;  %v8449_v29 = vsel %vm8406_vm4, %v10907_v62, %v1912_v47  ;;  %v2051_v40 = vshrl.u32 %v10838_v50, %v2050_v0  ;;  %v2064_v55 = vshll.u32 %v10876_v44, %v2049_v63 }
 0x17d   : > { %1109 = vperm.xlu1 %6943, %v7100_v12   ;;  %v2063_v12 = vor.u32 %v2062_v23, %v2061_v13  ;;  %v2065_v15 = vshrl.u32 %v10878_v36, %v2050_v0  ;;  %vm2067_vm13 = vcmp.lt.s32.totalorder %v2048_v16, 1  ;;  %vm2069_vm5 = vcmp.lt.s32.totalorder %v2048_v16, 3  ;;  %v8460_v0 = vpop.permute.xlu1 %891 }
 0x17e   : > { %v2306_v10 = vshll.u32 %v8443_v53, 30  ;;  %vm2070_vm10 = vcmp.lt.s32.totalorder %v2048_v16, 4  ;;  %v2075_v41 = vsel %vm2067_vm13, %v2054_v28, %v2057_v6  ;;  %vm2068_vm3 = vcmp.lt.s32.totalorder %v2048_v16, 2  ;;  %10914 = vst [vmem:[#allocation53_spill] sm:$0xff] %v8460_v0 }
 0x17f   : > { %v2066_v13 = vor.u32 %v2065_v15, %v2064_v55  ;;  %v2072_v34 = vsel %vm2070_vm10, %v2060_v20, 2102212464  ;;  %v2076_v26 = vsel %vm2070_vm10, %v2063_v12, 920167782  ;;  %v2071_v48 = vsel %vm2067_vm13, %v2051_v40, %v2054_v28 }
 0x180   : > { %v8457_v52 = vsub.s32 %v2303_v42, %v2306_v10  ;;  %v2077_v63 = vsel %vm2069_vm5, %v2060_v20, %v2076_v26  ;;  %v2073_v47 = vsel %vm2069_vm5, %v2057_v6, %v2072_v34  ;;  %v2079_v4 = vsel %vm2067_vm13, %v2057_v6, %v2060_v20  ;;  %v10917_v20 = vld [vmem:[#allocation6_spill] sm:$0xff] }
 0x181   : > { %6944 = vset.pattern.permute.xlu1 %v10789_v58  ;;  %v2078_v33 = vsel %vm2068_vm3, %v2075_v41, %v2077_v63  ;;  %v2080_v23 = vsel %vm2070_vm10, %v2066_v13, 1326507024  ;;  %v10915_v28 = vsub.s32 4, %v8280_v43  ;;  %v10916_v6 = vsel %vm7662_vm15, %v10912_v19, %v8304_v32  ;;  %v8507_v16 = vpop.permute.xlu1 %899 }
 0x182   : > { %1188 = vperm.xlu1 %6944, %v8361_v59   ;;  %v2309_v59 = vsub.s32 0, %v8457_v52  ;;  %v2081_v55 = vsel %vm2069_vm5, %v2063_v12, %v2080_v23  ;;  %v8467_v15 = vmul.u32.u64.low %v8441_v39, %v2078_v33  ;;  %v8468_v42 = vmul.u32.u64.high %v8441_v39, %v2078_v33, %v8467_v15 }
 0x183   : > { %v1914_v40 = vsel %vm1829_vm12, %v10915_v28, %v8280_v43  ;;  %v1308_v12 = vsel %vm7675_vm0, %v10917_v20, %v10916_v6  ;;  %v2082_v10 = vsel %vm2068_vm3, %v2079_v4, %v2081_v55  ;;  %v6367_v13 = vadd.s32 4294967169, %v1935_v21  ;;  %v10918_v43 = vld [vmem:[#allocation18_spill] sm:$0xff] }
 0x184   : > { %v8488_v34 = vmul.u32.u64.low %v8441_v39, %v2082_v10  ;;  %v8489_v41 = vmul.u32.u64.high %v8441_v39, %v2082_v10, %v8488_v34  ;;  %v1395_v26 = vsel %vm7687_vm1, %v10918_v43, %v1308_v12  ;;  %6971 = vcosq.f32 %v8449_v29  ;;  %v10925_v43 = vld [vmem:[#allocation23_spill] sm:$0xff] }
 0x185   : > { %v2074_v32 = vsel %vm2068_vm3, %v2071_v48, %v2073_v47  ;;  %v1941_v19 = vadd.s32 1, %v6367_v13  ;;  %v1482_v21 = vsel %vm7691_vm2, %v8358_v31, %v1395_v26  ;;  %v1704_v63 = vsel %vm1621_vm6, %v1703_v1, %v8419_v56  ;;  %v7101_v1 = vld [vmem:[%s7237_s0 + $0x40] sm:$0xff]  ;;  %v7102_v56 = vld [vmem:[%s7237_s0 + $0x48] sm:$0xff] }
 0x186   : > { %1192 = vperm.xlu1 %6944, %v10906_v9   ;;  %v6380_v9 = vmin.u32 %v2309_v59, %v8457_v52  ;;  %v1916_v33 = vsel %vm8406_vm4, 0, %v1914_v40  ;;  %v2093_v4 = vadd.s32 1, %v8468_v42  ;;  %v10919_v23 = vand.u32 2147483647, %v8400_v46  ;;  %v8517_v47 = vld [vmem:[%s7271_s23 + $0x60] sm:$0xff] }
 0x187   : > { %vm1942_vm12 = vcmp.gt.s32.totalorder %v1941_v19, 0  ;;  %v5102_v2 = vpack.c.bf16 %v7102_v56, %v7101_v1  ;;  %v2090_v55 = vmul.u32 %v8441_v39, %v2074_v32  ;;  %vm2092_vm4 = vc.u32 %v8489_v41, %v8467_v15  ;;  %v8542_v32 = vld [vmem:[%s7271_s23 + $0x70] sm:$0xff] }
 0x188   : > { %v1938_v59 = vand.u32 8388607, %v10919_v23  ;;  %v2311_v48 = vclz %v6380_v9  ;;  %v8524_v28 = vmul.f32 %v8396_v14, %v1482_v21  ;;  %v10921_v40 = vand.u32 2147483647, %v10913_v3 }
 0x189   : > { %v1705_v20 = vsub.s32 4, %v8146_v37  ;;  %v2094_v12 = vsel %vm2092_vm4, %v2093_v4, %v8468_v42  ;;  %vm10924_vm13 = vcmask 23552   ;;  %6973 = vsinq.f32 %v8449_v29  ;;  %v8560_v4 = vpop.permute.xlu1 %903 }
 0x18a   : > { %6945 = vset.pattern.permute.xlu1 %v10848_v25  ;;  %v1943_v25 = vsel %vm1942_vm12, %v1941_v19, 0  ;;  %10920 = vst [vmem:[#allocation50_spill] sm:$0xff] %v8524_v28  ;;  %vm8528_vm8 = vcmp.le.f32.partialorder %v10921_v40, 0.7853982  ;;  %6695 = vmatprep.mubr.msk.bf16.mxu0 %vm10924_vm13, %v5102_v2  ;;  %v1920_v14 = vadd.s32 3, %v1916_v33  ;;  %v2095_v13 = vadd.s32 %v2094_v12, %v2090_v55  ;;  %v8585_v40 = vld [vmem:[%s7271_s23 + $0x78] sm:$0xff] }
 0x18b   : > { %1284 = vperm.xlu1 %6945, %v8517_v47   ;;  %v1945_v10 = vand.u32 31, %v1943_v25  ;;  %v1707_v39 = vsel %vm8528_vm8, %v10913_v3, %v1704_v63  ;;  %vm10723_vm5 = vcmp.lt.s32.totalorder %v8309_v51, 4  ;;  %v6381_v9 = vadd.s32 4294967294, %v2311_v48 }
 0x18c   : > { %v1939_v34 = vor.u32 8388608, %v1938_v59  ;;  %v8548_v42 = vsel %vm10723_vm5, %v8323_v49, 920167782  ;;  %v10926_v29 = vor.u32 %v8299_v54, %v8321_v27  ;;  %v2142_v63 = vand.u32 2139095040, %v8524_v28 }
 0x18d   : > { %v8557_v21 = vsub.s32 32, %v1945_v10  ;;  %v8565_v23 = vsel %vm1621_vm6, %v1705_v20, %v8146_v37  ;;  %6975 = vcosq.f32 %v1707_v39  ;;  %v2096_v59 = vadd.s32 536870912, %v2095_v13 }
 0x18e   : > { %v8555_v19 = vsel %vm10723_vm5, %v10926_v29, 1326507024  ;;  %6977 = vsinq.f32 %v1707_v39  ;;  %v8571_v27 = vand.u32 3, %v1920_v14  ;;  %v8573_v1 = vand.u32 3, %v1916_v33  ;;  %v10929_v39 = vld [vmem:[#allocation15_spill] sm:$0xff] }
 0x18f   : > { %1294 = vperm.xlu1 %6945, %v8542_v32   ;;  %v8577_v56 = vadd.s32 %v8379_v57, %v8391_v45  ;;  %vm6382_vm10 = vcmp.lt.s32.totalorder %v6381_v9, 0  ;;  %v8579_v2 = vshrl.u32 %v2096_v59, 30  ;;  %v8581_v37 = vshll.u32 %v1939_v34, 8  ;;  %v8608_v57 = vpop.permute.xlu1 %992 }
 0x190   : > { %v1948_v20 = vshll.u32 %v10838_v50, %v1945_v10  ;;  %v1949_v33 = vshrl.u32 %v10904_v30, %v8557_v21  ;;  %v2143_v12 = vshrl.u32 %v2142_v63, 23  ;;  %v8596_v14 = vshrl.u32 %v1943_v25, 5  ;;  %10930 = vst [vmem:[#allocation37_spill] sm:$0xff] %v8608_v57 }
 0x191   : > { %10928 = vst [vmem:[#allocation41_spill] sm:$0xff] %v8579_v2  ;;  %v2098_v45 = vshll.u32 %v8579_v2, 30  ;;  %v1951_v34 = vshll.u32 %v10904_v30, %v1945_v10  ;;  %v1952_v29 = vshrl.u32 %v10905_v24, %v8557_v21  ;;  %v8601_v59 = vpop.eup %6971  ;;  %v8603_v54 = vsel %vm6382_vm10, 0, %v6381_v9 }
 0x192   : > { %v1950_v63 = vor.u32 %v1949_v33, %v1948_v20  ;;  %v1954_v26 = vshll.u32 %v10905_v24, %v1945_v10  ;;  %v1955_v31 = vshrl.u32 %v10875_v38, %v8557_v21  ;;  %v1957_v18 = vshll.u32 %v10875_v38, %v1945_v10 }
 0x193   : > { %1299 = vperm.xlu1 %6945, %v8585_v40   ;;  %v8610_v25 = vsub.s32 %v2095_v13, %v2098_v45  ;;  %v1953_v55 = vor.u32 %v1952_v29, %v1951_v34  ;;  %v1958_v8 = vshrl.u32 %v10876_v44, %v8557_v21  ;;  %v1960_v20 = vshll.u32 %v10876_v44, %v1945_v10  ;;  %v7106_v13 = vld [vmem:[%s7271_s23 + $0x68] sm:$0xff] }
 0x194   : > { %v1956_v9 = vor.u32 %v1955_v31, %v1954_v26  ;;  %v1961_v33 = vshrl.u32 %v10878_v36, %v8557_v21  ;;  %v10931_v22 = vand.u32 2147483647, %v8524_v28  ;;  %vm1926_vm6 = vcmp.eq.s32.totalorder %v8571_v27, 2 }
 0x195   : > { %v1927_v45 = vxor.u32 2147483648, %v8601_v59  ;;  %v8628_v34 = vadd.s32 %v8467_v15, %v8489_v41  ;;  %v1959_v31 = vor.u32 %v1958_v8, %v1957_v18  ;;  %v2315_v10 = vsub.s32 32, %v8603_v54 }
 0x196   : > { %v8621_v3 = vand.u32 8388607, %v10931_v22  ;;  %v1962_v26 = vor.u32 %v1961_v33, %v1960_v20  ;;  %vm1963_vm3 = vcmp.lt.s32.totalorder %v8596_v14, 1  ;;  %v6375_v22 = vadd.s32 4294967169, %v2143_v12  ;;  %v8633_v29 = vpop.eup %6973  ;;  %v8645_v20 = vpop.permute.xlu1 %997 }
 0x197   : > { %6947 = vset.pattern.permute.xlu1 %v10784_v60  ;;  %v2101_v60 = vsub.s32 0, %v8610_v25  ;;  %vm1923_vm12 = vcmp.eq.s32.totalorder %v8571_v27, 0  ;;  %vm3586_vm4 = vcmp.eq.s32.totalorder %v8573_v1, 2  ;;  %vm1966_vm13 = vcmp.lt.s32.totalorder %v8596_v14, 4  ;;  %10932 = vst [vmem:[#allocation29_spill] sm:$0xff] %v8645_v20 }
 0x198   : > { %1378 = vperm.xlu1 %6947, %v7106_v13   ;;  %v2319_v13 = vsub.s32 4294967266, %v8603_v54  ;;  %v1971_v8 = vsel %vm1963_vm3, %v1950_v63, %v1953_v55  ;;  %vm1965_vm10 = vcmp.lt.s32.totalorder %v8596_v14, 3  ;;  %v1972_v18 = vsel %vm1966_vm13, %v1959_v31, 920167782 }
 0x199   : > { %v6372_v15 = vmin.u32 %v2101_v60, %v8610_v25  ;;  %v1975_v41 = vsel %vm1963_vm3, %v1953_v55, %v1956_v9  ;;  %v1976_v12 = vsel %vm1966_vm13, %v1962_v26, 1326507024  ;;  %vm1964_vm5 = vcmp.lt.s32.totalorder %v8596_v14, 2 }
 0x19a   : > { %v1968_v60 = vsel %vm1966_vm13, %v1956_v9, 2102212464  ;;  %v1973_v2 = vsel %vm1965_vm10, %v1956_v9, %v1972_v18  ;;  %v8651_v57 = vpop.eup %6975  ;;  %v1947_v26 = vshrl.u32 %v10838_v50, %v8557_v21  ;;  %v1977_v48 = vsel %vm1965_vm10, %v1959_v31, %v1976_v12 }
 0x19b   : > { %v2103_v33 = vclz %v6372_v15  ;;  %10933 = vst [vmem:[#allocation12_spill] sm:$0xff] %v8651_v57  ;;  %v1974_v0 = vsel %vm1964_vm5, %v1971_v8, %v1973_v2  ;;  %v8660_v15 = vpop.eup %6977  ;;  %v2317_v11 = vshrl.u32 %v8577_v56, %v2315_v10  ;;  %v1978_v9 = vsel %vm1964_vm5, %v1975_v41, %v1977_v48  ;;  %v675_v57 = vld [vmem:[%s7854_s30 + $0x40] sm:$0xff] }
 0x19c   : > { %1382 = vperm.xlu1 %6947, %v8542_v32   ;;  %10934 = vst [vmem:[#allocation49_spill] sm:$0xff] %v8660_v15  ;;  %v2149_v18 = vadd.s32 1, %v6375_v22  ;;  %v1967_v21 = vsel %vm1963_vm3, %v1947_v26, %v1950_v63  ;;  %v1969_v2 = vsel %vm1965_vm10, %v1953_v55, %v1968_v60  ;;  %v2320_v56 = vadd.s32 127, %v2319_v13  ;;  %v7108_v60 = vld [vmem:[%s7237_s0 + $0x58] sm:$0xff] }
 0x19d   : > { %v6373_v20 = vadd.s32 4294967294, %v2103_v33  ;;  %v8672_v8 = vmul.u32.u64.low %v8581_v37, %v1978_v9  ;;  %v8673_v31 = vmul.u32.u64.high %v8581_v37, %v1978_v9, %v8672_v8  ;;  %v8685_v63 = vsel %vm1926_vm6, %v1927_v45, %v8633_v29  ;;  %v7107_v33 = vld [vmem:[%s7237_s0 + $0x50] sm:$0xff] }
 0x19e   : > { %v8677_v10 = vmul.u32.u64.low %v8581_v37, %v1974_v0  ;;  %v8678_v48 = vmul.u32.u64.high %v8581_v37, %v1974_v0, %v8677_v10  ;;  %vm2150_vm3 = vcmp.gt.s32.totalorder %v2149_v18, 0  ;;  %v5251_v22 = vpack.c.bf16 %v676_v7, %v675_v57 }
 0x19f   : > { %vm6374_vm13 = vcmp.lt.s32.totalorder %v6373_v20, 0  ;;  %vm3583_vm10 = vcmp.eq.s32.totalorder %v8573_v1, 0  ;;  %v2316_v0 = vshll.u32 %v8457_v52, %v8603_v54  ;;  %v1970_v13 = vsel %vm1964_vm5, %v1967_v21, %v1969_v2 }
 0x1a0   : > { %6949 = vset.pattern.permute.xlu1 %v10789_v58  ;;  %v8687_v55 = vsel %vm6374_vm13, 0, %v6373_v20  ;;  %v8689_v58 = vpop.permute.xlu1 %1081  ;;  %v2151_v41 = vsel %vm2150_vm3, %v2149_v18, 0  ;;  %v10936_v12 = vxor.u32 2147483648, %v8633_v29  ;;  %v8707_v57 = vsel %vm3586_vm4, %v1927_v45, %v8633_v29 }
 0x1a1   : > { %1461 = vperm.xlu1 %6949, %v8517_v47   ;;  %10935 = vst [vmem:[#allocation42_spill] sm:$0xff] %v8689_v58  ;;  %v2111_v47 = vsub.s32 4294967266, %v8687_v55  ;;  %vm1988_vm6 = vc.u32 %v8673_v31, %v8677_v10  ;;  %v2153_v52 = vand.u32 31, %v2151_v41  ;;  %vm10937_vm13 = vcmask 130048  }
 0x1a2   : > { %v8702_v7 = vsel %vm1923_vm12, %v8601_v59, %v10936_v12  ;;  %6713 = vmatprep.mubr.msk.bf16.mxu1 %vm10937_vm13, %v5251_v22  ;;  %v8712_v54 = vor.u32 %v2317_v11, %v2316_v0  ;;  %v2321_v14 = vshll.u32 %v2320_v56, 23  ;;  %v1989_v20 = vadd.s32 1, %v8678_v48 }
 0x1a3   : > { %v5103_v26 = vpack.c.bf16 %v7108_v60, %v7107_v33  ;;  %v2112_v9 = vadd.s32 127, %v2111_v47  ;;  %v1986_v45 = vmul.u32 %v8581_v37, %v1970_v13  ;;  %v2147_v18 = vor.u32 8388608, %v8621_v3 }
 0x1a4   : > { %v2154_v21 = vsub.s32 32, %v2153_v52  ;;  %v2107_v2 = vsub.s32 32, %v8687_v55  ;;  %v1990_v8 = vsel %vm1988_vm6, %v1989_v20, %v8678_v48  ;;  %v8722_v11 = vshrl.u32 %v2151_v41, 5  ;;  %v8729_v47 = vpop.permute.xlu1 %1089 }
 0x1a5   : > { %1469 = vperm.xlu1 %6949, %v8542_v32   ;;  %v2156_v56 = vshll.u32 %v10838_v50, %v2153_v52  ;;  %vm10938_vm5 = vcmask 23552   ;;  %v1991_v22 = vadd.s32 %v1990_v8, %v1986_v45  ;;  %v2159_v32 = vshll.u32 %v10904_v30, %v2153_v52  ;;  %10939 = vst [vmem:[#allocation13_spill] sm:$0xff] %v8729_v47 }
 0x1a6   : > { %6696 = vmatmul.mubr.msk.bf16.gmra.mxu0 %vm10938_vm5, %v5103_v26  ;;  %v2157_v0 = vshrl.u32 %v10904_v30, %v2154_v21  ;;  %v2160_v37 = vshrl.u32 %v10905_v24, %v2154_v21  ;;  %v2162_v3 = vshll.u32 %v10905_v24, %v2153_v52  ;;  %v2163_v13 = vshrl.u32 %v10875_v38, %v2154_v21 }
 0x1a7   : > { %v2165_v48 = vshll.u32 %v10875_v38, %v2153_v52  ;;  %v2166_v41 = vshrl.u32 %v10876_v44, %v2154_v21  ;;  %v2113_v12 = vshll.u32 %v2112_v9, 23  ;;  %v1992_v20 = vadd.s32 536870912, %v1991_v22 }
 0x1a8   : > { %v2158_v33 = vor.u32 %v2157_v0, %v2156_v56  ;;  %v2161_v60 = vor.u32 %v2160_v37, %v2159_v32  ;;  %v2164_v26 = vor.u32 %v2163_v13, %v2162_v3  ;;  %v2168_v8 = vshll.u32 %v10876_v44, %v2153_v52 }
 0x1a9   : > { %1473 = vperm.xlu1 %6949, %v8585_v40   ;;  %v2167_v45 = vor.u32 %v2166_v41, %v2165_v48  ;;  %v2169_v58 = vshrl.u32 %v10878_v36, %v2154_v21  ;;  %v10940_v47 = vxor.u32 2147483648, %v8633_v29  ;;  %v8745_v28 = vor.u32 4788187, %v2321_v14  ;;  %v6951_v29 = vld [vmem:[%s10638_s10 + $0x18] ss:$0 sps:$4 sm:$0x77]  }
 0x1aa   : > { %v8748_v9 = vshrl.u32 %v1992_v20, 30  ;;  %v2109_v56 = vshrl.u32 %v8628_v34, %v2107_v2  ;;  %vm2171_vm12 = vcmp.lt.s32.totalorder %v8722_v11, 1  ;;  %v8752_v52 = vshll.u32 %v2147_v18, 8 }
 0x1ab   : > { %v8743_v15 = vsel %vm3583_vm10, %v8601_v59, %v10940_v47  ;;  %v2170_v0 = vor.u32 %v2169_v58, %v2168_v8  ;;  %v6952_v59 = vld [vmem:[%s10639_s11 + $0x18] ss:$0 sps:$4 sm:$0x77]   ;;  %v8760_v14 = vor.u32 4788187, %v2113_v12  ;;  %vm2174_vm4 = vcmp.lt.s32.totalorder %v8722_v11, 4  ;;  %v8766_v58 = vpop.permute.xlu1 %1093 }
 0x1ac   : > { %v1994_v32 = vshll.u32 %v8748_v9, 30  ;;  %v2179_v34 = vsel %vm2171_vm12, %v2158_v33, %v2161_v60  ;;  %v2155_v18 = vshrl.u32 %v10838_v50, %v2154_v21  ;;  %vm2173_vm3 = vcmp.lt.s32.totalorder %v8722_v11, 3 }
 0x1ad   : > { %v2176_v2 = vsel %vm2174_vm4, %v2164_v26, 2102212464  ;;  %v2180_v37 = vsel %vm2174_vm4, %v2167_v45, 920167782  ;;  %vm2172_vm10 = vcmp.lt.s32.totalorder %v8722_v11, 2  ;;  %v2183_v13 = vsel %vm2171_vm12, %v2161_v60, %v2164_v26  ;;  %v7109_v11 = vld [vmem:[%s7237_s0 + $0x60] sm:$0xff] }
 0x1ae   : > { %v8770_v47 = vsub.s32 %v1991_v22, %v1994_v32  ;;  %v2181_v3 = vsel %vm2173_vm3, %v2164_v26, %v2180_v37  ;;  %v2108_v48 = vshll.u32 %v8610_v25, %v8687_v55  ;;  %v2175_v21 = vsel %vm2171_vm12, %v2155_v18, %v2158_v33  ;;  %v677_v32 = vld [vmem:[%s7854_s30 + $0x50] sm:$0xff]  ;;  %v678_v37 = vld [vmem:[%s7854_s30 + $0x58] sm:$0xff] }
 0x1af   : > { %v2182_v41 = vsel %vm2172_vm10, %v2179_v34, %v2181_v3  ;;  %v2184_v12 = vsel %vm2174_vm4, %v2170_v0, 1326507024  ;;  %v2177_v20 = vsel %vm2173_vm3, %v2161_v60, %v2176_v2  ;;  %vm5462_vm6 = vcmask 1042432   ;;  %v6953_v33 = vld [vmem:[%s10638_s10 + $0x10] sm:$0xff]   ;;  %v679_v60 = vld [vmem:[%s7854_s30 + $0x60] sm:$0xff]  ;;  %v8807_v3 = vpop.permute.xlu1 %1172  ;;  %vm10947_vm4 = vmmov %vm10937_vm13 }
 0x1b0   : > { %v1997_v22 = vsub.s32 0, %v8770_v47  ;;  %v2185_v8 = vsel %vm2173_vm3, %v2167_v45, %v2184_v12  ;;  %v2110_v26 = vor.u32 %v2109_v56, %v2108_v48  ;;  %6817 = vmatprep.subr.msk.bf16.mxu0 %vm5462_vm6, %v6951_v29  ;;  %6818 = vmatprep.subr.msk.bf16.mxu1 %vm5462_vm6, %v6952_v59  ;;  %v680_v45 = vld [vmem:[%s7854_s30 + $0x68] sm:$0xff]  ;;  %v2115_v56 = vand.u32 2147483647, %v8760_v14  ;;  %v6954_v2 = vld [vmem:[%s10639_s11 + $0x10] sm:$0xff]  }
 0x1b1   : > { %v2186_v25 = vsel %vm2172_vm10, %v2183_v13, %v2185_v8  ;;  %v8787_v55 = vmul.u32.u64.low %v8752_v52, %v2182_v41  ;;  %v8788_v40 = vmul.u32.u64.high %v8752_v52, %v2182_v41, %v8787_v55  ;;  %v2178_v13 = vsel %vm2172_vm10, %v2175_v21, %v2177_v20  ;;  %v7110_v21 = vld [vmem:[%s7237_s0 + $0x68] sm:$0xff] }
 0x1b2   : > { %v6368_v0 = vmin.u32 %v1997_v22, %v8770_v47  ;;  %v8801_v34 = vmul.u32.u64.low %v8752_v52, %v2186_v25  ;;  %v8802_v18 = vmul.u32.u64.high %v8752_v52, %v2186_v25, %v8801_v34  ;;  %v5252_v48 = vpack.c.bf16 %v678_v37, %v677_v32  ;;  %v682_v37 = vld [vmem:[%s7854_s30 + $0x78] sm:$0xff] }
 0x1b3   : > { %v5464_v14 = vsel %vm5462_vm6, %v6951_v29, 0  ;;  %v5640_v41 = vsel %vm5462_vm6, %v6952_v59, 0  ;;  %v10941_v22 = vsel %vm7606_vm7, %v8372_v35, %v10929_v39  ;;  %v5104_v20 = vpack.c.bf16 %v7110_v21, %v7109_v11  ;;  %v681_v29 = vld [vmem:[%s7854_s30 + $0x70] sm:$0xff]  ;;  %v10943_v34 = vld [vmem:[#allocation31_spill] sm:$0xff]  ;;  %v8863_v11 = vpop.permute.xlu1 %1176 }
 0x1b4   : > { %v1999_v12 = vclz %v6368_v0  ;;  %6722 = vmatpush3.bf16.msra.mxu0 %v5464_v14  ;;  %6746 = vmatpush3.bf16.msra.mxu1 %v5640_v41  ;;  %v8821_v25 = vsel %vm7619_vm9, %v8507_v16, %v10941_v22  ;;  %v5253_v32 = vpack.c.bf16 %v680_v45, %v679_v60  ;;  %v2117_v59 = vcvt.s32.f32 %v2110_v26  ;;  %v10944_v14 = vld [vmem:[#allocation2_spill] sm:$0xff]  ;;  %v6955_v16 = vld [vmem:[%s10638_s10 + $0x8] sm:$0xff]   ;;  %10951 = vst [vmem:[#allocation8_spill] sm:$0xff] %v8863_v11 }
 0x1b5   : > { %v2197_v0 = vadd.s32 1, %v8788_v40  ;;  %6714 = vmatmul.mubr.msk.bf16.gmra.mxu1 %vm10937_vm13, %v5252_v48  ;;  %6723 = vmatprep.subr.bf16.mxu0 %v6953_v33  ;;  %v5105_v35 = vpack.c.bf16 %v10944_v14, %v10943_v34  ;;  %v10945_v39 = vsel %vm7606_vm7, %v8415_v61, %v8438_v17  ;;  %v6956_v60 = vld [vmem:[%s10639_s11 + $0x8] sm:$0xff]   ;;  %v1987_v45 = vadd.s32 %v8677_v10, %v8673_v31 }
 0x1b6   : > { %v8842_v26 = vsel %vm7619_vm9, %v8560_v4, %v10945_v39  ;;  %v6369_v48 = vadd.s32 4294967294, %v1999_v12  ;;  %v2194_v41 = vmul.u32 %v8752_v52, %v2178_v13  ;;  %vm2196_vm5 = vc.u32 %v8802_v18, %v8787_v55  ;;  %6747 = vmatprep.subr.bf16.mxu1 %v6954_v2  ;;  %6717 = vmatprep.mubr.msk.bf16.mxu1 %vm10947_vm4, %v5253_v32  ;;  %v10950_v12 = vld [vmem:[#allocation47_spill] sm:$0xff] }
 0x1b7   : > { %vm10946_vm12 = vcmask 23552   ;;  %v8854_v17 = vmul.f32 %v2117_v59, %v2115_v56  ;;  %v2198_v4 = vsel %vm2196_vm5, %v2197_v0, %v8788_v40  ;;  %v5254_v31 = vpack.c.bf16 %v682_v37, %v681_v29  ;;  %v6957_v40 = vld [vmem:[%s10638_s10] sm:$0xff]   ;;  %v10952_v21 = vld [vmem:[#allocation3_spill] sm:$0xff] }
 0x1b8   : > { %6699 = vmatprep.mubr.msk.bf16.mxu0 %vm10946_vm12, %v5104_v20  ;;  %vm10948_vm3 = vmmov %vm10946_vm12  ;;  %vm6370_vm10 = vcmp.lt.s32.totalorder %v6369_v48, 0  ;;  %v2199_v10 = vadd.s32 %v2198_v4, %v2194_v41  ;;  %6724 = vmatpush3.bf16.msra.mxu0 %v6953_v33  ;;  %v10949_v52 = vand.u32 2147483647, %v10925_v43  ;;  %v1533_v22 = vshrl.u32 %v10904_v30, %v10950_v12  ;;  %v6958_v0 = vld [vmem:[%s10639_s11] sm:$0xff]  }
 0x1b9   : > { %6700 = vmatmul.mubr.msk.bf16.gmra.mxu0 %vm10948_vm3, %v5105_v35  ;;  %6748 = vmatpush3.bf16.msra.mxu1 %v6954_v2  ;;  %v2002_v56 = vsel %vm6370_vm10, 0, %v6369_v48  ;;  %v1532_v20 = vshll.u32 %v10838_v50, %v10952_v21  ;;  %v1535_v33 = vshll.u32 %v10904_v30, %v10952_v21  ;;  %v1536_v2 = vshrl.u32 %v10905_v24, %v10950_v12  ;;  %v10953_v48 = vld [vmem:[#allocation39_spill] sm:$0xff]  ;;  %vm10954_vm12 = vmmov %vm10947_vm4 }
 0x1ba   : > { %v1522_v13 = vand.u32 8388607, %v10949_v52  ;;  %6725 = vmatprep.subr.bf16.mxu0 %v6955_v16  ;;  %6749 = vmatprep.subr.bf16.mxu1 %v6956_v60  ;;  %v2003_v32 = vsub.s32 32, %v2002_v56  ;;  %v2007_v29 = vsub.s32 4294967266, %v2002_v56  ;;  %v2200_v37 = vadd.s32 536870912, %v2199_v10 }
 0x1bb   : > { %v1531_v59 = vshrl.u32 %v10838_v50, %v10950_v12  ;;  %vm1922_vm6 = vcmp.lt.s32.totalorder %v8571_v27, 2  ;;  %vm3582_vm13 = vcmp.lt.s32.totalorder %v8573_v1, 2  ;;  %v1534_v34 = vor.u32 %v1533_v22, %v1532_v20 }
 0x1bc   : > { %v1537_v14 = vor.u32 %v1536_v2, %v1535_v33  ;;  %v1538_v35 = vshll.u32 %v10905_v24, %v10952_v21  ;;  %v1539_v39 = vshrl.u32 %v10875_v38, %v10950_v12  ;;  %v2004_v41 = vshll.u32 %v8770_v47, %v2002_v56  ;;  %6726 = vmatpush3.bf16.msra.mxu0 %v6955_v16  ;;  %v8896_v16 = vpop.permute.xlu1 %1264 }
 0x1bd   : > { %v2005_v4 = vshrl.u32 %v1987_v45, %v2003_v32  ;;  %v2008_v52 = vadd.s32 127, %v2007_v29  ;;  %v8887_v61 = vshrl.u32 %v2200_v37, 30  ;;  %6750 = vmatpush3.bf16.msra.mxu1 %v6956_v60  ;;  %6727 = vmatprep.subr.bf16.mxu0 %v6957_v40  ;;  %v1523_v22 = vor.u32 8388608, %v1522_v13 }
 0x1be   : > { %6718 = vmatmul.mubr.msk.bf16.gmra.mxu1 %vm10954_vm12, %v5254_v31  ;;  %v1540_v20 = vor.u32 %v1539_v39, %v1538_v35  ;;  %vm1547_vm4 = vcmp.lt.s32.totalorder %v8309_v51, 1  ;;  %vm1549_vm3 = vcmp.lt.s32.totalorder %v8309_v51, 3  ;;  %6751 = vmatprep.subr.bf16.mxu1 %v6958_v0  ;;  %v10955_v60 = vand.u32 2147483647, %v10953_v48 }
 0x1bf   : > { %v2006_v12 = vor.u32 %v2005_v4, %v2004_v41  ;;  %v2009_v21 = vshll.u32 %v2008_v52, 23  ;;  %v2202_v47 = vshll.u32 %v8887_v61, 30  ;;  %v1555_v45 = vsel %vm1547_vm4, %v1534_v34, %v1537_v14  ;;  %v896_v52 = vpop.permute.xlu0 %895 }
 0x1c0   : > { %vm8900_vm12 = vcmp.le.f32.partialorder %v10955_v60, 0.7853982  ;;  %vm10958_vm5 = vcmp.lt.s32.totalorder %v8309_v51, 4  ;;  %v1557_v56 = vsel %vm1549_vm3, %v1540_v20, %v8548_v42  ;;  %v1559_v33 = vsel %vm1547_vm4, %v1537_v14, %v1540_v20  ;;  %6728 = vmatpush3.bf16.msra.mxu0 %v6957_v40 }
 0x1c1   : > { %v1552_v13 = vsel %vm10958_vm5, %v1540_v20, 2102212464  ;;  %v1561_v2 = vsel %vm1549_vm3, %v8323_v49, %v8555_v19  ;;  %v2119_v32 = vxor.u32 2147483648, %v8854_v17  ;;  %v2010_v29 = vor.u32 4788187, %v2009_v21  ;;  %6752 = vmatpush3.bf16.msra.mxu1 %v6958_v0 }
 0x1c2   : > { %v8916_v37 = vsub.s32 %v2199_v10, %v2202_v47  ;;  %vm1548_vm10 = vcmp.lt.s32.totalorder %v8309_v51, 2  ;;  %v1551_v42 = vsel %vm1547_vm4, %v1531_v59, %v1534_v34  ;;  %v1563_v41 = vshll.u32 %v1523_v22, 8  ;;  %v8945_v47 = vpop.permute.xlu1 %1274 }
 0x1c3   : > { %v1558_v35 = vsel %vm1548_vm10, %v1555_v45, %v1557_v56  ;;  %v1562_v39 = vsel %vm1548_vm10, %v1559_v33, %v1561_v2  ;;  %v2011_v49 = vand.u32 2147483647, %v2010_v29  ;;  %v2013_v19 = vcvt.s32.f32 %v2006_v12  ;;  %v10959_v12 = vld [vmem:[#allocation45_spill] sm:$0xff]  ;;  %10960 = vst [vmem:[#allocation33_spill] sm:$0xff] %v8945_v47 }
 0x1c4   : > { %v2205_v4 = vsub.s32 0, %v8916_v37  ;;  %v1553_v10 = vsel %vm1549_vm3, %v1537_v14, %v1552_v13  ;;  %v8928_v40 = vmul.u32.u64.low %v1563_v41, %v1562_v39  ;;  %v8929_v0 = vmul.u32.u64.high %v1563_v41, %v1562_v39, %v8928_v40 }
 0x1c5   : > { %v8931_v20 = vmul.u32.u64.low %v1563_v41, %v1558_v35  ;;  %v8932_v59 = vmul.u32.u64.high %v1563_v41, %v1558_v35, %v8931_v20  ;;  %v1929_v34 = vsel %vm1922_vm6, %v8702_v7, %v8685_v63  ;;  %v3589_v22 = vsel %vm3582_vm13, %v8743_v15, %v8707_v57  ;;  %v10968_v57 = vld [vmem:[#allocation5_spill] sm:$0xff] }
 0x1c6   : > { %vm10733_vm5 = vcmp.lt.s32.totalorder %v10959_v12, 0  ;;  %v2014_v14 = vmul.f32 %v2013_v19, %v2011_v49  ;;  %v6376_v21 = vmin.u32 %v2205_v4, %v8916_v37  ;;  %v10961_v45 = vand.u32 2147483647, %v8745_v28  ;;  %v10967_v28 = vld [vmem:[#allocation4_spill] sm:$0xff]  ;;  %v10972_v4 = vld [vmem:[#allocation7_spill] sm:$0xff] }
 0x1c7   : > { %v10962_v60 = vcvt.s32.f32 %v8712_v54  ;;  %vm10963_vm6 = vcmp.lt.s32.totalorder %v10953_v48, 0  ;;  %vm1933_vm4 = vcmp.lt.s32.totalorder %v8400_v46, 0  ;;  %v1554_v1 = vsel %vm1548_vm10, %v1551_v42, %v1553_v10 }
 0x1c8   : > { %v2120_v27 = vsel %vm10963_vm6, %v2119_v32, %v8854_v17  ;;  %v10964_v15 = vand.u32 2147483647, %v8400_v46  ;;  %v2015_v7 = vxor.u32 2147483648, %v2014_v14  ;;  %v10969_v54 = vsel %vm7606_vm7, %v10967_v28, %v10968_v57  ;;  %v10978_v57 = vld [vmem:[#allocation29_spill] sm:$0xff] }
 0x1c9   : > { %v2326_v13 = vmul.f32 %v10962_v60, %v10961_v45  ;;  %v8970_v17 = vsel %vm7619_vm9, %v896_v52, %v10969_v54  ;;  %v2207_v56 = vclz %v6376_v21  ;;  %vm10970_vm3 = vweird.f32 %v10907_v62 }
 0x1ca   : > { %vm8959_vm13 = vcmp.le.f32.partialorder %v10964_v15, 0.7853982  ;;  %v8974_v51 = vsel %vm10970_vm3, nan, %v1929_v34  ;;  %vm10971_vm10 = vmmov %vm10970_vm3  ;;  %vm1572_vm6 = vc.u32 %v8929_v0, %v8931_v20  ;;  %v1573_v2 = vadd.s32 1, %v8932_v59  ;;  %v10973_v34 = vld [vmem:[#allocation28_spill] sm:$0xff] }
 0x1cb   : > { %v8978_v33 = vsel %vm10971_vm10, nan, %v3589_v22  ;;  %v2123_v32 = vsel %vm8900_vm12, %v10953_v48, %v2120_v27  ;;  %v6377_v29 = vadd.s32 4294967294, %v2207_v56  ;;  %v1570_v42 = vmul.u32 %v1563_v41, %v1554_v1  ;;  %v8996_v41 = vpop.permute.xlu1 %1279 }
 0x1cc   : > { %v1708_v35 = vsel %vm8528_vm8, 0, %v8565_v23  ;;  %v2327_v39 = vxor.u32 2147483648, %v2326_v13  ;;  %v2017_v49 = vsub.s32 4, %v8748_v9  ;;  %v1574_v19 = vsel %vm1572_vm6, %v1573_v2, %v8932_v59 }
 0x1cd   : > { %v2016_v52 = vsel %vm1933_vm4, %v2015_v7, %v2014_v14  ;;  %vm6378_vm3 = vcmp.lt.s32.totalorder %v6377_v29, 0  ;;  %v1575_v40 = vadd.s32 %v1574_v19, %v1570_v42  ;;  %6979 = vcosq.f32 %v2123_v32  ;;  %v10981_v42 = vld [vmem:[#allocation13_spill] sm:$0xff] }
 0x1ce   : > { %v2210_v23 = vsel %vm6378_vm3, 0, %v6377_v29  ;;  %v1712_v22 = vadd.s32 3, %v1708_v35  ;;  %v2195_v21 = vadd.s32 %v8787_v55, %v8802_v18  ;;  %v2328_v27 = vsel %vm10733_vm5, %v2327_v39, %v2326_v13  ;;  %v10977_v55 = vld [vmem:[#allocation50_spill] sm:$0xff] }
 0x1cf   : > { %v2211_v59 = vsub.s32 32, %v2210_v23  ;;  %v2215_v45 = vsub.s32 4294967266, %v2210_v23  ;;  %v1576_v60 = vadd.s32 536870912, %v1575_v40  ;;  %6981 = vsinq.f32 %v2123_v32  ;;  %v10980_v32 = vld [vmem:[#allocation49_spill] sm:$0xff] }
 0x1d0   : > { %v2018_v14 = vsel %vm1933_vm4, %v2017_v49, %v8748_v9  ;;  %v2019_v1 = vsel %vm8959_vm13, %v8400_v46, %v2016_v52  ;;  %v10974_v15 = vand.u32 2147483647, %v10959_v12  ;;  %v1035_v9 = vsel %vm7636_vm11, %v10978_v57, %v8821_v25  ;;  %v10984_v25 = vld [vmem:[#allocation26_spill] sm:$0xff] }
 0x1d1   : > { %v2213_v18 = vshrl.u32 %v2195_v21, %v2211_v59  ;;  %v2216_v28 = vadd.s32 127, %v2215_v45  ;;  %v1577_v13 = vshrl.u32 %v1576_v60, 30  ;;  %v2212_v56 = vshll.u32 %v8916_v37, %v2210_v23  ;;  %v9028_v59 = vpop.permute.xlu1 %1362  ;;  %v10985_v37 = vld [vmem:[#allocation14_spill] sm:$0xff] }
 0x1d2   : > { %vm9012_vm8 = vcmp.le.f32.partialorder %v10974_v15, 0.7853982  ;;  %v1713_v2 = vand.u32 3, %v1712_v22  ;;  %v1716_v29 = vxor.u32 2147483648, %v10980_v32  ;;  %v9026_v49 = vsel %vm7651_vm14, %v10981_v42, %v1035_v9  ;;  %v10987_v22 = vld [vmem:[#allocation53_spill] sm:$0xff] }
 0x1d3   : > { %10983 = vst [vmem:[#allocation9_spill] sm:$0xff] %v9026_v49  ;;  %6983 = vcosq.f32 %v2019_v1  ;;  %v2217_v19 = vshll.u32 %v2216_v28, 23  ;;  %v1578_v52 = vshll.u32 %v1577_v13, 30  ;;  %v3375_v21 = vand.u32 3, %v1708_v35  ;;  %v10992_v9 = vld [vmem:[#allocation17_spill] sm:$0xff] }
 0x1d4   : > { %6985 = vsinq.f32 %v2019_v1  ;;  %v2214_v45 = vor.u32 %v2213_v18, %v2212_v56  ;;  %v10986_v23 = vsel %vm7606_vm7, %v10984_v25, %v10985_v37  ;;  %v10988_v15 = vand.u32 2147483647, %v10925_v43  ;;  %v10991_v18 = vld [vmem:[#allocation12_spill] sm:$0xff] }
 0x1d5   : > { %v930_v60 = vsel %vm7619_vm9, %v10987_v22, %v10986_v23  ;;  %v2218_v35 = vor.u32 4788187, %v2217_v19  ;;  %v9045_v1 = vsub.s32 %v1575_v40, %v1578_v52  ;;  %v1719_v28 = vxor.u32 2147483648, %v10991_v18  ;;  %v9068_v62 = vpop.permute.xlu1 %1366 }
 0x1d6   : > { %vm9040_vm4 = vcmp.le.f32.partialorder %v10988_v15, 0.7853982  ;;  %v1036_v56 = vsel %vm7636_vm11, %v10992_v9, %v8842_v26  ;;  %v2225_v42 = vsub.s32 4, %v8887_v61  ;;  %v1601_v25 = vsub.s32 4, %v1577_v13  ;;  %10994 = vst [vmem:[#allocation48_spill] sm:$0xff] %v9068_v62 }
 0x1d7   : > { %vm1715_vm3 = vcmp.eq.s32.totalorder %v1713_v2, 0  ;;  %v9056_v37 = vsel %vm7651_vm14, %v8766_v58, %v1036_v56  ;;  %v2219_v23 = vand.u32 2147483647, %v2218_v35  ;;  %v1581_v40 = vsub.s32 0, %v9045_v1  ;;  %v1169_v56 = vpop.permute.xlu0 %1168 }
 0x1d8   : > { %v1717_v19 = vsel %vm1715_vm3, %v10991_v18, %v1716_v29  ;;  %vm3377_vm5 = vcmp.eq.s32.totalorder %v3375_v21, 0  ;;  %v2221_v52 = vcvt.s32.f32 %v2214_v45  ;;  %vm1718_vm6 = vcmp.eq.s32.totalorder %v1713_v2, 2 }
 0x1d9   : > { %vm3380_vm10 = vcmp.eq.s32.totalorder %v3375_v21, 2  ;;  %v6352_v15 = vmin.u32 %v1581_v40, %v9045_v1  ;;  %v1720_v9 = vsel %vm1718_vm6, %v1719_v28, %v10980_v32  ;;  %v3379_v58 = vsel %vm3377_vm5, %v10991_v18, %v1716_v29 }
 0x1da   : > { %v3382_v35 = vsel %vm3380_vm10, %v1719_v28, %v10980_v32  ;;  %v9073_v45 = vsel %vm9012_vm8, %v10959_v12, %v2328_v27  ;;  %v2222_v6 = vmul.f32 %v2221_v52, %v2219_v23  ;;  %vm10995_vm3 = vcmp.lt.s32.totalorder %v10977_v55, 0  ;;  %v9082_v29 = vpop.eup %6979  ;;  %v10997_v23 = vld [vmem:[#allocation37_spill] sm:$0xff] }
 0x1db   : > { %v9078_v22 = vsel %vm10995_vm3, %v2225_v42, %v8887_v61  ;;  %vm10996_vm6 = vcmp.lt.s32.totalorder %v10925_v43, 0  ;;  %v1583_v32 = vclz %v6352_v15  ;;  %vm1714_vm5 = vcmp.lt.s32.totalorder %v1713_v2, 2  ;;  %v10998_v61 = vld [vmem:[#allocation16_spill] sm:$0xff]  ;;  %v11003_v15 = vld [vmem:[#allocation41_spill] sm:$0xff] }
 0x1dc   : > { %v1602_v40 = vsel %vm10996_vm6, %v1601_v25, %v1577_v13  ;;  %vm3376_vm10 = vcmp.lt.s32.totalorder %v3375_v21, 2  ;;  %v2020_v18 = vsel %vm8959_vm13, 0, %v2018_v14  ;;  %v1721_v28 = vsel %vm1714_vm5, %v1717_v19, %v1720_v9  ;;  %v9093_v13 = vpop.eup %6981  ;;  %v11002_v21 = vld [vmem:[#allocation42_spill] sm:$0xff]  ;;  %v1181_v19 = vpop.permute.xlu0 %1180 }
 0x1dd   : > { %v3383_v27 = vsel %vm3376_vm10, %v3379_v58, %v3382_v35  ;;  %v1034_v52 = vsel %vm7636_vm11, %v10997_v23, %v8970_v17  ;;  %v1033_v42 = vsel %vm7636_vm11, %v10998_v61, %v930_v60  ;;  %v10999_v25 = vand.u32 2147483647, %v10977_v55  ;;  %v11004_v35 = vld [vmem:[#allocation11_spill] sm:$0xff] }
 0x1de   : > { %v6353_v63 = vadd.s32 4294967294, %v1583_v32  ;;  %v1604_v14 = vsel %vm9040_vm4, 0, %v1602_v40  ;;  %v1120_v17 = vsel %vm7651_vm14, %v11002_v21, %v1033_v42  ;;  %v2121_v9 = vsub.s32 4, %v11003_v15  ;;  %v11005_v32 = vld [vmem:[#allocation51_spill] sm:$0xff] }
 0x1df   : > { %vm9097_vm3 = vcmp.le.f32.partialorder %v10999_v25, 0.7853982  ;;  %v2223_v60 = vxor.u32 2147483648, %v2222_v6  ;;  %v1571_v58 = vadd.s32 %v8931_v20, %v8929_v0  ;;  %vm1711_vm13 = vweird.f32 %v11004_v35  ;;  %v9120_v25 = vpop.permute.xlu1 %1445 }
 0x1e0   : > { %v2024_v23 = vadd.s32 3, %v2020_v18  ;;  %vm6354_vm6 = vcmp.lt.s32.totalorder %v6353_v63, 0  ;;  %v9110_v61 = vsel %vm1711_vm13, nan, %v1721_v28  ;;  %v9115_v40 = vsel %vm7651_vm14, %v11005_v32, %v1034_v52  ;;  %v6984_v21 = vpop.eup %6983 }
 0x1e1   : > { %vm11006_vm5 = vcmp.lt.s32.totalorder %v10953_v48, 0  ;;  %v1586_v10 = vsel %vm6354_vm6, 0, %v6353_v63  ;;  %v1608_v0 = vadd.s32 3, %v1604_v14  ;;  %v9122_v20 = vsel %vm1711_vm13, nan, %v3383_v27  ;;  %v6986_v35 = vpop.eup %6985 }
 0x1e2   : > { %v2122_v42 = vsel %vm11006_vm5, %v2121_v9, %v11003_v15  ;;  %v1207_v28 = vsel %vm7662_vm15, %v1169_v56, %v1120_v17  ;;  %v1587_v54 = vsub.s32 32, %v1586_v10  ;;  %v1591_v8 = vsub.s32 4294967266, %v1586_v10  ;;  %v1450_v15 = vpop.permute.xlu0 %1449 }
 0x1e3   : > { %v9126_v39 = vand.u32 3, %v1604_v14  ;;  %v1210_v52 = vsel %vm7662_vm15, %v1181_v19, %v9056_v37  ;;  %vm11007_vm10 = vcmp.lt.s32.totalorder %v10977_v55, 0  ;;  %v1208_v27 = vsel %vm7662_vm15, %v8807_v3, %v9115_v40  ;;  %v9148_v31 = vpop.permute.xlu1 %753 }
 0x1e4   : > { %v2224_v9 = vsel %vm11007_vm10, %v2223_v60, %v2222_v6  ;;  %v2025_v63 = vand.u32 3, %v2024_v23  ;;  %v2124_v56 = vsel %vm8900_vm12, 0, %v2122_v42  ;;  %v1588_v14 = vshll.u32 %v9045_v1, %v1586_v10  ;;  %11009 = vst [vmem:[#allocation10_spill] sm:$0xff] %v9148_v31 }
 0x1e5   : > { %v1589_v17 = vshrl.u32 %v1571_v58, %v1587_v54  ;;  %v1592_v32 = vadd.s32 127, %v1591_v8  ;;  %v2128_v5 = vadd.s32 3, %v2124_v56  ;;  %v2028_v62 = vxor.u32 2147483648, %v6986_v35  ;;  %v11010_v58 = vld [vmem:[#allocation54_spill] sm:$0xff] }
 0x1e6   : > { %v2031_v37 = vxor.u32 2147483648, %v6984_v21  ;;  %v3684_v19 = vand.u32 3, %v2020_v18  ;;  %v1313_v6 = vsel %vm7675_vm0, %v8996_v41, %v1210_v52  ;;  %v9143_v11 = vand.u32 3, %v1608_v0  ;;  %v1458_v18 = vpop.permute.xlu0 %1457 }
 0x1e7   : > { %v1590_v60 = vor.u32 %v1589_v17, %v1588_v14  ;;  %v1593_v49 = vshll.u32 %v1592_v32, 23  ;;  %v1310_v3 = vsel %vm7675_vm0, %v8896_v16, %v1207_v28  ;;  %v9153_v8 = vsel %vm9097_vm3, %v10977_v55, %v2224_v9  ;;  %v9167_v32 = vld [vmem:[%s10633_s5] ss:$0 sm:$0xff] }
 0x1e8   : > { %vm2027_vm12 = vcmp.eq.s32.totalorder %v2025_v63, 0  ;;  %v2132_v10 = vxor.u32 2147483648, %v9093_v13  ;;  %v2135_v41 = vxor.u32 2147483648, %v9082_v29  ;;  %vm2030_vm13 = vcmp.eq.s32.totalorder %v2025_v63, 2 }
 0x1e9   : > { %v1594_v54 = vor.u32 4788187, %v1593_v49  ;;  %v2129_v1 = vand.u32 3, %v2128_v5  ;;  %v1400_v16 = vsel %vm7687_vm1, %v11010_v58, %v1313_v6  ;;  %v2029_v40 = vsel %vm2027_vm12, %v6984_v21, %v2028_v62 }
 0x1ea   : > { %v2032_v42 = vsel %vm2030_vm13, %v2031_v37, %v6986_v35  ;;  %vm3686_vm6 = vcmp.eq.s32.totalorder %v3684_v19, 0  ;;  %vm3689_vm5 = vcmp.eq.s32.totalorder %v3684_v19, 2  ;;  %v1597_v28 = vcvt.s32.f32 %v1590_v60  ;;  %v11014_v60 = vld [vmem:[#allocation19_spill] sm:$0xff] }
 0x1eb   : > { %v1595_v0 = vand.u32 2147483647, %v1594_v54  ;;  %v3688_v52 = vsel %vm3686_vm6, %v6984_v21, %v2028_v62  ;;  %v3691_v9 = vsel %vm3689_vm5, %v2031_v37, %v6986_v35  ;;  %6987 = vcosq.f32 %v9153_v8  ;;  %v9172_v21 = vpop.permute.xlu1 %758 }
 0x1ec   : > { %vm2023_vm10 = vweird.f32 %v8400_v46  ;;  %vm2026_vm14 = vcmp.lt.s32.totalorder %v2025_v63, 2  ;;  %v3787_v49 = vand.u32 3, %v2124_v56  ;;  %v1487_v14 = vsel %vm7691_vm2, %v1458_v18, %v1400_v16  ;;  %11013 = vst [vmem:[#allocation46_spill] sm:$0xff] %v9172_v21 }
 0x1ed   : > { %v1598_v17 = vmul.f32 %v1597_v28, %v1595_v0  ;;  %vm2131_vm11 = vcmp.eq.s32.totalorder %v2129_v1, 0  ;;  %vm3685_vm9 = vcmp.lt.s32.totalorder %v3684_v19, 2  ;;  %v9170_v62 = vmul.f32 %v9167_v32, %v1487_v14  ;;  %v11016_v0 = vld [vmem:[#allocation52_spill] sm:$0xff] }
 0x1ee   : > { %v2033_v35 = vsel %vm2026_vm14, %v2029_v40, %v2032_v42  ;;  %v2133_v63 = vsel %vm2131_vm11, %v9082_v29, %v2132_v10  ;;  %vm2134_vm12 = vcmp.eq.s32.totalorder %v2129_v1, 2  ;;  %v3692_v56 = vsel %vm3685_vm9, %v3688_v52, %v3691_v9 }
 0x1ef   : > { %v1599_v37 = vxor.u32 2147483648, %v1598_v17  ;;  %vm2127_vm13 = vweird.f32 %v10953_v48  ;;  %v2136_v19 = vsel %vm2134_vm12, %v2135_v41, %v9093_v13  ;;  %v10747_v6 = vand.u32 2147483647, %v9170_v62 }
 0x1f0   : > { %v1311_v54 = vsel %vm7675_vm0, %v11014_v60, %v1208_v27  ;;  %vm3789_vm6 = vcmp.eq.s32.totalorder %v3787_v49, 0  ;;  %vm3792_vm5 = vcmp.eq.s32.totalorder %v3787_v49, 2  ;;  %v2662_v18 = vand.u32 2139095040, %v9170_v62 }
 0x1f1   : > { %v1398_v58 = vsel %vm7687_vm1, %v9028_v59, %v1311_v54  ;;  %vm11015_vm9 = vcmp.lt.s32.totalorder %v10925_v43, 0  ;;  %v2666_v40 = vand.u32 8388607, %v10747_v6  ;;  %v1397_v27 = vsel %vm7687_vm1, %v11016_v0, %v1310_v3  ;;  %v9208_v3 = vpop.permute.xlu1 %824 }
 0x1f2   : > { %v1600_v16 = vsel %vm11015_vm9, %v1599_v37, %v1598_v17  ;;  %v1485_v42 = vsel %vm7691_vm2, %v1450_v15, %v1398_v58  ;;  %v2663_v52 = vshrl.u32 %v2662_v18, 23  ;;  %v1484_v9 = vsel %vm7691_vm2, %v9120_v25, %v1397_v27  ;;  %11019 = vst [vmem:[#allocation20_spill] sm:$0xff] %v9208_v3 }
 0x1f3   : > { %v1603_v28 = vsel %vm9040_vm4, %v10925_v43, %v1600_v16  ;;  %v9198_v59 = vmul.f32 %v9167_v32, %v1485_v42  ;;  %v3791_v14 = vsel %vm3789_vm6, %v9082_v29, %v2132_v10  ;;  %v3794_v15 = vsel %vm3792_vm5, %v2135_v41, %v9093_v13 }
 0x1f4   : > { %6989 = vcosq.f32 %v1603_v28  ;;  %v9206_v17 = vmul.f32 %v9167_v32, %v1484_v9  ;;  %vm2130_vm11 = vcmp.lt.s32.totalorder %v2129_v1, 2  ;;  %v6395_v57 = vadd.s32 4294967169, %v2663_v52 }
 0x1f5   : > { %11017 = vst [vmem:[#allocation58_spill] sm:$0xff] %v9198_v59  ;;  %6991 = vsinq.f32 %v1603_v28  ;;  %v10749_v37 = vand.u32 2147483647, %v9198_v59  ;;  %v9213_v60 = vsel %vm2023_vm10, nan, %v2033_v35  ;;  %v2137_v25 = vsel %vm2130_vm11, %v2133_v63, %v2136_v19 }
 0x1f6   : > { %11018 = vst [vmem:[#allocation35_spill] sm:$0xff] %v9206_v17  ;;  %vm3788_vm14 = vcmp.lt.s32.totalorder %v3787_v49, 2  ;;  %v2454_v29 = vand.u32 2139095040, %v9198_v59  ;;  %v9218_v13 = vsel %vm2023_vm10, nan, %v3692_v56  ;;  %v2667_v41 = vor.u32 8388608, %v2666_v40  ;;  %v9244_v40 = vpop.permute.xlu1 %1453 }
 0x1f7   : > { %v3795_v10 = vsel %vm3788_vm14, %v3791_v14, %v3794_v15  ;;  %v2669_v54 = vadd.s32 1, %v6395_v57  ;;  %v9222_v1 = vand.u32 8388607, %v10749_v37  ;;  %v10748_v58 = vand.u32 2147483647, %v9206_v17 }
 0x1f8   : > { %v2455_v18 = vshrl.u32 %v2454_v29, 23  ;;  %v2350_v35 = vand.u32 2139095040, %v9206_v17  ;;  %6993 = vsinq.f32 %v9153_v8  ;;  %v9229_v49 = vsel %vm2127_vm13, nan, %v2137_v25  ;;  %v9236_v63 = vpop.eup %6987 }
 0x1f9   : > { %vm2670_vm4 = vcmp.gt.s32.totalorder %v2669_v54, 0  ;;  %v9234_v46 = vsel %vm9097_vm3, 0, %v9078_v22  ;;  %v9242_v19 = vsel %vm2127_vm13, nan, %v3795_v10  ;;  %vm1614_vm10 = vcmp.eq.s32.totalorder %v9143_v11, 2 }
 0x1fa   : > { %v2671_v8 = vsel %vm2670_vm4, %v2669_v54, 0  ;;  %v6387_v16 = vadd.s32 4294967169, %v2455_v18  ;;  %vm3277_vm12 = vcmp.eq.s32.totalorder %v9126_v39, 2  ;;  %v9252_v0 = vshll.u32 %v2667_v41, 8 }
 0x1fb   : > { %v9250_v2 = vshrl.u32 %v2671_v8, 5  ;;  %v2673_v42 = vand.u32 31, %v2671_v8  ;;  %vm1611_vm3 = vcmp.eq.s32.totalorder %v9143_v11, 0  ;;  %vm3274_vm13 = vcmp.eq.s32.totalorder %v9126_v39, 0 }
 0x1fc   : > { %v9257_v27 = vshrl.u32 %v2350_v35, 23  ;;  %v9261_v28 = vand.u32 8388607, %v10748_v58  ;;  %v9264_v52 = vadd.s32 3, %v9234_v46  ;;  %vm1610_vm6 = vcmp.lt.s32.totalorder %v9143_v11, 2 }
 0x1fd   : > { %vm3273_vm5 = vcmp.lt.s32.totalorder %v9126_v39, 2  ;;  %v2674_v9 = vsub.s32 32, %v2673_v42  ;;  %v2676_v14 = vshll.u32 %v10838_v50, %v2673_v42  ;;  %v2679_v15 = vshll.u32 %v10904_v30, %v2673_v42 }
 0x1fe   : > { %v2461_v57 = vadd.s32 1, %v6387_v16  ;;  %v2682_v25 = vshll.u32 %v10905_v24, %v2673_v42  ;;  %v2685_v29 = vshll.u32 %v10875_v38, %v2673_v42  ;;  %v2688_v10 = vshll.u32 %v10876_v44, %v2673_v42  ;;  %v9283_v42 = vpop.permute.xlu1 %763 }
 0x1ff   : > { %vm2691_vm11 = vcmp.lt.s32.totalorder %v9250_v2, 1  ;;  %v2677_v41 = vshrl.u32 %v10904_v30, %v2674_v9  ;;  %v2680_v54 = vshrl.u32 %v10905_v24, %v2674_v9  ;;  %v2683_v18 = vshrl.u32 %v10875_v38, %v2674_v9 }
 0x200   : > { %v2675_v35 = vshrl.u32 %v10838_v50, %v2674_v9  ;;  %v2686_v8 = vshrl.u32 %v10876_v44, %v2674_v9  ;;  %v2689_v16 = vshrl.u32 %v10878_v36, %v2674_v9  ;;  %vm2693_vm9 = vcmp.lt.s32.totalorder %v9250_v2, 3 }
 0x201   : > { %v6990_v6 = vpop.eup %6989  ;;  %v2678_v58 = vor.u32 %v2677_v41, %v2676_v14  ;;  %v2681_v37 = vor.u32 %v2680_v54, %v2679_v15  ;;  %v2684_v22 = vor.u32 %v2683_v18, %v2682_v25  ;;  %vm2694_vm14 = vcmp.lt.s32.totalorder %v9250_v2, 4 }
 0x202   : > { %v6992_v56 = vpop.eup %6991  ;;  %v1615_v48 = vxor.u32 2147483648, %v6990_v6  ;;  %v2687_v21 = vor.u32 %v2686_v8, %v2685_v29  ;;  %v2690_v3 = vor.u32 %v2689_v16, %v2688_v10  ;;  %vm2462_vm4 = vcmp.gt.s32.totalorder %v2461_v57, 0  ;;  %v9300_v10 = vpop.permute.xlu1 %768 }
 0x203   : > { %v1612_v31 = vxor.u32 2147483648, %v6992_v56  ;;  %v2695_v17 = vsel %vm2691_vm11, %v2675_v35, %v2678_v58  ;;  %v2696_v9 = vsel %vm2694_vm14, %v2684_v22, 2102212464  ;;  %v2699_v59 = vsel %vm2691_vm11, %v2678_v58, %v2681_v37 }
 0x204   : > { %v1616_v14 = vsel %vm1614_vm10, %v1615_v48, %v6992_v56  ;;  %v3279_v15 = vsel %vm3277_vm12, %v1615_v48, %v6992_v56  ;;  %v2697_v25 = vsel %vm2693_vm9, %v2681_v37, %v2696_v9  ;;  %v2700_v29 = vsel %vm2694_vm14, %v2687_v21, 920167782 }
 0x205   : > { %v1613_v41 = vsel %vm1611_vm3, %v6990_v6, %v1612_v31  ;;  %v3276_v58 = vsel %vm3274_vm13, %v6990_v6, %v1612_v31  ;;  %v2701_v54 = vsel %vm2693_vm9, %v2684_v22, %v2700_v29  ;;  %v2463_v18 = vsel %vm2462_vm4, %v2461_v57, 0  ;;  %v9308_v35 = vpop.eup %6993 }
 0x206   : > { %v1617_v56 = vsel %vm1610_vm6, %v1613_v41, %v1616_v14  ;;  %v3280_v48 = vsel %vm3273_vm5, %v3276_v58, %v3279_v15  ;;  %vm11020_vm10 = vcmp.lt.s32.totalorder %v9250_v2, 2  ;;  %v2703_v16 = vsel %vm2691_vm11, %v2681_v37, %v2684_v22  ;;  %v9332_v22 = vpop.permute.xlu1 %832 }
 0x207   : > { %v2702_v8 = vsel %vm11020_vm10, %v2699_v59, %v2701_v54  ;;  %vm11021_vm12 = vweird.f32 %v10925_v43  ;;  %vm11023_vm13 = vmmov %vm11020_vm10  ;;  %v2704_v11 = vsel %vm2694_vm14, %v2690_v3, 1326507024  ;;  %v9330_v37 = vshrl.u32 %v2463_v18, 5 }
 0x208   : > { %v1618_v31 = vsel %vm11021_vm12, nan, %v1617_v56  ;;  %vm11022_vm3 = vmmov %vm11021_vm12  ;;  %v2698_v57 = vsel %vm11023_vm13, %v2695_v17, %v2697_v25  ;;  %v2705_v59 = vsel %vm2693_vm9, %v2687_v21, %v2704_v11  ;;  %v2465_v3 = vand.u32 31, %v2463_v18 }
 0x209   : > { %v3281_v6 = vsel %vm11022_vm3, nan, %v3280_v48  ;;  %v5401_v39 = vpack.c.bf16 %v9110_v61, %v1618_v31  ;;  %vm11024_vm6 = vmmov %vm11020_vm10  ;;  %v9337_v14 = vmul.u32.u64.low %v9252_v0, %v2702_v8  ;;  %v9338_v17 = vmul.u32.u64.high %v9252_v0, %v2702_v8, %v9337_v14 }
 0x20a   : > { %v5579_v9 = vpack.c.bf16 %v9122_v20, %v3281_v6  ;;  %v2706_v43 = vsel %vm11024_vm6, %v2703_v16, %v2705_v59  ;;  %vm11025_vm5 = vcmask 441344   ;;  %v11027_v21 = vor.u32 8388608, %v9222_v1 }
 0x20b   : > { %6729 = vmatprep.mubr.msk.bf16.mxu0 %vm11025_vm5, %v5401_v39  ;;  %vm11026_vm11 = vmmov %vm11025_vm5  ;;  %v9344_v61 = vmul.u32.u64.low %v9252_v0, %v2706_v43  ;;  %v9345_v20 = vmul.u32.u64.high %v9252_v0, %v2706_v43, %v9344_v61  ;;  %v6383_v2 = vadd.s32 4294967169, %v9257_v27  ;;  %v11028_v25 = vpack.c.bf16 %v8974_v51, %v10972_v4 }
 0x20c   : > { %6753 = vmatprep.mubr.msk.bf16.mxu1 %vm11026_vm11, %v5579_v9  ;;  %v9349_v15 = vshll.u32 %v11027_v21, 8  ;;  %vm11029_vm9 = vmmov %vm11025_vm5  ;;  %v11030_v29 = vpack.c.bf16 %v8978_v33, %v10973_v34  ;;  %v2714_v41 = vmul.u32 %v9252_v0, %v2698_v57  ;;  %v2466_v58 = vsub.s32 32, %v2465_v3  ;;  %v9375_v0 = vpop.permute.xlu1 %907 }
 0x20d   : > { %6730 = vmatmul.mubr.msk.bf16.vlgmr.msra.gmra.mxu0 %vm11029_vm9, %v11028_v25  ;;  %vm11031_vm14 = vmmov %vm11025_vm5  ;;  %v2468_v54 = vshll.u32 %v10838_v50, %v2465_v3  ;;  %vm2483_vm4 = vcmp.lt.s32.totalorder %v9330_v37, 1  ;;  %v11032_v1 = vpack.c.bf16 %v9229_v49, %v9213_v60  ;;  %v11034_v51 = vpack.c.bf16 %v9242_v19, %v9218_v13 }
 0x20e   : > { %6754 = vmatmul.mubr.msk.bf16.vlgmr.msra.gmra.mxu1 %vm11031_vm14, %v11030_v29  ;;  %vm11033_vm10 = vmmov %vm11025_vm5  ;;  %v2471_v33 = vshll.u32 %v10904_v30, %v2465_v3  ;;  %v2474_v4 = vshll.u32 %v10905_v24, %v2465_v3  ;;  %v2477_v34 = vshll.u32 %v10875_v38, %v2465_v3  ;;  %vm2484_vm3 = vcmp.lt.s32.totalorder %v9330_v37, 2 }
 0x20f   : > { %6733 = vmatprep.mubr.msk.bf16.mxu0 %vm11033_vm10, %v11032_v1  ;;  %vm11035_vm12 = vmmov %vm11025_vm5  ;;  %v2717_v27 = vadd.s32 1, %v9338_v17  ;;  %v2469_v60 = vshrl.u32 %v10904_v30, %v2466_v58  ;;  %v2472_v49 = vshrl.u32 %v10905_v24, %v2466_v58  ;;  %v2480_v13 = vshll.u32 %v10876_v44, %v2465_v3 }
 0x210   : > { %6757 = vmatprep.mubr.msk.bf16.mxu1 %vm11035_vm12, %v11034_v51  ;;  %vm2716_vm13 = vc.u32 %v9345_v20, %v9337_v14  ;;  %v2475_v19 = vshrl.u32 %v10875_v38, %v2466_v58  ;;  %v2478_v18 = vshrl.u32 %v10876_v44, %v2466_v58  ;;  %vm2485_vm6 = vcmp.lt.s32.totalorder %v9330_v37, 3  ;;  %v9394_v21 = vpop.permute.xlu1 %915 }
 0x211   : > { %v2718_v56 = vsel %vm2716_vm13, %v2717_v27, %v9338_v17  ;;  %v2470_v48 = vor.u32 %v2469_v60, %v2468_v54  ;;  %v2473_v8 = vor.u32 %v2472_v49, %v2471_v33  ;;  %v2481_v16 = vshrl.u32 %v10878_v36, %v2466_v58 }
 0x212   : > { %v2719_v31 = vadd.s32 %v2718_v56, %v2714_v41  ;;  %v2476_v6 = vor.u32 %v2475_v19, %v2474_v4  ;;  %v2479_v57 = vor.u32 %v2478_v18, %v2477_v34  ;;  %v2357_v11 = vadd.s32 1, %v6383_v2 }
 0x213   : > { %v2467_v39 = vshrl.u32 %v10838_v50, %v2466_v58  ;;  %v2482_v9 = vor.u32 %v2481_v16, %v2480_v13  ;;  %vm2486_vm5 = vcmp.lt.s32.totalorder %v9330_v37, 4  ;;  %v2491_v59 = vsel %vm2483_vm4, %v2470_v48, %v2473_v8 }
 0x214   : > { %v2720_v43 = vadd.s32 536870912, %v2719_v31  ;;  %v2488_v3 = vsel %vm2486_vm5, %v2476_v6, 2102212464  ;;  %v2492_v61 = vsel %vm2486_vm5, %v2479_v57, 920167782  ;;  %v2495_v17 = vsel %vm2483_vm4, %v2473_v8, %v2476_v6  ;;  %v9433_v16 = vpop.permute.xlu1 %919 }
 0x215   : > { %v2487_v25 = vsel %vm2483_vm4, %v2467_v39, %v2470_v48  ;;  %v2489_v2 = vsel %vm2485_vm6, %v2473_v8, %v2488_v3  ;;  %v2493_v29 = vsel %vm2485_vm6, %v2476_v6, %v2492_v61  ;;  %v2496_v41 = vsel %vm2486_vm5, %v2482_v9, 1326507024 }
 0x216   : > { %v9402_v58 = vshrl.u32 %v2720_v43, 30  ;;  %v2494_v54 = vsel %vm2484_vm3, %v2491_v59, %v2493_v29  ;;  %v2497_v1 = vsel %vm2485_vm6, %v2479_v57, %v2496_v41  ;;  %vm2358_vm11 = vcmp.gt.s32.totalorder %v2357_v11, 0 }
 0x217   : > { %v2498_v51 = vsel %vm2484_vm3, %v2495_v17, %v2497_v1  ;;  %v9411_v33 = vmul.u32.u64.low %v9349_v15, %v2494_v54  ;;  %v9412_v4 = vmul.u32.u64.high %v9349_v15, %v2494_v54, %v9411_v33  ;;  %v2355_v34 = vor.u32 8388608, %v9261_v28 }
 0x218   : > { %v2722_v27 = vshll.u32 %v9402_v58, 30  ;;  %v9418_v60 = vmul.u32.u64.low %v9349_v15, %v2498_v51  ;;  %v9419_v49 = vmul.u32.u64.high %v9349_v15, %v2498_v51, %v9418_v60  ;;  %v11036_v13 = vsub.s32 4, %v8443_v53  ;;  %v9460_v1 = vpop.permute.xlu1 %1012 }
 0x219   : > { %vm11037_vm9 = vcmp.lt.s32.totalorder %v10959_v12, 0  ;;  %6995 = vcosq.f32 %v9073_v45  ;;  %v2490_v18 = vsel %vm2484_vm3, %v2487_v25, %v2489_v2  ;;  %v2359_v56 = vsel %vm2358_vm11, %v2357_v11, 0 }
 0x21a   : > { %v2330_v19 = vsel %vm11037_vm9, %v11036_v13, %v8443_v53  ;;  %6997 = vsinq.f32 %v9073_v45  ;;  %v9430_v28 = vsub.s32 %v2719_v31, %v2722_v27  ;;  %v2361_v48 = vand.u32 31, %v2359_v56 }
 0x21b   : > { %v2236_v8 = vxor.u32 2147483648, %v9308_v35  ;;  %v2509_v6 = vadd.s32 1, %v9412_v4  ;;  %v9436_v57 = vshll.u32 %v2355_v34, 8  ;;  %v9439_v53 = vand.u32 3, %v9264_v52 }
 0x21c   : > { %v2239_v37 = vxor.u32 2147483648, %v9236_v63  ;;  %v2725_v11 = vsub.s32 0, %v9430_v28  ;;  %v2506_v45 = vmul.u32 %v9349_v15, %v2490_v18  ;;  %vm2508_vm14 = vc.u32 %v9419_v49, %v9411_v33 }
 0x21d   : > { %v2362_v31 = vsub.s32 32, %v2361_v48  ;;  %v2715_v39 = vadd.s32 %v9337_v14, %v9345_v20  ;;  %v2510_v9 = vsel %vm2508_vm14, %v2509_v6, %v9412_v4  ;;  %v9449_v59 = vshrl.u32 %v2359_v56, 5 }
 0x21e   : > { %v2364_v52 = vshll.u32 %v10838_v50, %v2361_v48  ;;  %v6396_v43 = vmin.u32 %v2725_v11, %v9430_v28  ;;  %v2511_v3 = vadd.s32 %v2510_v9, %v2506_v45  ;;  %v2367_v15 = vshll.u32 %v10904_v30, %v2361_v48 }
 0x21f   : > { %v2365_v61 = vshrl.u32 %v10904_v30, %v2362_v31  ;;  %v2368_v17 = vshrl.u32 %v10905_v24, %v2362_v31  ;;  %v2371_v25 = vshrl.u32 %v10875_v38, %v2362_v31  ;;  %v2373_v2 = vshll.u32 %v10875_v38, %v2361_v48 }
 0x220   : > { %v2374_v14 = vshrl.u32 %v10876_v44, %v2362_v31  ;;  %v2727_v20 = vclz %v6396_v43  ;;  %v2512_v29 = vadd.s32 536870912, %v2511_v3  ;;  %v2370_v54 = vshll.u32 %v10905_v24, %v2361_v48 }
 0x221   : > { %v2366_v41 = vor.u32 %v2365_v61, %v2364_v52  ;;  %v2369_v51 = vor.u32 %v2368_v17, %v2367_v15  ;;  %v2376_v34 = vshll.u32 %v10876_v44, %v2361_v48  ;;  %v2377_v27 = vshrl.u32 %v10878_v36, %v2362_v31  ;;  %v9484_v61 = vpop.permute.xlu1 %1017 }
 0x222   : > { %v2375_v4 = vor.u32 %v2374_v14, %v2373_v2  ;;  %v6397_v60 = vadd.s32 4294967294, %v2727_v20  ;;  %v9464_v13 = vshrl.u32 %v2512_v29, 30  ;;  %v2372_v18 = vor.u32 %v2371_v25, %v2370_v54 }
 0x223   : > { %vm2235_vm4 = vcmp.eq.s32.totalorder %v9439_v53, 0  ;;  %v2363_v56 = vshrl.u32 %v10838_v50, %v2362_v31  ;;  %v2378_v6 = vor.u32 %v2377_v27, %v2376_v34  ;;  %vm2238_vm10 = vcmp.eq.s32.totalorder %v9439_v53, 2 }
 0x224   : > { %v9471_v11 = vsel %vm9012_vm8, 0, %v2330_v19  ;;  %vm6398_vm12 = vcmp.lt.s32.totalorder %v6397_v60, 0  ;;  %v2514_v48 = vshll.u32 %v9464_v13, 30  ;;  %vm2379_vm3 = vcmp.lt.s32.totalorder %v9449_v59, 1 }
 0x225   : > { %vm2382_vm13 = vcmp.lt.s32.totalorder %v9449_v59, 4  ;;  %v2730_v45 = vsel %vm6398_vm12, 0, %v6397_v60  ;;  %vm2380_vm6 = vcmp.lt.s32.totalorder %v9449_v59, 2  ;;  %v2387_v31 = vsel %vm2379_vm3, %v2366_v41, %v2369_v51 }
 0x226   : > { %v2388_v9 = vsel %vm2382_vm13, %v2375_v4, 920167782  ;;  %v9479_v52 = vpop.eup %6995  ;;  %v2735_v43 = vsub.s32 4294967266, %v2730_v45  ;;  %v9481_v7 = vsub.s32 %v2511_v3, %v2514_v48  ;;  %vm2381_vm8 = vcmp.lt.s32.totalorder %v9449_v59, 3 }
 0x227   : > { %v2384_v19 = vsel %vm2382_vm13, %v2372_v18, 2102212464  ;;  %v9486_v15 = vpop.eup %6997  ;;  %v2731_v17 = vsub.s32 32, %v2730_v45  ;;  %v2389_v25 = vsel %vm2381_vm8, %v2372_v18, %v2388_v9  ;;  %v2391_v2 = vsel %vm2379_vm3, %v2369_v51, %v2372_v18 }
 0x228   : > { %v2392_v14 = vsel %vm2382_vm13, %v2378_v6, 1326507024  ;;  %v2517_v20 = vsub.s32 0, %v9481_v7  ;;  %v2383_v29 = vsel %vm2379_vm3, %v2363_v56, %v2366_v41  ;;  %v2390_v3 = vsel %vm2380_vm6, %v2387_v31, %v2389_v25  ;;  %v9523_v25 = vpop.permute.xlu1 %1097 }
 0x229   : > { %vm2231_vm5 = vweird.f32 %v10977_v55  ;;  %v2237_v54 = vsel %vm2235_vm4, %v9236_v63, %v2236_v8  ;;  %v2385_v34 = vsel %vm2381_vm8, %v2369_v51, %v2384_v19  ;;  %v2393_v27 = vsel %vm2381_vm8, %v2375_v4, %v2392_v14 }
 0x22a   : > { %v9502_v60 = vmul.u32.u64.low %v9436_v57, %v2390_v3  ;;  %v9503_v18 = vmul.u32.u64.high %v9436_v57, %v2390_v3, %v9502_v60  ;;  %v2736_v6 = vadd.s32 127, %v2735_v43  ;;  %v6388_v41 = vmin.u32 %v2517_v20, %v9481_v7 }
 0x22b   : > { %v2394_v56 = vsel %vm2380_vm6, %v2391_v2, %v2393_v27  ;;  %v2240_v48 = vsel %vm2238_vm10, %v2239_v37, %v9308_v35  ;;  %v2733_v31 = vshrl.u32 %v2715_v39, %v2731_v17  ;;  %v2336_v9 = vadd.s32 3, %v9471_v11 }
 0x22c   : > { %v9515_v51 = vmul.u32.u64.low %v9436_v57, %v2394_v56  ;;  %v9516_v4 = vmul.u32.u64.high %v9436_v57, %v2394_v56, %v9515_v51  ;;  %v2519_v19 = vclz %v6388_v41  ;;  %v2386_v43 = vsel %vm2380_vm6, %v2383_v29, %v2385_v34 }
 0x22d   : > { %vm2234_vm11 = vcmp.lt.s32.totalorder %v9439_v53, 2  ;;  %vm2335_vm9 = vweird.f32 %v10959_v12  ;;  %v2732_v2 = vshll.u32 %v9430_v28, %v2730_v45  ;;  %v2405_v39 = vadd.s32 1, %v9503_v18 }
 0x22e   : > { %v2337_v17 = vand.u32 3, %v2336_v9  ;;  %v2340_v14 = vxor.u32 2147483648, %v9486_v15  ;;  %v2737_v20 = vshll.u32 %v2736_v6, 23  ;;  %v2507_v3 = vadd.s32 %v9411_v33, %v9419_v49  ;;  %v9547_v9 = vpop.f32.mrf.mxu1 }
 0x22f   : > { %v6389_v27 = vadd.s32 4294967294, %v2519_v19  ;;  %v2241_v59 = vsel %vm2234_vm11, %v2237_v54, %v2240_v48  ;;  %v9530_v29 = vor.u32 %v2733_v31, %v2732_v2  ;;  %v2402_v53 = vmul.u32 %v9436_v57, %v2386_v43  ;;  %v9541_v48 = vpop.permute.xlu1 %1105  ;;  %11039 = vst [vmem:[#allocation18_spill] sm:$0xff] %v9547_v9 }
 0x230   : > { %vm2404_vm14 = vc.u32 %v9516_v4, %v9502_v60  ;;  %v2343_v28 = vxor.u32 2147483648, %v9479_v52  ;;  %vm2339_vm10 = vcmp.eq.s32.totalorder %v2337_v17, 0  ;;  %v3890_v34 = vand.u32 3, %v9234_v46  ;;  %v9545_v46 = vpop.f32.mrf.mxu0 }
 0x231   : > { %vm6390_vm4 = vcmp.lt.s32.totalorder %v6389_v27, 0  ;;  %v2406_v45 = vsel %vm2404_vm14, %v2405_v39, %v9503_v18  ;;  %v2242_v33 = vsel %vm2231_vm5, nan, %v2241_v59  ;;  %v2341_v49 = vsel %vm2339_vm10, %v9479_v52, %v2340_v14  ;;  %11038 = vst [vmem:[#allocation6_spill] sm:$0xff] %v9545_v46 }
 0x232   : > { %v2522_v6 = vsel %vm6390_vm4, 0, %v6389_v27  ;;  %v2407_v41 = vadd.s32 %v2406_v45, %v2402_v53  ;;  %v2738_v54 = vor.u32 4788187, %v2737_v20  ;;  %vm2342_vm12 = vcmp.eq.s32.totalorder %v2337_v17, 2  ;;  %v11041_v45 = vld [vmem:[#allocation9_spill] sm:$0xff] }
 0x233   : > { %v2523_v57 = vsub.s32 32, %v2522_v6  ;;  %v2527_v56 = vsub.s32 4294967266, %v2522_v6  ;;  %v2524_v31 = vshll.u32 %v9481_v7, %v2522_v6  ;;  %vm2338_vm3 = vcmp.lt.s32.totalorder %v2337_v17, 2 }
 0x234   : > { %v2408_v51 = vadd.s32 536870912, %v2407_v41  ;;  %v2344_v18 = vsel %vm2342_vm12, %v2343_v28, %v9486_v15  ;;  %vm3892_vm13 = vcmp.eq.s32.totalorder %v3890_v34, 0  ;;  %v3993_v17 = vand.u32 3, %v9471_v11  ;;  %v9569_v11 = vpop.f32.mrf.mxu0 }
 0x235   : > { %v2525_v19 = vshrl.u32 %v2507_v3, %v2523_v57  ;;  %v2528_v43 = vadd.s32 127, %v2527_v56  ;;  %v2345_v2 = vsel %vm2338_vm3, %v2341_v49, %v2344_v18  ;;  %v3894_v7 = vsel %vm3892_vm13, %v9236_v63, %v2236_v8  ;;  %v11040_v3 = vld [vmem:[#allocation8_spill] sm:$0xff]  ;;  %v11043_v49 = vld [vmem:[#allocation33_spill] sm:$0xff] }
 0x236   : > { %v9549_v39 = vshrl.u32 %v2408_v51, 30  ;;  %v2346_v20 = vsel %vm2335_vm9, nan, %v2345_v2  ;;  %vm3895_vm6 = vcmp.eq.s32.totalorder %v3890_v34, 2  ;;  %v11042_v6 = vsel %vm7662_vm15, %v11040_v3, %v11041_v45  ;;  %v11045_v18 = vld [vmem:[#allocation48_spill] sm:$0xff]  ;;  %v9578_v2 = vpop.permute.xlu1 %1109 }
 0x237   : > { %v2526_v27 = vor.u32 %v2525_v19, %v2524_v31  ;;  %v2529_v59 = vshll.u32 %v2528_v43, 23  ;;  %v5404_v53 = vpack.c.bf16 %v2346_v20, %v2242_v33  ;;  %v1312_v57 = vsel %vm7675_vm0, %v11043_v49, %v11042_v6  ;;  %v9571_v33 = vpop.f32.mrf.mxu1  ;;  %v11048_v49 = vld [vmem:[#allocation22_spill] sm:$0xff] }
 0x238   : > { %v2410_v56 = vshll.u32 %v9549_v39, 30  ;;  %vm3891_vm8 = vcmp.lt.s32.totalorder %v3890_v34, 2  ;;  %v3897_v8 = vsel %vm3895_vm6, %v2239_v37, %v9308_v35  ;;  %11044 = vst [vmem:[#allocation23_spill] sm:$0xff] %v9571_v33  ;;  %v2741_v31 = vcvt.s32.f32 %v9530_v29 }
 0x239   : > { %v2530_v51 = vor.u32 4788187, %v2529_v59  ;;  %v1399_v19 = vsel %vm7687_vm1, %v11045_v18, %v1312_v57  ;;  %vm11046_vm11 = vcmask 441344   ;;  %v3898_v43 = vsel %vm3891_vm8, %v3894_v7, %v3897_v8  ;;  %v6654_v7 = vpop.f32.mrf.mxu0  ;;  %v11049_v8 = vld [vmem:[#allocation32_spill] sm:$0xff]  ;;  %v11055_v18 = vld [vmem:[#allocation35_spill] sm:$0xff] }
 0x23a   : > { %6734 = vmatmul.mubr.msk.bf16.gmra.mxu0 %vm11046_vm11, %v5404_v53  ;;  %v2739_v34 = vand.u32 2147483647, %v2738_v54  ;;  %v2533_v20 = vcvt.s32.f32 %v2526_v27  ;;  %v9580_v63 = vsub.s32 %v2407_v41, %v2410_v56  ;;  %vm3995_vm14 = vcmp.eq.s32.totalorder %v3993_v17, 0  ;;  %v6672_v41 = vpop.f32.mrf.mxu1  ;;  %v9605_v57 = vpop.permute.xlu1 %1188  ;;  %vm11054_vm3 = vmmov %vm11046_vm11 }
 0x23b   : > { %v2531_v35 = vand.u32 2147483647, %v2530_v51  ;;  %vm3994_vm4 = vcmp.lt.s32.totalorder %v3993_v17, 2  ;;  %v3997_v37 = vsel %vm3995_vm14, %v9479_v52, %v2340_v14  ;;  %vm3998_vm10 = vcmp.eq.s32.totalorder %v3993_v17, 2 }
 0x23c   : > { %v2413_v29 = vsub.s32 0, %v9580_v63  ;;  %v3899_v59 = vsel %vm2231_vm5, nan, %v3898_v43  ;;  %v4000_v53 = vsel %vm3998_vm10, %v2343_v28, %v9486_v15  ;;  %v1486_v54 = vsel %vm7691_vm2, %v9244_v40, %v1399_v19  ;;  %v9616_v51 = vpop.f32.mrf.mxu1 }
 0x23d   : > { %v2534_v27 = vmul.f32 %v2533_v20, %v2531_v35  ;;  %v4001_v3 = vsel %vm3994_vm4, %v3997_v37, %v4000_v53  ;;  %v9591_v45 = vmul.f32 %v9167_v32, %v1486_v54  ;;  %v2742_v52 = vmul.f32 %v2741_v31, %v2739_v34  ;;  %11052 = vst [vmem:[#allocation31_spill] sm:$0xff] %v9616_v51  ;;  %v11064_v54 = vld [vmem:[#allocation10_spill] sm:$0xff] }
 0x23e   : > { %v6384_v14 = vmin.u32 %v2413_v29, %v9580_v63  ;;  %v4002_v55 = vsel %vm2335_vm9, nan, %v4001_v3  ;;  %v850_v28 = vsel %vm7606_vm7, %v9300_v10, %v9332_v22  ;;  %v849_v32 = vsel %vm7606_vm7, %v9283_v42, %v11048_v49  ;;  %v9614_v22 = vpop.f32.mrf.mxu0  ;;  %v11053_v42 = vld [vmem:[#allocation58_spill] sm:$0xff]  ;;  %v11061_v29 = vld [vmem:[#allocation36_spill] sm:$0xff] }
 0x23f   : > { %v2535_v17 = vxor.u32 2147483648, %v2534_v27  ;;  %v5582_v40 = vpack.c.bf16 %v4002_v55, %v3899_v59  ;;  %v10754_v6 = vand.u32 2147483647, %v9591_v45  ;;  %v2558_v12 = vand.u32 2139095040, %v9591_v45  ;;  %11051 = vst [vmem:[#allocation15_spill] sm:$0xff] %v9614_v22 }
 0x240   : > { %v2415_v56 = vclz %v6384_v14  ;;  %vm11050_vm5 = vnez %v11049_v8  ;;  %vm10755_vm9 = vcmp.lt.s32.totalorder %v9170_v62, 0  ;;  %vm2453_vm12 = vcmp.lt.s32.totalorder %v11053_v42, 0  ;;  %v6657_v55 = vpop.f32.mrf.mxu0 }
 0x241   : > { %v936_v31 = vsel %vm11050_vm5, %v9394_v21, %v849_v32  ;;  %v937_v10 = vsel %vm11050_vm5, %v9433_v16, %v850_v28  ;;  %6758 = vmatmul.mubr.msk.bf16.gmra.mxu1 %vm11054_vm3, %v5582_v40  ;;  %vm2349_vm13 = vcmp.lt.s32.totalorder %v11055_v18, 0  ;;  %v2559_v43 = vshrl.u32 %v2558_v12, 23  ;;  %v11056_v21 = vld [vmem:[#allocation34_spill] sm:$0xff]  ;;  %v6675_v28 = vpop.f32.mrf.mxu1 }
 0x242   : > { %v6385_v19 = vadd.s32 4294967294, %v2415_v56  ;;  %vm11057_vm6 = vnez %v11056_v21  ;;  %v2743_v20 = vxor.u32 2147483648, %v2742_v52  ;;  %v11058_v16 = vand.u32 2147483647, %v11053_v42  ;;  %v11066_v56 = vld [vmem:[#allocation46_spill] sm:$0xff] }
 0x243   : > { %v1039_v34 = vsel %vm11057_vm6, %v9484_v61, %v936_v31  ;;  %v2562_v37 = vand.u32 8388607, %v10754_v6  ;;  %vm11062_vm11 = vnez %v11061_v29  ;;  %v2536_v53 = vsel %vm2453_vm12, %v2535_v17, %v2534_v27  ;;  %v11063_v61 = vld [vmem:[#allocation21_spill] sm:$0xff]  ;;  %v9651_v17 = vpop.permute.xlu1 %1192 }
 0x244   : > { %vm9627_vm8 = vcmp.le.f32.partialorder %v11058_v16, 0.7853982  ;;  %v9636_v59 = vsel %vm11062_vm11, %v9541_v48, %v1039_v34  ;;  %vm6386_vm14 = vcmp.lt.s32.totalorder %v6385_v19, 0  ;;  %v847_v3 = vsel %vm7606_vm7, %v11064_v54, %v11063_v61  ;;  %v11065_v48 = vld [vmem:[#allocation20_spill] sm:$0xff]  ;;  %v912_v34 = vpop.permute.xlu0 %911 }
 0x245   : > { %v6391_v14 = vadd.s32 4294967169, %v2559_v43  ;;  %v2403_v40 = vadd.s32 %v9502_v60, %v9516_v4  ;;  %v2418_v49 = vsel %vm6386_vm14, 0, %v6385_v19  ;;  %v2433_v32 = vsub.s32 4, %v9549_v39  ;;  %v11067_v43 = vld [vmem:[#allocation25_spill] sm:$0xff] }
 0x246   : > { %v848_v27 = vsel %vm7606_vm7, %v11066_v56, %v11065_v48  ;;  %v2419_v12 = vsub.s32 32, %v2418_v49  ;;  %v2423_v31 = vsub.s32 4294967266, %v2418_v49  ;;  %v1040_v61 = vsel %vm11057_vm6, %v11067_v43, %v937_v10  ;;  %v9669_v10 = vpop.f32.mrf.mxu0  ;;  %v9671_v56 = vpop.f32.mrf.mxu1 }
 0x247   : > { %v2565_v16 = vadd.s32 1, %v6391_v14  ;;  %v9658_v60 = vsel %vm10755_vm9, %v2743_v20, %v2742_v52  ;;  %v2539_v4 = vsel %vm9627_vm8, %v11053_v42, %v2536_v53  ;;  %v2563_v15 = vor.u32 8388608, %v2562_v37  ;;  %11068 = vst [vmem:[#allocation2_spill] sm:$0xff] %v9669_v10  ;;  %11069 = vst [vmem:[#allocation47_spill] sm:$0xff] %v9671_v56 }
 0x248   : > { %v9666_v19 = vsel %vm11062_vm11, %v9578_v2, %v1040_v61  ;;  %v2420_v54 = vshll.u32 %v9580_v63, %v2418_v49  ;;  %v2421_v14 = vshrl.u32 %v2403_v40, %v2419_v12  ;;  %v2424_v48 = vadd.s32 127, %v2423_v31 }
 0x249   : > { %vm2566_vm7 = vcmp.gt.s32.totalorder %v2565_v16, 0  ;;  %v9676_v52 = vsel %vm2349_vm13, %v2433_v32, %v9549_v39  ;;  %v9680_v20 = vsel %vm11050_vm5, %v912_v34, %v848_v27  ;;  %v9682_v37 = vadd.f32 %v6672_v41, %v6654_v7  ;;  %v9693_v32 = vpop.permute.xlu1 %1284  ;;  %v9709_v34 = vpop.f32.mrf.mxu1 }
 0x24a   : > { %v2567_v2 = vsel %vm2566_vm7, %v2565_v16, 0  ;;  %6999 = vcosq.f32 %v2539_v4  ;;  %v2422_v63 = vor.u32 %v2421_v14, %v2420_v54  ;;  %v2425_v53 = vshll.u32 %v2424_v48, 23  ;;  %11076 = vst [vmem:[#allocation4_spill] sm:$0xff] %v9709_v34 }
 0x24b   : > { %11070 = vst [vmem:[#allocation3_spill] sm:$0xff] %v9682_v37  ;;  %v2569_v40 = vand.u32 31, %v2567_v2  ;;  %7001 = vsinq.f32 %v2539_v4  ;;  %v9687_v49 = vsel %vm11050_vm5, %v9375_v0, %v847_v3  ;;  %v9695_v27 = vadd.f32 %v6675_v28, %v6657_v55  ;;  %v9707_v3 = vpop.f32.mrf.mxu0  ;;  %v9724_v56 = vpop.f32.mrf.mxu1 }
 0x24c   : > { %v11072_v7 = vand.u32 2147483647, %v11055_v18  ;;  %v2426_v12 = vor.u32 4788187, %v2425_v53  ;;  %v9703_v31 = vshrl.u32 %v2567_v2, 5  ;;  %v9705_v8 = vshll.u32 %v2563_v15, 8 }
 0x24d   : > { %11071 = vst [vmem:[#allocation39_spill] sm:$0xff] %v9695_v27  ;;  %v2570_v0 = vsub.s32 32, %v2569_v40  ;;  %11075 = vst [vmem:[#allocation45_spill] sm:$0xff] %v9707_v3  ;;  %v2429_v16 = vcvt.s32.f32 %v2422_v63  ;;  %v2572_v55 = vshll.u32 %v10838_v50, %v2569_v40  ;;  %v2575_v28 = vshll.u32 %v10904_v30, %v2569_v40  ;;  %v9727_v3 = vpop.permute.xlu1 %1294 }
 0x24e   : > { %vm9699_vm4 = vcmp.le.f32.partialorder %v11072_v7, 0.7853982  ;;  %v2578_v43 = vshll.u32 %v10905_v24, %v2569_v40  ;;  %v2427_v61 = vand.u32 2147483647, %v2426_v12  ;;  %v2581_v14 = vshll.u32 %v10875_v38, %v2569_v40  ;;  %v9722_v12 = vpop.f32.mrf.mxu0  ;;  %11078 = vst [vmem:[#allocation7_spill] sm:$0xff] %v9724_v56 }
 0x24f   : > { %v2573_v4 = vshrl.u32 %v10904_v30, %v2570_v0  ;;  %v2576_v54 = vshrl.u32 %v10905_v24, %v2570_v0  ;;  %v2579_v15 = vshrl.u32 %v10875_v38, %v2570_v0  ;;  %v2582_v48 = vshrl.u32 %v10876_v44, %v2570_v0  ;;  %11077 = vst [vmem:[#allocation5_spill] sm:$0xff] %v9722_v12 }
 0x250   : > { %v2584_v2 = vshll.u32 %v10876_v44, %v2569_v40  ;;  %v2585_v63 = vshrl.u32 %v10878_v36, %v2570_v0  ;;  %v2430_v53 = vmul.f32 %v2429_v16, %v2427_v61  ;;  %v2571_v7 = vshrl.u32 %v10838_v50, %v2570_v0 }
 0x251   : > { %v2574_v6 = vor.u32 %v2573_v4, %v2572_v55  ;;  %v2577_v39 = vor.u32 %v2576_v54, %v2575_v28  ;;  %v2580_v10 = vor.u32 %v2579_v15, %v2578_v43  ;;  %v2583_v27 = vor.u32 %v2582_v48, %v2581_v14  ;;  %v6661_v54 = vpop.f32.mrf.mxu0  ;;  %v6679_v14 = vpop.f32.mrf.mxu1 }
 0x252   : > { %v2586_v34 = vor.u32 %v2585_v63, %v2584_v2  ;;  %vm2587_vm10 = vcmp.lt.s32.totalorder %v9703_v31, 1  ;;  %v2431_v37 = vxor.u32 2147483648, %v2430_v53  ;;  %vm2589_vm5 = vcmp.lt.s32.totalorder %v9703_v31, 3 }
 0x253   : > { %vm2590_vm3 = vcmp.lt.s32.totalorder %v9703_v31, 4  ;;  %v2595_v40 = vsel %vm2587_vm10, %v2574_v6, %v2577_v39  ;;  %v2599_v55 = vsel %vm2587_vm10, %v2577_v39, %v2580_v10  ;;  %vm2588_vm14 = vcmp.lt.s32.totalorder %v9703_v31, 2  ;;  %v11084_v31 = vld [vmem:[#allocation55_spill] sm:$0xff] }
 0x254   : > { %v2592_v0 = vsel %vm2590_vm3, %v2580_v10, 2102212464  ;;  %v2596_v16 = vsel %vm2590_vm3, %v2583_v27, 920167782  ;;  %v2600_v28 = vsel %vm2590_vm3, %v2586_v34, 1326507024  ;;  %v2432_v43 = vsel %vm2349_vm13, %v2431_v37, %v2430_v53 }
 0x255   : > { %v2597_v61 = vsel %vm2589_vm5, %v2580_v10, %v2596_v16  ;;  %v2601_v4 = vsel %vm2589_vm5, %v2583_v27, %v2600_v28  ;;  %v2435_v15 = vsel %vm9699_vm4, %v11055_v18, %v2432_v43  ;;  %v2591_v34 = vsel %vm2587_vm10, %v2571_v7, %v2574_v6  ;;  %v1185_v7 = vpop.permute.xlu0 %1184  ;;  %v9767_v16 = vpop.permute.xlu1 %1299 }
 0x256   : > { %v2598_v37 = vsel %vm2588_vm14, %v2595_v40, %v2597_v61  ;;  %v2602_v48 = vsel %vm2588_vm14, %v2599_v55, %v2601_v4  ;;  %7003 = vcosq.f32 %v2435_v15  ;;  %v2593_v10 = vsel %vm2589_vm5, %v2577_v39, %v2592_v0  ;;  %v11079_v0 = vld [vmem:[#allocation24_spill] sm:$0xff]  ;;  %v4943_v61 = vpop.f32.mrf.mxu0  ;;  %v5067_v4 = vpop.f32.mrf.mxu1 }
 0x257   : > { %v9754_v27 = vmul.u32.u64.low %v9705_v8, %v2602_v48  ;;  %v9755_v2 = vmul.u32.u64.high %v9705_v8, %v2602_v48, %v9754_v27  ;;  %v9757_v63 = vpop.eup %6999  ;;  %7005 = vsinq.f32 %v2435_v15  ;;  %v2436_v40 = vsel %vm9699_vm4, 0, %v9676_v52 }
 0x258   : > { %v9760_v53 = vmul.u32.u64.low %v9705_v8, %v2598_v37  ;;  %v9761_v6 = vmul.u32.u64.high %v9705_v8, %v2598_v37, %v9760_v53  ;;  %v7002_v39 = vpop.eup %7001  ;;  %v1037_v55 = vsel %vm11057_vm6, %v11079_v0, %v9687_v49  ;;  %v2440_v28 = vadd.s32 3, %v2436_v40 }
 0x259   : > { %v2537_v43 = vsub.s32 4, %v9464_v13  ;;  %v11080_v15 = vand.u32 2147483647, %v9170_v62  ;;  %v2594_v41 = vsel %vm2588_vm14, %v2591_v34, %v2593_v10  ;;  %v1124_v49 = vsel %vm11062_vm11, %v9523_v25, %v1037_v55 }
 0x25a   : > { %vm2612_vm7 = vc.u32 %v9755_v2, %v9760_v53  ;;  %v11083_v27 = vsel %vm11057_vm6, %v9460_v1, %v9680_v20  ;;  %v2613_v10 = vadd.s32 1, %v9761_v6  ;;  %v9810_v55 = vand.u32 3, %v2436_v40 }
 0x25b   : > { %vm9776_vm13 = vcmp.le.f32.partialorder %v11080_v15, 0.7853982  ;;  %v1125_v34 = vsel %vm11062_vm11, %v11084_v31, %v11083_v27  ;;  %v2538_v25 = vsel %vm2453_vm12, %v2537_v43, %v9464_v13  ;;  %v2610_v21 = vmul.u32 %v9705_v8, %v2594_v41  ;;  %v6662_v13 = vpop.f32.mrf.mxu0  ;;  %v6680_v43 = vpop.f32.mrf.mxu1 }
 0x25c   : > { %v9790_v48 = vsel %vm9776_vm13, %v9170_v62, %v9658_v60  ;;  %v9806_v60 = vand.u32 3, %v2440_v28  ;;  %v2540_v0 = vsel %vm9627_vm8, 0, %v2538_v25  ;;  %v1212_v1 = vsel %vm7662_vm15, %v9605_v57, %v1125_v34  ;;  %v9819_v15 = vpop.permute.xlu0 %1196  ;;  %v1379_v31 = vpop.permute.xlu1 %1378 }
 0x25d   : > { %v1211_v29 = vsel %vm7662_vm15, %v1185_v7, %v1124_v49  ;;  %v2544_v20 = vadd.s32 3, %v2540_v0  ;;  %v2614_v28 = vsel %vm2612_vm7, %v2613_v10, %v9761_v6  ;;  %v2548_v35 = vxor.u32 2147483648, %v7002_v39  ;;  %v5070_v49 = vpop.f32.mrf.mxu1 }
 0x25e   : > { %v2551_v40 = vxor.u32 2147483648, %v9757_v63  ;;  %v4199_v27 = vand.u32 3, %v2540_v0  ;;  %v2615_v8 = vadd.s32 %v2614_v28, %v2610_v21  ;;  %v9825_v57 = vsel %vm7675_vm0, %v9693_v32, %v1211_v29  ;;  %v4946_v32 = vpop.f32.mrf.mxu0 }
 0x25f   : > { %vm2543_vm12 = vweird.f32 %v11053_v42  ;;  %v2545_v7 = vand.u32 3, %v2544_v20  ;;  %vm2443_vm8 = vcmp.eq.s32.totalorder %v9806_v60, 0  ;;  %vm4098_vm4 = vcmp.eq.s32.totalorder %v9810_v55, 0  ;;  %v6683_v46 = vpop.f32.mrf.mxu1 }
 0x260   : > { %v9832_v6 = vadd.f32 %v6679_v14, %v6661_v54  ;;  %v2616_v41 = vadd.s32 536870912, %v2615_v8  ;;  %vm2439_vm10 = vweird.f32 %v11055_v18  ;;  %vm2446_vm5 = vcmp.eq.s32.totalorder %v9806_v60, 2  ;;  %v11085_v54 = vld [vmem:[#allocation27_spill] sm:$0xff]  ;;  %v1466_v21 = vpop.permute.xlu0 %1465  ;;  %v9846_v56 = vpop.permute.xlu1 %1382 }
 0x261   : > { %vm2547_vm3 = vcmp.eq.s32.totalorder %v2545_v7, 0  ;;  %vm2550_vm14 = vcmp.eq.s32.totalorder %v2545_v7, 2  ;;  %vm4101_vm7 = vcmp.eq.s32.totalorder %v9810_v55, 2  ;;  %vm4201_vm9 = vcmp.eq.s32.totalorder %v4199_v27, 0 }
 0x262   : > { %v2549_v34 = vsel %vm2547_vm3, %v9757_v63, %v2548_v35  ;;  %v2552_v25 = vsel %vm2550_vm14, %v2551_v40, %v7002_v39  ;;  %v2617_v10 = vshrl.u32 %v2616_v41, 30  ;;  %vm2546_vm11 = vcmp.lt.s32.totalorder %v2545_v7, 2 }
 0x263   : > { %vm4204_vm6 = vcmp.eq.s32.totalorder %v4199_v27, 2  ;;  %v1315_v14 = vsel %vm7675_vm0, %v11085_v54, %v1212_v1  ;;  %v7004_v0 = vpop.eup %7003  ;;  %v4203_v29 = vsel %vm4201_vm9, %v9757_v63, %v2548_v35  ;;  %v9844_v52 = vadd.f32 %v5067_v4, %v4943_v61  ;;  %v6665_v54 = vpop.f32.mrf.mxu0 }
 0x264   : > { %v4206_v20 = vsel %vm4204_vm6, %v2551_v40, %v7002_v39  ;;  %v1402_v28 = vsel %vm7687_vm1, %v1379_v31, %v1315_v14  ;;  %v7006_v12 = vpop.eup %7005  ;;  %vm2557_vm3 = vcmp.lt.s32.totalorder %v9591_v45, 0  ;;  %v2618_v7 = vshll.u32 %v2617_v10, 30  ;;  %v9854_v39 = vld [vmem:[%s10633_s5] ss:$0 sm:$0xff] }
 0x265   : > { %v2447_v41 = vxor.u32 2147483648, %v7004_v0  ;;  %v2553_v9 = vsel %vm2546_vm11, %v2549_v34, %v2552_v25  ;;  %v1489_v1 = vsel %vm7691_vm2, %v1466_v21, %v1402_v28  ;;  %v2444_v63 = vxor.u32 2147483648, %v7006_v12 }
 0x266   : > { %vm4200_vm9 = vcmp.lt.s32.totalorder %v4199_v27, 2  ;;  %v9857_v61 = vmul.f32 %v9854_v39, %v1489_v1  ;;  %v9859_v4 = vadd.f32 %v6680_v43, %v6662_v13  ;;  %v9861_v35 = vsub.s32 %v2615_v8, %v2618_v7 }
 0x267   : > { %v2448_v40 = vsel %vm2446_vm5, %v2447_v41, %v7006_v12  ;;  %v4103_v31 = vsel %vm4101_vm7, %v2447_v41, %v7006_v12  ;;  %v4207_v34 = vsel %vm4200_vm9, %v4203_v29, %v4206_v20  ;;  %v2445_v27 = vsel %vm2443_vm8, %v7004_v0, %v2444_v63  ;;  %v4959_v29 = vpop.f32.mrf.mxu0  ;;  %v5083_v20 = vpop.f32.mrf.mxu1 }
 0x268   : > { %v2554_v25 = vsel %vm2543_vm12, nan, %v2553_v9  ;;  %v4100_v14 = vsel %vm4098_vm4, %v7004_v0, %v2444_v63  ;;  %v10757_v13 = vand.u32 2147483647, %v9857_v61  ;;  %v2621_v43 = vsub.s32 0, %v9861_v35  ;;  %v1462_v41 = vpop.permute.xlu1 %1461 }
 0x269   : > { %vm11086_vm6 = vcmp.lt.s32.totalorder %v9806_v60, 2  ;;  %vm11087_vm11 = vcmp.lt.s32.totalorder %v9810_v55, 2  ;;  %v2870_v21 = vand.u32 2139095040, %v9857_v61  ;;  %v2641_v28 = vsub.s32 4, %v2617_v10 }
 0x26a   : > { %v2449_v8 = vsel %vm11086_vm6, %v2445_v27, %v2448_v40  ;;  %v4104_v12 = vsel %vm11087_vm11, %v4100_v14, %v4103_v31  ;;  %v4208_v7 = vsel %vm2543_vm12, nan, %v4207_v34  ;;  %v6392_v60 = vmin.u32 %v2621_v43, %v9861_v35  ;;  %v11088_v14 = vld [vmem:[#allocation56_spill] sm:$0xff] }
 0x26b   : > { %v2450_v9 = vsel %vm2439_vm10, nan, %v2449_v8  ;;  %v4105_v0 = vsel %vm2439_vm10, nan, %v4104_v12  ;;  %v2871_v63 = vshrl.u32 %v2870_v21, 23  ;;  %v2874_v40 = vand.u32 8388607, %v10757_v13 }
 0x26c   : > { %v5405_v1 = vpack.c.bf16 %v2554_v25, %v2450_v9  ;;  %v5583_v55 = vpack.c.bf16 %v4208_v7, %v4105_v0  ;;  %v9889_v31 = vadd.f32 %v5070_v49, %v4946_v32  ;;  %v9891_v27 = vadd.f32 %v6683_v46, %v6665_v54  ;;  %v6666_v32 = vpop.f32.mrf.mxu0  ;;  %v6684_v49 = vpop.f32.mrf.mxu1 }
 0x26d   : > { %v1401_v18 = vsel %vm7687_vm1, %v11088_v14, %v9825_v57  ;;  %v2623_v42 = vclz %v6392_v60  ;;  %vm11089_vm12 = vcmask 441344   ;;  %v6403_v34 = vadd.s32 4294967169, %v2871_v63 }
 0x26e   : > { %6737 = vmatprep.mubr.msk.bf16.mxu0 %vm11089_vm12, %v5405_v1  ;;  %vm11090_vm8 = vmmov %vm11089_vm12  ;;  %v1488_v25 = vsel %vm7691_vm2, %v1462_v41, %v1401_v18  ;;  %v9901_v43 = vadd.f32 %v5083_v20, %v4959_v29  ;;  %v2642_v46 = vsel %vm2557_vm3, %v2641_v28, %v2617_v10  ;;  %v9908_v57 = vadd.f32 %v6684_v49, %v6666_v32  ;;  %v4962_v10 = vpop.f32.mrf.mxu0 }
 0x26f   : > { %6761 = vmatprep.mubr.msk.bf16.mxu1 %vm11090_vm8, %v5583_v55  ;;  %v9906_v54 = vmul.f32 %v9854_v39, %v1488_v25  ;;  %v11091_v8 = vsub.s32 4, %v9402_v58  ;;  %vm11092_vm4 = vcmp.lt.s32.totalorder %v9170_v62, 0  ;;  %7007 = vcosq.f32 %v9790_v48 }
 0x270   : > { %v6393_v21 = vadd.s32 4294967294, %v2623_v42  ;;  %v2877_v29 = vadd.s32 1, %v6403_v34  ;;  %7009 = vsinq.f32 %v9790_v48  ;;  %v11093_v20 = vand.u32 2147483647, %v9591_v45 }
 0x271   : > { %v2746_v12 = vsel %vm11092_vm4, %v11091_v8, %v9402_v58  ;;  %v2875_v28 = vor.u32 8388608, %v2874_v40  ;;  %v2766_v9 = vand.u32 2139095040, %v9906_v54  ;;  %v10756_v41 = vand.u32 2147483647, %v9906_v54 }
 0x272   : > { %vm9919_vm10 = vcmp.le.f32.partialorder %v11093_v20, 0.7853982  ;;  %vm6394_vm5 = vcmp.lt.s32.totalorder %v6393_v21, 0  ;;  %vm2878_vm14 = vcmp.gt.s32.totalorder %v2877_v29, 0  ;;  %v2611_v1 = vadd.s32 %v9760_v53, %v9755_v2 }
 0x273   : > { %v9930_v0 = vsel %vm9919_vm10, 0, %v2642_v46  ;;  %v2626_v48 = vsel %vm6394_vm5, 0, %v6393_v21  ;;  %v2879_v7 = vsel %vm2878_vm14, %v2877_v29, 0  ;;  %v2767_v60 = vshrl.u32 %v2766_v9, 23 }
 0x274   : > { %v2627_v55 = vsub.s32 32, %v2626_v48  ;;  %v2631_v63 = vsub.s32 4294967266, %v2626_v48  ;;  %v9935_v40 = vshrl.u32 %v2879_v7, 5  ;;  %v2881_v14 = vand.u32 31, %v2879_v7 }
 0x275   : > { %v9937_v18 = vshll.u32 %v2875_v28, 8  ;;  %v9940_v42 = vadd.s32 3, %v9930_v0  ;;  %v9944_v34 = vsel %vm9776_vm13, 0, %v2746_v12  ;;  %v2628_v25 = vshll.u32 %v9861_v35, %v2626_v48 }
 0x276   : > { %v2629_v32 = vshrl.u32 %v2611_v1, %v2627_v55  ;;  %v2632_v49 = vadd.s32 127, %v2631_v63  ;;  %v6399_v46 = vadd.s32 4294967169, %v2767_v60  ;;  %v2882_v2 = vsub.s32 32, %v2881_v14 }
 0x277   : > { %v2884_v53 = vshll.u32 %v10838_v50, %v2881_v14  ;;  %vm2899_vm7 = vcmp.lt.s32.totalorder %v9935_v40, 1  ;;  %v9951_v8 = vand.u32 8388607, %v10756_v41  ;;  %v2887_v37 = vshll.u32 %v10904_v30, %v2881_v14 }
 0x278   : > { %v2630_v21 = vor.u32 %v2629_v32, %v2628_v25  ;;  %v2633_v29 = vshll.u32 %v2632_v49, 23  ;;  %v2890_v12 = vshll.u32 %v10905_v24, %v2881_v14  ;;  %v2885_v35 = vshrl.u32 %v10904_v30, %v2882_v2  ;;  %v6959_v49 = vld [vmem:[%s10641_s13 + $0x18] sm:$0xff]  }
 0x279   : > { %v2888_v20 = vshrl.u32 %v10905_v24, %v2882_v2  ;;  %v2891_v28 = vshrl.u32 %v10875_v38, %v2882_v2  ;;  %v2893_v9 = vshll.u32 %v10875_v38, %v2881_v14  ;;  %v2894_v7 = vshrl.u32 %v10876_v44, %v2882_v2  ;;  %6769 = vmatprep.subr.bf16.mxu0 %v6959_v49 }
 0x27a   : > { %v2634_v48 = vor.u32 4788187, %v2633_v29  ;;  %v2896_v60 = vshll.u32 %v10876_v44, %v2881_v14  ;;  %v2897_v1 = vshrl.u32 %v10878_v36, %v2882_v2  ;;  %v2637_v55 = vcvt.s32.f32 %v2630_v21  ;;  %6770 = vmatpush3.bf16.msra.mxu0 %v6959_v49 }
 0x27b   : > { %v2886_v63 = vor.u32 %v2885_v35, %v2884_v53  ;;  %v2889_v25 = vor.u32 %v2888_v20, %v2887_v37  ;;  %v2892_v32 = vor.u32 %v2891_v28, %v2890_v12  ;;  %v2895_v13 = vor.u32 %v2894_v7, %v2893_v9 }
 0x27c   : > { %v2635_v41 = vand.u32 2147483647, %v2634_v48  ;;  %v2898_v58 = vor.u32 %v2897_v1, %v2896_v60  ;;  %vm2902_vm13 = vcmp.lt.s32.totalorder %v9935_v40, 4  ;;  %v9966_v29 = vpop.eup %7007  ;;  %v2883_v51 = vshrl.u32 %v10838_v50, %v2882_v2 }
 0x27d   : > { %v2904_v14 = vsel %vm2902_vm13, %v2892_v32, 2102212464  ;;  %v2907_v21 = vsel %vm2899_vm7, %v2886_v63, %v2889_v25  ;;  %v2911_v53 = vsel %vm2899_vm7, %v2889_v25, %v2892_v32  ;;  %v9973_v37 = vpop.eup %7009  ;;  %vm2901_vm9 = vcmp.lt.s32.totalorder %v9935_v40, 3 }
 0x27e   : > { %v2638_v12 = vmul.f32 %v2637_v55, %v2635_v41  ;;  %v2908_v35 = vsel %vm2902_vm13, %v2895_v13, 920167782  ;;  %v2912_v20 = vsel %vm2902_vm13, %v2898_v58, 1326507024  ;;  %vm2900_vm6 = vcmp.lt.s32.totalorder %v9935_v40, 2 }
 0x27f   : > { %v2903_v2 = vsel %vm2899_vm7, %v2883_v51, %v2886_v63  ;;  %v2909_v28 = vsel %vm2901_vm9, %v2892_v32, %v2908_v35  ;;  %v2913_v9 = vsel %vm2901_vm9, %v2895_v13, %v2912_v20  ;;  %v2905_v7 = vsel %vm2901_vm9, %v2889_v25, %v2904_v14  ;;  %v1470_v63 = vpop.permute.xlu1 %1469 }
 0x280   : > { %v2639_v48 = vxor.u32 2147483648, %v2638_v12  ;;  %v2910_v60 = vsel %vm2900_vm6, %v2907_v21, %v2909_v28  ;;  %v2914_v1 = vsel %vm2900_vm6, %v2911_v53, %v2913_v9  ;;  %v11096_v51 = vsel %vm7662_vm15, %v9651_v17, %v9636_v59 }
 0x281   : > { %v9980_v22 = vmul.u32.u64.low %v9937_v18, %v2914_v1  ;;  %v9981_v33 = vmul.u32.u64.high %v9937_v18, %v2914_v1, %v9980_v22  ;;  %v9984_v41 = vmul.u32.u64.low %v9937_v18, %v2910_v60  ;;  %v9985_v55 = vmul.u32.u64.high %v9937_v18, %v2910_v60, %v9984_v41 }
 0x282   : > { %v2640_v58 = vsel %vm2557_vm3, %v2639_v48, %v2638_v12  ;;  %v1316_v13 = vsel %vm7675_vm0, %v9727_v3, %v11096_v51  ;;  %v2773_v40 = vadd.s32 1, %v6399_v46  ;;  %v2906_v25 = vsel %vm2900_vm6, %v2903_v2, %v2905_v7 }
 0x283   : > { %v2643_v22 = vsel %vm9919_vm10, %v9591_v45, %v2640_v58  ;;  %v2771_v32 = vor.u32 8388608, %v9951_v8  ;;  %v2752_v49 = vadd.s32 3, %v9944_v34  ;;  %v1403_v59 = vsel %vm7687_vm1, %v9846_v56, %v1316_v13  ;;  %v5086_v8 = vpop.f32.mrf.mxu1  ;;  %v10036_v58 = vpop.f32.mrf.mxu0 }
 0x284   : > { %7011 = vcosq.f32 %v2643_v22  ;;  %vm2774_vm3 = vcmp.gt.s32.totalorder %v2773_v40, 0  ;;  %v10007_v17 = vand.u32 3, %v9940_v42  ;;  %vm2924_vm11 = vc.u32 %v9981_v33, %v9984_v41  ;;  %11097 = vst [vmem:[#allocation28_spill] sm:$0xff] %v10036_v58 }
 0x285   : > { %7013 = vsinq.f32 %v2643_v22  ;;  %v2925_v3 = vadd.s32 1, %v9985_v55  ;;  %v1490_v46 = vsel %vm7691_vm2, %v1470_v63, %v1403_v59  ;;  %v2922_v14 = vmul.u32 %v9937_v18, %v2906_v25  ;;  %v6960_v18 = vld [vmem:[%s10641_s13 + $0x10] sm:$0xff]  }
 0x286   : > { %v2775_v21 = vsel %vm2774_vm3, %v2773_v40, 0  ;;  %v10015_v53 = vand.u32 3, %v2752_v49  ;;  %v10017_v56 = vadd.f32 %v5086_v8, %v4962_v10  ;;  %v10022_v20 = vshll.u32 %v2771_v32, 8  ;;  %6771 = vmatprep.subr.bf16.mxu0 %v6960_v18 }
 0x287   : > { %v2926_v42 = vsel %vm2924_vm11, %v2925_v3, %v9985_v55  ;;  %v10020_v12 = vshrl.u32 %v2775_v21, 5  ;;  %v2777_v35 = vand.u32 31, %v2775_v21  ;;  %v10759_v28 = vxor.u32 2147483648, %v9973_v37  ;;  %6772 = vmatpush3.bf16.msra.mxu0 %v6960_v18 }
 0x288   : > { %v2927_v2 = vadd.s32 %v2926_v42, %v2922_v14  ;;  %v10758_v9 = vxor.u32 2147483648, %v9966_v29  ;;  %v10027_v48 = vmul.f32 %v9854_v39, %v1490_v46  ;;  %vm2755_vm12 = vcmp.eq.s32.totalorder %v10015_v53, 0  ;;  %v10053_v14 = vpop.f32.mrf.mxu0 }
 0x289   : > { %v2778_v7 = vsub.s32 32, %v2777_v35  ;;  %v2780_v60 = vshll.u32 %v10838_v50, %v2777_v35  ;;  %v2783_v1 = vshll.u32 %v10904_v30, %v2777_v35  ;;  %v2786_v55 = vshll.u32 %v10905_v24, %v2777_v35 }
 0x28a   : > { %v2928_v51 = vadd.s32 536870912, %v2927_v2  ;;  %v2789_v13 = vshll.u32 %v10875_v38, %v2777_v35  ;;  %v2792_v40 = vshll.u32 %v10876_v44, %v2777_v35  ;;  %vm2795_vm8 = vcmp.lt.s32.totalorder %v10020_v12, 1 }
 0x28b   : > { %v2779_v63 = vshrl.u32 %v10838_v50, %v2778_v7  ;;  %v2781_v22 = vshrl.u32 %v10904_v30, %v2778_v7  ;;  %v2784_v25 = vshrl.u32 %v10905_v24, %v2778_v7  ;;  %v2787_v32 = vshrl.u32 %v10875_v38, %v2778_v7 }
 0x28c   : > { %v10045_v49 = vshrl.u32 %v2928_v51, 30  ;;  %v2790_v59 = vshrl.u32 %v10876_v44, %v2778_v7  ;;  %v2793_v3 = vshrl.u32 %v10878_v36, %v2778_v7  ;;  %vm2796_vm4 = vcmp.lt.s32.totalorder %v10020_v12, 2 }
 0x28d   : > { %vm2754_vm10 = vcmp.lt.s32.totalorder %v10015_v53, 2  ;;  %v2782_v10 = vor.u32 %v2781_v22, %v2780_v60  ;;  %v2785_v46 = vor.u32 %v2784_v25, %v2783_v1  ;;  %v2788_v8 = vor.u32 %v2787_v32, %v2786_v55  ;;  %v10070_v22 = vpop.f32.mrf.mxu1 }
 0x28e   : > { %vm2797_vm5 = vcmp.lt.s32.totalorder %v10020_v12, 3  ;;  %vm2651_vm14 = vcmp.eq.s32.totalorder %v10007_v17, 0  ;;  %v2930_v21 = vshll.u32 %v10045_v49, 30  ;;  %v2791_v42 = vor.u32 %v2790_v59, %v2789_v13  ;;  %11098 = vst [vmem:[#allocation50_spill] sm:$0xff] %v10070_v22 }
 0x28f   : > { %v2794_v35 = vor.u32 %v2793_v3, %v2792_v40  ;;  %vm2798_vm7 = vcmp.lt.s32.totalorder %v10020_v12, 4  ;;  %vm2650_vm13 = vcmp.lt.s32.totalorder %v10007_v17, 2  ;;  %v2799_v18 = vsel %vm2795_vm8, %v2779_v63, %v2782_v10  ;;  %v6961_v63 = vld [vmem:[%s10641_s13 + $0x8] sm:$0xff]   ;;  %v10082_v3 = vpop.f32.mrf.mxu0 }
 0x290   : > { %v2800_v7 = vsel %vm2798_vm7, %v2788_v8, 2102212464  ;;  %v2803_v60 = vsel %vm2795_vm8, %v2782_v10, %v2785_v46  ;;  %v2807_v1 = vsel %vm2795_vm8, %v2785_v46, %v2788_v8  ;;  %vm2647_vm9 = vweird.f32 %v9591_v45  ;;  %11099 = vst [vmem:[#allocation29_spill] sm:$0xff] %v10082_v3  ;;  %v6962_v10 = vld [vmem:[%s10641_s13] sm:$0xff]   ;;  %6773 = vmatprep.subr.bf16.mxu0 %v6961_v63 }
 0x291   : > { %vm2751_vm6 = vweird.f32 %v9170_v62  ;;  %v10066_v55 = vsub.s32 %v2927_v2, %v2930_v21  ;;  %v2801_v51 = vsel %vm2797_vm5, %v2785_v46, %v2800_v7  ;;  %v2804_v13 = vsel %vm2798_vm7, %v2791_v42, 920167782  ;;  %v7012_v25 = vpop.eup %7011  ;;  %6774 = vmatpush3.bf16.msra.mxu0 %v6961_v63 }
 0x292   : > { %v2808_v40 = vsel %vm2798_vm7, %v2794_v35, 1326507024  ;;  %v2802_v32 = vsel %vm2796_vm4, %v2799_v18, %v2801_v51  ;;  %v2805_v59 = vsel %vm2797_vm5, %v2788_v8, %v2804_v13  ;;  %vm2758_vm3 = vcmp.eq.s32.totalorder %v10015_v53, 2  ;;  %v7014_v46 = vpop.eup %7013  ;;  %6775 = vmatprep.subr.bf16.mxu0 %v6962_v10 }
 0x293   : > { %v2809_v2 = vsel %vm2797_vm5, %v2791_v42, %v2808_v40  ;;  %v2933_v21 = vsub.s32 0, %v10066_v55  ;;  %v2806_v35 = vsel %vm2796_vm4, %v2803_v60, %v2805_v59  ;;  %v2757_v42 = vsel %vm2755_vm12, %v9966_v29, %v10759_v28  ;;  %v10110_v59 = vpop.f32.mrf.mxu1 }
 0x294   : > { %v2810_v8 = vsel %vm2796_vm4, %v2807_v1, %v2809_v2  ;;  %v10102_v51 = vmul.u32.u64.low %v10022_v20, %v2806_v35  ;;  %v10103_v13 = vmul.u32.u64.high %v10022_v20, %v2806_v35, %v10102_v51  ;;  %v2652_v60 = vxor.u32 2147483648, %v7014_v46  ;;  %11100 = vst [vmem:[#allocation49_spill] sm:$0xff] %v10110_v59 }
 0x295   : > { %v10098_v18 = vmul.u32.u64.low %v10022_v20, %v2810_v8  ;;  %v10099_v7 = vmul.u32.u64.high %v10022_v20, %v2810_v8, %v10098_v18  ;;  %v6404_v12 = vmin.u32 %v2933_v21, %v10066_v55  ;;  %v2655_v1 = vxor.u32 2147483648, %v7012_v25  ;;  %v10117_v8 = vpop.f32.mrf.mxu0  ;;  %6776 = vmatpush3.bf16.msra.mxu0 %v6962_v10 }
 0x296   : > { %v2760_v40 = vsel %vm2758_vm3, %v10758_v9, %v9973_v37  ;;  %vm2654_vm11 = vcmp.eq.s32.totalorder %v10007_v17, 2  ;;  %v2974_v35 = vand.u32 2139095040, %v10027_v48  ;;  %v4302_v63 = vand.u32 3, %v9930_v0 }
 0x297   : > { %v2761_v2 = vsel %vm2754_vm10, %v2757_v42, %v2760_v40  ;;  %v2935_v21 = vclz %v6404_v12  ;;  %v2818_v18 = vmul.u32 %v10022_v20, %v2802_v32  ;;  %v2653_v9 = vsel %vm2651_vm14, %v7012_v25, %v2652_v60  ;;  %v10132_v40 = vpop.f32.mrf.mxu1  ;;  %v10135_v59 = vpop.f32.mrf.mxu0 }
 0x298   : > { %v2656_v28 = vsel %vm2654_vm11, %v2655_v1, %v7014_v46  ;;  %vm2820_vm12 = vc.u32 %v10099_v7, %v10102_v51  ;;  %v2821_v22 = vadd.s32 1, %v10103_v13  ;;  %v10760_v42 = vand.u32 2147483647, %v10027_v48  ;;  %11101 = vst [vmem:[#allocation13_spill] sm:$0xff] %v10132_v40  ;;  %11102 = vst [vmem:[#allocation26_spill] sm:$0xff] %v10135_v59 }
 0x299   : > { %v2657_v53 = vsel %vm2650_vm13, %v2653_v9, %v2656_v28  ;;  %v6405_v0 = vadd.s32 4294967294, %v2935_v21  ;;  %v2762_v20 = vsel %vm2751_vm6, nan, %v2761_v2  ;;  %v2975_v32 = vshrl.u32 %v2974_v35, 23 }
 0x29a   : > { %v2658_v12 = vsel %vm2647_vm9, nan, %v2657_v53  ;;  %v2822_v58 = vsel %vm2820_vm12, %v2821_v22, %v10103_v13  ;;  %vm11103_vm4 = vcmask 441344   ;;  %v2978_v10 = vand.u32 8388607, %v10760_v42  ;;  %v10140_v53 = vpop.f32.mrf.mxu1 }
 0x29b   : > { %v5406_v3 = vpack.c.bf16 %v2762_v20, %v2658_v12  ;;  %vm6406_vm8 = vcmp.lt.s32.totalorder %v6405_v0, 0  ;;  %v2823_v17 = vadd.s32 %v2822_v58, %v2818_v18  ;;  %v6407_v28 = vadd.s32 4294967169, %v2975_v32  ;;  %v10142_v20 = vpop.f32.mrf.mxu0 }
 0x29c   : > { %v2938_v9 = vsel %vm6406_vm8, 0, %v6405_v0  ;;  %vm4304_vm10 = vcmp.eq.s32.totalorder %v4302_v63, 0  ;;  %vm4307_vm5 = vcmp.eq.s32.totalorder %v4302_v63, 2  ;;  %11104 = vst [vmem:[#allocation14_spill] sm:$0xff] %v10142_v20  ;;  %v2923_v58 = vadd.s32 %v9984_v41, %v9981_v33 }
 0x29d   : > { %6738 = vmatmul.mubr.msk.bf16.gmra.mxu0 %vm11103_vm4, %v5406_v3  ;;  %v2939_v21 = vsub.s32 32, %v2938_v9  ;;  %v2943_v2 = vsub.s32 4294967266, %v2938_v9  ;;  %v2824_v35 = vadd.s32 536870912, %v2823_v17  ;;  %v2981_v22 = vadd.s32 1, %v6407_v28 }
 0x29e   : > { %v4306_v13 = vsel %vm4304_vm10, %v7012_v25, %v2652_v60  ;;  %v4309_v12 = vsel %vm4307_vm5, %v2655_v1, %v7014_v46  ;;  %v2979_v0 = vor.u32 8388608, %v2978_v10  ;;  %vm4303_vm7 = vcmp.lt.s32.totalorder %v4302_v63, 2  ;;  %v10150_v25 = vpop.f32.mrf.mxu1  ;;  %v10156_v46 = vpop.f32.mrf.mxu0 }
 0x29f   : > { %v2944_v18 = vadd.s32 127, %v2943_v2  ;;  %v10146_v3 = vshrl.u32 %v2824_v35, 30  ;;  %vm2982_vm14 = vcmp.gt.s32.totalorder %v2981_v22, 0  ;;  %v4405_v32 = vand.u32 3, %v9944_v34 }
 0x2a0   : > { %v2941_v42 = vshrl.u32 %v2923_v58, %v2939_v21  ;;  %v4310_v28 = vsel %vm4303_vm7, %v4306_v13, %v4309_v12  ;;  %v1214_v33 = vsel %vm7662_vm15, %v9819_v15, %v9666_v19  ;;  %v2983_v41 = vsel %vm2982_vm14, %v2981_v22, 0 }
 0x2a1   : > { %v2945_v59 = vshll.u32 %v2944_v18, 23  ;;  %v2826_v40 = vshll.u32 %v10146_v3, 30  ;;  %v10161_v60 = vsel %vm7675_vm0, %v9767_v16, %v1214_v33  ;;  %v2940_v34 = vshll.u32 %v10066_v55, %v2938_v9  ;;  %v10175_v16 = vpop.f32.mrf.mxu1 }
 0x2a2   : > { %v2819_v10 = vadd.s32 %v10102_v51, %v10099_v7  ;;  %v2985_v21 = vand.u32 31, %v2983_v41  ;;  %v10168_v2 = vshll.u32 %v2979_v0, 8  ;;  %v10172_v26 = vsel %vm2647_vm9, nan, %v4310_v28  ;;  %11105 = vst [vmem:[#allocation53_spill] sm:$0xff] %v10175_v16  ;;  %v10182_v51 = vpop.f32.mrf.mxu0 }
 0x2a3   : > { %v2946_v1 = vor.u32 4788187, %v2945_v59  ;;  %v10164_v63 = vsub.s32 %v2823_v17, %v2826_v40  ;;  %v2942_v19 = vor.u32 %v2941_v42, %v2940_v34  ;;  %vm4406_vm15 = vcmp.lt.s32.totalorder %v4405_v32, 2  ;;  %11107 = vst [vmem:[#allocation12_spill] sm:$0xff] %v10182_v51  ;;  %v10196_v33 = vpop.f32.mrf.mxu1 }
 0x2a4   : > { %vm4407_vm0 = vcmp.eq.s32.totalorder %v4405_v32, 0  ;;  %v10177_v15 = vshrl.u32 %v2983_v41, 5  ;;  %v2986_v55 = vsub.s32 32, %v2985_v21  ;;  %v11106_v59 = vxor.u32 2147483648, %v9973_v37  ;;  %11109 = vst [vmem:[#allocation17_spill] sm:$0xff] %v10196_v33 }
 0x2a5   : > { %v2829_v47 = vsub.s32 0, %v10164_v63  ;;  %vm4410_vm13 = vcmp.eq.s32.totalorder %v4405_v32, 2  ;;  %v2947_v45 = vand.u32 2147483647, %v2946_v1  ;;  %v2988_v42 = vshll.u32 %v10838_v50, %v2985_v21  ;;  %v10200_v1 = vpop.f32.mrf.mxu0 }
 0x2a6   : > { %v4409_v7 = vsel %vm4407_vm0, %v9966_v29, %v11106_v59  ;;  %v11108_v17 = vxor.u32 2147483648, %v9966_v29  ;;  %v2989_v35 = vshrl.u32 %v10904_v30, %v2986_v55  ;;  %v2992_v22 = vshrl.u32 %v10905_v24, %v2986_v55 }
 0x2a7   : > { %v6400_v40 = vmin.u32 %v2829_v47, %v10164_v63  ;;  %v2994_v13 = vshll.u32 %v10905_v24, %v2985_v21  ;;  %v2995_v12 = vshrl.u32 %v10875_v38, %v2986_v55  ;;  %v2991_v18 = vshll.u32 %v10904_v30, %v2985_v21 }
 0x2a8   : > { %v4412_v9 = vsel %vm4410_vm13, %v11108_v17, %v9973_v37  ;;  %v2998_v0 = vshrl.u32 %v10876_v44, %v2986_v55  ;;  %v3001_v28 = vshrl.u32 %v10878_v36, %v2986_v55  ;;  %v2990_v41 = vor.u32 %v2989_v35, %v2988_v42  ;;  %v10208_v42 = vpop.f32.mrf.mxu1 }
 0x2a9   : > { %v2831_v58 = vclz %v6400_v40  ;;  %v2996_v29 = vor.u32 %v2995_v12, %v2994_v13  ;;  %v2997_v37 = vshll.u32 %v10875_v38, %v2985_v21  ;;  %v3000_v34 = vshll.u32 %v10876_v44, %v2985_v21 }
 0x2aa   : > { %v2949_v47 = vcvt.s32.f32 %v2942_v19  ;;  %v2993_v17 = vor.u32 %v2992_v22, %v2991_v18  ;;  %v4413_v40 = vsel %vm4406_vm15, %v4409_v7, %v4412_v9  ;;  %v2987_v16 = vshrl.u32 %v10838_v50, %v2986_v55  ;;  %v5200_v55 = vpop.f32.mrf.mxu0 }
 0x2ab   : > { %v6401_v59 = vadd.s32 4294967294, %v2831_v58  ;;  %v2999_v51 = vor.u32 %v2998_v0, %v2997_v37  ;;  %v3002_v20 = vor.u32 %v3001_v28, %v3000_v34  ;;  %vm3006_vm9 = vcmp.lt.s32.totalorder %v10177_v15, 4  ;;  %v1474_v34 = vpop.permute.xlu1 %1473 }
 0x2ac   : > { %v2950_v33 = vmul.f32 %v2949_v47, %v2947_v45  ;;  %vm3003_vm11 = vcmp.lt.s32.totalorder %v10177_v15, 1  ;;  %v3008_v21 = vsel %vm3006_vm9, %v2996_v29, 2102212464  ;;  %vm3004_vm12 = vcmp.lt.s32.totalorder %v10177_v15, 2 }
 0x2ad   : > { %vm6402_vm3 = vcmp.lt.s32.totalorder %v6401_v59, 0  ;;  %vm3005_vm8 = vcmp.lt.s32.totalorder %v10177_v15, 3  ;;  %v3007_v32 = vsel %vm3003_vm11, %v2987_v16, %v2990_v41  ;;  %v3011_v22 = vsel %vm3003_vm11, %v2990_v41, %v2993_v17  ;;  %v6715_v16 = vpop.f32.mrf.mxu1 }
 0x2ae   : > { %v2834_v19 = vsel %vm6402_vm3, 0, %v6401_v59  ;;  %v3009_v35 = vsel %vm3005_vm8, %v2993_v17, %v3008_v21  ;;  %v3012_v13 = vsel %vm3006_vm9, %v2999_v51, 920167782  ;;  %v3015_v12 = vsel %vm3003_vm11, %v2993_v17, %v2996_v29  ;;  %v11110_v59 = vld [vmem:[#allocation57_spill] sm:$0xff] }
 0x2af   : > { %v2835_v7 = vsub.s32 32, %v2834_v19  ;;  %v2839_v9 = vsub.s32 4294967266, %v2834_v19  ;;  %v2836_v45 = vshll.u32 %v10164_v63, %v2834_v19  ;;  %v3016_v58 = vsel %vm3006_vm9, %v3002_v20, 1326507024 }
 0x2b0   : > { %v3013_v28 = vsel %vm3005_vm8, %v2996_v29, %v3012_v13  ;;  %v3017_v37 = vsel %vm3005_vm8, %v2999_v51, %v3016_v58  ;;  %v4414_v63 = vsel %vm2751_vm6, nan, %v4413_v40  ;;  %v1404_v20 = vsel %vm7687_vm1, %v11110_v59, %v10161_v60  ;;  %v5354_v60 = vpop.f32.mrf.mxu1  ;;  %vm11111_vm1 = vmmov %vm11103_vm4 }
 0x2b1   : > { %v2837_v18 = vshrl.u32 %v2819_v10, %v2835_v7  ;;  %v2840_v0 = vadd.s32 127, %v2839_v9  ;;  %v3014_v47 = vsel %vm3004_vm12, %v3011_v22, %v3013_v28  ;;  %v3018_v41 = vsel %vm3004_vm12, %v3015_v12, %v3017_v37  ;;  %v6698_v10 = vpop.f32.mrf.mxu0 }
 0x2b2   : > { %v10228_v51 = vmul.u32.u64.low %v10168_v2, %v3018_v41  ;;  %v10229_v21 = vmul.u32.u64.high %v10168_v2, %v3018_v41, %v10228_v51  ;;  %v10232_v19 = vmul.u32.u64.low %v10168_v2, %v3014_v47  ;;  %v10233_v7 = vmul.u32.u64.high %v10168_v2, %v3014_v47, %v10232_v19  ;;  %v6716_v15 = vpop.f32.mrf.mxu1 }
 0x2b3   : > { %v2838_v17 = vor.u32 %v2837_v18, %v2836_v45  ;;  %v2841_v29 = vshll.u32 %v2840_v0, 23  ;;  %v5584_v62 = vpack.c.bf16 %v4414_v63, %v10172_v26  ;;  %v1491_v40 = vsel %vm7691_vm2, %v1474_v34, %v1404_v20  ;;  %v5203_v45 = vpop.f32.mrf.mxu0 }
 0x2b4   : > { %v10240_v23 = vmul.f32 %v9854_v39, %v1491_v40  ;;  %v3010_v22 = vsel %vm3004_vm12, %v3007_v32, %v3009_v35  ;;  %v2951_v13 = vxor.u32 2147483648, %v2950_v33  ;;  %vm3028_vm6 = vc.u32 %v10229_v21, %v10232_v19 }
 0x2b5   : > { %v2842_v9 = vor.u32 4788187, %v2841_v29  ;;  %6762 = vmatmul.mubr.msk.bf16.gmra.mxu1 %vm11111_vm1, %v5584_v62  ;;  %v2845_v58 = vcvt.s32.f32 %v2838_v17  ;;  %v3029_v5 = vadd.s32 1, %v10233_v7  ;;  %v3026_v0 = vmul.u32 %v10168_v2, %v3010_v22  ;;  %v6701_v37 = vpop.f32.mrf.mxu0  ;;  %v5357_v62 = vpop.f32.mrf.mxu1 }
 0x2b6   : > { %v3075_v26 = vand.u32 2147483647, %v10240_v23  ;;  %v3078_v39 = vand.u32 2139095040, %v10240_v23  ;;  %vm2869_vm2 = vcmp.lt.s32.totalorder %v9857_v61, 0  ;;  %v2849_v32 = vsub.s32 4, %v10146_v3 }
 0x2b7   : > { %v2843_v12 = vand.u32 2147483647, %v2842_v9  ;;  %v3030_v35 = vsel %vm3028_vm6, %v3029_v5, %v10233_v7  ;;  %v2952_v34 = vsel %vm2869_vm2, %v2951_v13, %v2950_v33  ;;  %v5241_v2 = vadd.f32 %v10200_v1, %v9832_v6 }
 0x2b8   : > { %v3079_v28 = vshrl.u32 %v3078_v39, 23  ;;  %v3031_v41 = vadd.s32 %v3030_v35, %v3026_v0  ;;  %v3082_v59 = vand.u32 8388607, %v3075_v26  ;;  %v5239_v20 = vadd.f32 %v5200_v55, %v9844_v52  ;;  %v5216_v55 = vpop.f32.mrf.mxu0 }
 0x2b9   : > { %v2846_v18 = vmul.f32 %v2845_v58, %v2843_v12  ;;  %v11112_v17 = vand.u32 2147483647, %v9857_v61  ;;  %v11115_v51 = vand.u32 2147483647, %v9906_v54  ;;  %vm2765_vm5 = vcmp.lt.s32.totalorder %v9906_v54, 0 }
 0x2ba   : > { %v6411_v63 = vadd.s32 4294967169, %v3079_v28  ;;  %v3032_v7 = vadd.s32 536870912, %v3031_v41  ;;  %v10275_v6 = vsel %vm2765_vm5, %v2849_v32, %v10146_v3  ;;  %v10277_v1 = vadd.f32 %v6715_v16, %v5241_v2  ;;  %v6719_v32 = vpop.f32.mrf.mxu1 }
 0x2bb   : > { %v2847_v47 = vxor.u32 2147483648, %v2846_v18  ;;  %vm10263_vm4 = vcmp.le.f32.partialorder %v11112_v17, 0.7853982  ;;  %vm10269_vm10 = vcmp.le.f32.partialorder %v11115_v51, 0.7853982  ;;  %v10284_v13 = vadd.f32 %v5354_v60, %v5239_v20 }
 0x2bc   : > { %v3085_v52 = vadd.s32 1, %v6411_v63  ;;  %v2955_v9 = vsel %vm10263_vm4, %v9857_v61, %v2952_v34  ;;  %v10282_v22 = vshrl.u32 %v3032_v7, 30  ;;  %v5242_v12 = vadd.f32 %v6698_v10, %v9859_v4  ;;  %v6702_v10 = vpop.f32.mrf.mxu0 }
 0x2bd   : > { %v2848_v40 = vsel %vm2765_vm5, %v2847_v47, %v2846_v18  ;;  %v3083_v58 = vor.u32 8388608, %v3082_v59  ;;  %v5240_v5 = vadd.f32 %v5203_v45, %v9889_v31  ;;  %v5245_v3 = vadd.f32 %v6701_v37, %v9891_v27 }
 0x2be   : > { %vm3086_vm14 = vcmp.gt.s32.totalorder %v3085_v52, 0  ;;  %v2851_v16 = vsel %vm10269_vm10, %v9906_v54, %v2848_v40  ;;  %v3034_v39 = vshll.u32 %v10282_v22, 30  ;;  %v10293_v0 = vadd.f32 %v6716_v15, %v5242_v12 }
 0x2bf   : > { %v3087_v18 = vsel %vm3086_vm14, %v3085_v52, 0  ;;  %7015 = vcosq.f32 %v2955_v9  ;;  %v10295_v35 = vadd.f32 %v5357_v62, %v5240_v5  ;;  %v10297_v4 = vadd.f32 %v6719_v32, %v5245_v3 }
 0x2c0   : > { %v3089_v60 = vand.u32 31, %v3087_v18  ;;  %7017 = vsinq.f32 %v2955_v9  ;;  %v10299_v31 = vsub.s32 %v3031_v41, %v3034_v39  ;;  %v5243_v27 = vadd.f32 %v5216_v55, %v9901_v43  ;;  %v5370_v55 = vpop.f32.mrf.mxu1 }
 0x2c1   : > { %v5246_v45 = vadd.f32 %v6702_v10, %v9908_v57  ;;  %7019 = vcosq.f32 %v2851_v16  ;;  %v3088_v28 = vshrl.u32 %v3087_v18, 5  ;;  %v10303_v15 = vshll.u32 %v3083_v58, 8 }
 0x2c2   : > { %v3090_v37 = vsub.s32 32, %v3089_v60  ;;  %v3037_v34 = vsub.s32 0, %v10299_v31  ;;  %v3092_v47 = vshll.u32 %v10838_v50, %v3089_v60  ;;  %v3095_v63 = vshll.u32 %v10904_v30, %v3089_v60  ;;  %v6720_v18 = vpop.f32.mrf.mxu1 }
 0x2c3   : > { %v3098_v59 = vshll.u32 %v10905_v24, %v3089_v60  ;;  %v3101_v57 = vshll.u32 %v10875_v38, %v3089_v60  ;;  %v3104_v51 = vshll.u32 %v10876_v44, %v3089_v60  ;;  %7021 = vsinq.f32 %v2851_v16 }
 0x2c4   : > { %v3093_v41 = vshrl.u32 %v10904_v30, %v3090_v37  ;;  %v3096_v2 = vshrl.u32 %v10905_v24, %v3090_v37  ;;  %v3099_v43 = vshrl.u32 %v10875_v38, %v3090_v37  ;;  %v6408_v20 = vmin.u32 %v3037_v34, %v10299_v31 }
 0x2c5   : > { %v3102_v17 = vshrl.u32 %v10876_v44, %v3090_v37  ;;  %v3105_v7 = vshrl.u32 %v10878_v36, %v3090_v37  ;;  %vm3107_vm7 = vcmp.lt.s32.totalorder %v3088_v28, 1  ;;  %vm3108_vm15 = vcmp.lt.s32.totalorder %v3088_v28, 2 }
 0x2c6   : > { %v3094_v62 = vor.u32 %v3093_v41, %v3092_v47  ;;  %v3097_v40 = vor.u32 %v3096_v2, %v3095_v63  ;;  %v3100_v52 = vor.u32 %v3099_v43, %v3098_v59  ;;  %v3039_v30 = vclz %v6408_v20  ;;  %v5219_v41 = vpop.f32.mrf.mxu0 }
 0x2c7   : > { %v3103_v9 = vor.u32 %v3102_v17, %v3101_v57  ;;  %v3106_v24 = vor.u32 %v3105_v7, %v3104_v51  ;;  %vm3110_vm0 = vcmp.lt.s32.totalorder %v3088_v28, 4  ;;  %vm3109_vm13 = vcmp.lt.s32.totalorder %v3088_v28, 3  ;;  %v5373_v51 = vpop.f32.mrf.mxu1 }
 0x2c8   : > { %v3115_v38 = vsel %vm3107_vm7, %v3094_v62, %v3097_v40  ;;  %v3119_v12 = vsel %vm3107_vm7, %v3097_v40, %v3100_v52  ;;  %v6409_v58 = vadd.s32 4294967294, %v3039_v30  ;;  %v3112_v36 = vsel %vm3110_vm0, %v3100_v52, 2102212464 }
 0x2c9   : > { %v3116_v44 = vsel %vm3110_vm0, %v3103_v9, 920167782  ;;  %v3120_v5 = vsel %vm3110_vm0, %v3106_v24, 1326507024  ;;  %v10321_v39 = vadd.f32 %v5370_v55, %v5243_v27  ;;  %v3091_v32 = vshrl.u32 %v10838_v50, %v3090_v37 }
 0x2ca   : > { %v3117_v3 = vsel %vm3109_vm13, %v3100_v52, %v3116_v44  ;;  %v3121_v16 = vsel %vm3109_vm13, %v3103_v9, %v3120_v5  ;;  %vm6410_vm9 = vcmp.lt.s32.totalorder %v6409_v58, 0  ;;  %v10330_v59 = vadd.f32 %v6720_v18, %v5246_v45 }
 0x2cb   : > { %v3118_v60 = vsel %vm3108_vm15, %v3115_v38, %v3117_v3  ;;  %v3122_v10 = vsel %vm3108_vm15, %v3119_v12, %v3121_v16  ;;  %v3042_v34 = vsel %vm6410_vm9, 0, %v6409_v58  ;;  %v3111_v43 = vsel %vm3107_vm7, %v3091_v32, %v3094_v62 }
 0x2cc   : > { %v10327_v47 = vmul.u32.u64.low %v10303_v15, %v3122_v10  ;;  %v10328_v63 = vmul.u32.u64.high %v10303_v15, %v3122_v10, %v10327_v47  ;;  %v10332_v2 = vpop.eup %7015  ;;  %v3047_v27 = vsub.s32 4294967266, %v3042_v34  ;;  %v3113_v57 = vsel %vm3109_vm13, %v3097_v40, %v3112_v36 }
 0x2cd   : > { %v5244_v50 = vadd.f32 %v5219_v41, %v10017_v56  ;;  %v10337_v37 = vpop.eup %7017  ;;  %v10340_v20 = vmul.u32.u64.low %v10303_v15, %v3118_v60  ;;  %v10341_v17 = vmul.u32.u64.high %v10303_v15, %v3118_v60, %v10340_v20  ;;  %v2852_v45 = vsel %vm10269_vm10, 0, %v10275_v6 }
 0x2ce   : > { %v10347_v7 = vpop.eup %7019  ;;  %v3048_v52 = vadd.s32 127, %v3047_v27  ;;  %v3043_v40 = vsub.s32 32, %v3042_v34  ;;  %v3114_v56 = vsel %vm3108_vm15, %v3111_v43, %v3113_v57  ;;  %v2856_v55 = vadd.s32 3, %v2852_v45 }
 0x2cf   : > { %v10349_v62 = vadd.f32 %v5373_v51, %v5244_v50  ;;  %vm3132_vm3 = vc.u32 %v10328_v63, %v10340_v20  ;;  %v3027_v30 = vadd.s32 %v10232_v19, %v10229_v21  ;;  %v3133_v24 = vadd.s32 1, %v10341_v17 }
 0x2d0   : > { %v3049_v9 = vshll.u32 %v3048_v52, 23  ;;  %v7022_v33 = vpop.eup %7021  ;;  %v3130_v6 = vmul.u32 %v10303_v15, %v3114_v56  ;;  %v2953_v38 = vsub.s32 4, %v10045_v49  ;;  %v2857_v44 = vand.u32 3, %v2856_v55 }
 0x2d1   : > { %v3045_v12 = vshrl.u32 %v3027_v30, %v3043_v40  ;;  %v3134_v58 = vsel %vm3132_vm3, %v3133_v24, %v10341_v17  ;;  %v3044_v5 = vshll.u32 %v10299_v31, %v3042_v34  ;;  %v2860_v3 = vxor.u32 2147483648, %v7022_v33 }
 0x2d2   : > { %v3135_v28 = vadd.s32 %v3134_v58, %v3130_v6  ;;  %v3050_v36 = vor.u32 4788187, %v3049_v9  ;;  %v2863_v16 = vxor.u32 2147483648, %v10347_v7  ;;  %v2954_v19 = vsel %vm2869_vm2, %v2953_v38, %v10045_v49 }
 0x2d3   : > { %v3046_v18 = vor.u32 %v3045_v12, %v3044_v5  ;;  %vm2859_vm11 = vcmp.eq.s32.totalorder %v2857_v44, 0  ;;  %vm2862_vm12 = vcmp.eq.s32.totalorder %v2857_v44, 2  ;;  %v2956_v32 = vsel %vm10263_vm4, 0, %v2954_v19 }
 0x2d4   : > { %v3136_v21 = vadd.s32 536870912, %v3135_v28  ;;  %v3051_v60 = vand.u32 2147483647, %v3050_v36  ;;  %v2861_v31 = vsel %vm2859_vm11, %v10347_v7, %v2860_v3  ;;  %v2864_v10 = vsel %vm2862_vm12, %v2863_v16, %v7022_v33 }
 0x2d5   : > { %v2960_v34 = vadd.s32 3, %v2956_v32  ;;  %v2964_v41 = vxor.u32 2147483648, %v10337_v37  ;;  %v3053_v27 = vcvt.s32.f32 %v3046_v18  ;;  %vm2858_vm8 = vcmp.lt.s32.totalorder %v2857_v44, 2 }
 0x2d6   : > { %v10365_v15 = vshrl.u32 %v3136_v21, 30  ;;  %v2865_v57 = vsel %vm2858_vm8, %v2861_v31, %v2864_v10  ;;  %v2967_v50 = vxor.u32 2147483648, %v10332_v2  ;;  %vm2855_vm1 = vweird.f32 %v9906_v54  ;;  %v11119_v54 = vld [vmem:[#allocation23_spill] sm:$0xff] }
 0x2d7   : > { %v2961_v49 = vand.u32 3, %v2960_v34  ;;  %v3054_v17 = vmul.f32 %v3053_v27, %v3051_v60  ;;  %v4508_v52 = vand.u32 3, %v2852_v45  ;;  %v2866_v40 = vsel %vm2855_vm1, nan, %v2865_v57  ;;  %v11120_v31 = vld [vmem:[#allocation15_spill] sm:$0xff] }
 0x2d8   : > { %v3138_v47 = vshll.u32 %v10365_v15, 30  ;;  %v4611_v55 = vand.u32 3, %v2956_v32  ;;  %vm2959_vm10 = vweird.f32 %v9857_v61  ;;  %vm11118_vm13 = vcmask 441344   ;;  %v11121_v10 = vld [vmem:[#allocation31_spill] sm:$0xff] }
 0x2d9   : > { %vm2963_vm6 = vcmp.eq.s32.totalorder %v2961_v49, 0  ;;  %vm2966_vm2 = vcmp.eq.s32.totalorder %v2961_v49, 2  ;;  %vm2962_vm4 = vcmp.lt.s32.totalorder %v2961_v49, 2  ;;  %vm4510_vm5 = vcmp.eq.s32.totalorder %v4508_v52, 0  ;;  %vm11125_vm8 = vmmov %vm11118_vm13 }
 0x2da   : > { %v3139_v43 = vsub.s32 %v3135_v28, %v3138_v47  ;;  %v2965_v51 = vsel %vm2963_vm6, %v10332_v2, %v2964_v41  ;;  %v2968_v56 = vsel %vm2966_vm2, %v2967_v50, %v10337_v37  ;;  %vm4509_vm14 = vcmp.lt.s32.totalorder %v4508_v52, 2 }
 0x2db   : > { %v2969_v9 = vsel %vm2962_vm4, %v2965_v51, %v2968_v56  ;;  %v4512_v6 = vsel %vm4510_vm5, %v10347_v7, %v2860_v3  ;;  %vm4513_vm7 = vcmp.eq.s32.totalorder %v4508_v52, 2  ;;  %vm4613_vm15 = vcmp.eq.s32.totalorder %v4611_v55, 0  ;;  %v11127_v56 = vld [vmem:[#allocation18_spill] sm:$0xff] }
 0x2dc   : > { %v3141_v29 = vsub.s32 0, %v3139_v43  ;;  %v2970_v24 = vsel %vm2959_vm10, nan, %v2969_v9  ;;  %v4515_v12 = vsel %vm4513_vm7, %v2863_v16, %v7022_v33  ;;  %v3055_v58 = vxor.u32 2147483648, %v3054_v17  ;;  %v10388_v33 = vpop.f32.mrf.mxu0 }
 0x2dd   : > { %v5407_v38 = vpack.c.bf16 %v2970_v24, %v2866_v40  ;;  %v4516_v28 = vsel %vm4509_vm14, %v4512_v6, %v4515_v12  ;;  %v4615_v44 = vsel %vm4613_vm15, %v10332_v2, %v2964_v41  ;;  %vm4616_vm0 = vcmp.eq.s32.totalorder %v4611_v55, 2  ;;  %v11126_v40 = vld [vmem:[#allocation6_spill] sm:$0xff]  ;;  %v11128_v24 = vld [vmem:[#allocation49_spill] sm:$0xff] }
 0x2de   : > { %v6412_v30 = vmin.u32 %v3141_v29, %v3139_v43  ;;  %v4517_v36 = vsel %vm2855_vm1, nan, %v4516_v28  ;;  %vm4612_vm9 = vcmp.lt.s32.totalorder %v4611_v55, 2  ;;  %v4618_v21 = vsel %vm4616_vm0, %v2967_v50, %v10337_v37 }
 0x2df   : > { %6741 = vmatprep.mubr.msk.bf16.mxu0 %vm11118_vm13, %v5407_v38  ;;  %v4619_v7 = vsel %vm4612_vm9, %v4615_v44, %v4618_v21  ;;  %vm2973_vm3 = vcmp.lt.s32.totalorder %v10027_v48, 0  ;;  %v5036_v18 = vadd.f32 %v11119_v54, %v9569_v11  ;;  %v3131_v37 = vadd.s32 %v10340_v20, %v10328_v63  ;;  %v5500_v20 = vpop.f32.mrf.mxu0  ;;  %v11133_v54 = vld [vmem:[#allocation45_spill] sm:$0xff] }
 0x2e0   : > { %v3143_v45 = vclz %v6412_v30  ;;  %v4620_v3 = vsel %vm2959_vm10, nan, %v4619_v7  ;;  %v3056_v2 = vsel %vm2973_vm3, %v3055_v58, %v3054_v17  ;;  %v5039_v34 = vadd.f32 %v11121_v10, %v11120_v31  ;;  %v10411_v17 = vpop.f32.mrf.mxu1 }
 0x2e1   : > { %v5585_v19 = vpack.c.bf16 %v4620_v3, %v4517_v36  ;;  %v11122_v47 = vand.u32 2147483647, %v10027_v48  ;;  %v5231_v49 = vadd.f32 %v10053_v14, %v5036_v18  ;;  %v6732_v52 = vpop.f32.mrf.mxu0  ;;  %v5044_v55 = vadd.f32 %v11127_v56, %v11126_v40  ;;  %v11129_v14 = vld [vmem:[#allocation3_spill] sm:$0xff]  ;;  %v11131_v36 = vld [vmem:[#allocation28_spill] sm:$0xff]  ;;  %v11132_v3 = vld [vmem:[#allocation13_spill] sm:$0xff] }
 0x2e2   : > { %v6413_v5 = vadd.s32 4294967294, %v3143_v45  ;;  %v5232_v29 = vadd.f32 %v10117_v8, %v5039_v34  ;;  %v11130_v45 = vld [vmem:[#allocation29_spill] sm:$0xff]  ;;  %v5676_v12 = vpop.f32.mrf.mxu1  ;;  %v3161_v8 = vsub.s32 4, %v10365_v15  ;;  %v11134_v18 = vld [vmem:[#allocation4_spill] sm:$0xff]  ;;  %vm3077_vm1 = vcmp.lt.s32.totalorder %v10240_v23, 0 }
 0x2e3   : > { %vm10402_vm12 = vcmp.le.f32.partialorder %v11122_v47, 0.7853982  ;;  %6765 = vmatprep.mubr.msk.bf16.mxu1 %vm11125_vm8, %v5585_v19  ;;  %v5385_v6 = vadd.f32 %v11128_v24, %v5231_v49  ;;  %v5234_v38 = vadd.f32 %v11130_v45, %v11129_v14  ;;  %v5503_v44 = vpop.f32.mrf.mxu0  ;;  %v5233_v21 = vadd.f32 %v11131_v36, %v5044_v55  ;;  %v11145_v45 = vld [vmem:[#allocation12_spill] sm:$0xff] }
 0x2e4   : > { %vm6414_vm11 = vcmp.lt.s32.totalorder %v6413_v5, 0  ;;  %v3059_v11 = vsel %vm10402_vm12, %v10027_v48, %v3056_v2  ;;  %v5386_v58 = vadd.f32 %v10140_v53, %v5232_v29  ;;  %v6756_v19 = vpop.f32.mrf.mxu1  ;;  %v11135_v53 = vld [vmem:[#allocation39_spill] sm:$0xff]  ;;  %vm10434_vm6 = vcmp.le.f32.partialorder %v3075_v26, 0.7853982 }
 0x2e5   : > { %v3146_v16 = vsel %vm6414_vm11, 0, %v6413_v5  ;;  %7023 = vcosq.f32 %v3059_v11  ;;  %v5388_v2 = vadd.f32 %v11132_v3, %v5234_v38  ;;  %v3162_v34 = vsel %vm3077_vm1, %v3161_v8, %v10365_v15 }
 0x2e6   : > { %v3147_v32 = vsub.s32 32, %v3146_v16  ;;  %v3151_v60 = vsub.s32 4294967266, %v3146_v16  ;;  %v3148_v41 = vshll.u32 %v3139_v43, %v3146_v16  ;;  %7025 = vsinq.f32 %v3059_v11  ;;  %v11139_v11 = vld [vmem:[#allocation2_spill] sm:$0xff]  ;;  %v5679_v40 = vpop.f32.mrf.mxu1 }
 0x2e7   : > { %v3057_v43 = vsub.s32 4, %v10282_v22  ;;  %v5563_v16 = vadd.f32 %v5500_v20, %v5385_v6  ;;  %v5564_v31 = vadd.f32 %v5503_v44, %v5386_v58  ;;  %v11142_v20 = vld [vmem:[#allocation7_spill] sm:$0xff]  ;;  %v3164_v55 = vsel %vm10434_vm6, 0, %v3162_v34  ;;  %v11144_v6 = vld [vmem:[#allocation14_spill] sm:$0xff] }
 0x2e8   : > { %v3149_v27 = vshrl.u32 %v3131_v37, %v3147_v32  ;;  %v3152_v63 = vadd.s32 127, %v3151_v60  ;;  %v5063_v37 = vadd.f32 %v11134_v18, %v11133_v54  ;;  %v11136_v32 = vld [vmem:[#allocation26_spill] sm:$0xff]  ;;  %vm3063_vm2 = vweird.f32 %v10027_v48 }
 0x2e9   : > { %v3058_v5 = vsel %vm2973_vm3, %v3057_v43, %v10282_v22  ;;  %v5237_v60 = vadd.f32 %v11136_v32, %v11135_v53  ;;  %v5739_v29 = vadd.f32 %v5676_v12, %v5563_v16  ;;  %v5740_v15 = vadd.f32 %v5679_v40, %v5564_v31  ;;  %v10459_v12 = vld [vmem:[%s10640_s12] ss:$0 sm:$0xff] }
 0x2ea   : > { %v3150_v57 = vor.u32 %v3149_v27, %v3148_v41  ;;  %v3153_v50 = vshll.u32 %v3152_v63, 23  ;;  %v3060_v47 = vsel %vm10402_vm12, 0, %v3058_v5  ;;  %v11140_v41 = vld [vmem:[#allocation47_spill] sm:$0xff]  ;;  %v11141_v63 = vld [vmem:[#allocation5_spill] sm:$0xff]  ;;  %vm3167_vm5 = vweird.f32 %v10240_v23 }
 0x2eb   : > { %v5052_v27 = vadd.f32 %v11140_v41, %v11139_v11  ;;  %v5055_v49 = vadd.f32 %v11142_v20, %v11141_v63  ;;  %v3064_v56 = vadd.s32 3, %v3060_v47  ;;  %v11146_v5 = vld [vmem:[#allocation17_spill] sm:$0xff] }
 0x2ec   : > { %v3154_v51 = vor.u32 4788187, %v3153_v50  ;;  %v3157_v9 = vcvt.s32.f32 %v3150_v57  ;;  %v11143_v57 = vld [vmem:[#allocation50_spill] sm:$0xff] }
 0x2ed   : > { %v5387_v50 = vadd.f32 %v11143_v57, %v5233_v21  ;;  %v5235_v14 = vadd.f32 %v11144_v6, %v5052_v27  ;;  %v5236_v38 = vadd.f32 %v11145_v45, %v5055_v49  ;;  %v3065_v44 = vand.u32 3, %v3064_v56 }
 0x2ee   : > { %v3155_v30 = vand.u32 2147483647, %v3154_v51  ;;  %v5566_v51 = vadd.f32 %v6732_v52, %v5388_v2  ;;  %v11147_v2 = vld [vmem:[#allocation53_spill] sm:$0xff] }
 0x2ef   : > { %v5565_v52 = vadd.f32 %v10388_v33, %v5387_v50  ;;  %v5389_v16 = vadd.f32 %v11147_v2, %v5235_v14  ;;  %v5390_v54 = vadd.f32 %v10208_v42, %v5236_v38  ;;  %vm3067_vm4 = vcmp.eq.s32.totalorder %v3065_v44, 0 }
 0x2f0   : > { %v3158_v28 = vmul.f32 %v3157_v9, %v3155_v30  ;;  %v5391_v30 = vadd.f32 %v10150_v25, %v5237_v60  ;;  %v5238_v9 = vadd.f32 %v10156_v46, %v5063_v37  ;;  %v5742_v8 = vadd.f32 %v6756_v19, %v5566_v51 }
 0x2f1   : > { %v3168_v25 = vadd.s32 3, %v3164_v55  ;;  %v10465_v46 = vadd.f32 %v10459_v12, %v5740_v15  ;;  %v10471_v18 = vadd.f32 %v10411_v17, %v5565_v52  ;;  %v4714_v37 = vand.u32 3, %v3060_v47 }
 0x2f2   : > { %v3159_v7 = vxor.u32 2147483648, %v3158_v28  ;;  %v7024_v43 = vpop.eup %7023  ;;  %v5392_v36 = vadd.f32 %v11146_v5, %v5238_v9  ;;  %v10475_v53 = vadd.f32 %v10459_v12, %v5742_v8  ;;  %v4817_v60 = vand.u32 3, %v3164_v55 }
 0x2f3   : > { %v7026_v24 = vpop.eup %7025  ;;  %v3071_v3 = vxor.u32 2147483648, %v7024_v43  ;;  %v3169_v32 = vand.u32 3, %v3168_v25  ;;  %v5779_v31 = vmax.f32 %v10465_v46, 0.0  ;;  %vm3070_vm10 = vcmp.eq.s32.totalorder %v3065_v44, 2 }
 0x2f4   : > { %v3160_v10 = vsel %vm3077_vm1, %v3159_v7, %v3158_v28  ;;  %v10462_v28 = vadd.f32 %v10459_v12, %v5739_v29  ;;  %v3068_v33 = vxor.u32 2147483648, %v7026_v24  ;;  %vm3066_vm14 = vcmp.lt.s32.totalorder %v3065_v44, 2 }
 0x2f5   : > { %v3163_v26 = vsel %vm10434_vm6, %v10240_v23, %v3160_v10  ;;  %v3072_v17 = vsel %vm3070_vm10, %v3071_v3, %v7026_v24  ;;  %vm4715_vm7 = vcmp.lt.s32.totalorder %v4714_v37, 2  ;;  %vm4716_vm15 = vcmp.eq.s32.totalorder %v4714_v37, 0 }
 0x2f6   : > { %7027 = vcosq.f32 %v3163_v26  ;;  %v5778_v19 = vmax.f32 %v10462_v28, 0.0  ;;  %v3069_v34 = vsel %vm3067_vm4, %v7024_v43, %v3068_v33  ;;  %vm4719_vm0 = vcmp.eq.s32.totalorder %v4714_v37, 2 }
 0x2f7   : > { %7029 = vsinq.f32 %v3163_v26  ;;  %vm3170_vm13 = vcmp.lt.s32.totalorder %v3169_v32, 2  ;;  %v4718_v41 = vsel %vm4716_vm15, %v7024_v43, %v3068_v33  ;;  %v4721_v27 = vsel %vm4719_vm0, %v3071_v3, %v7026_v24 }
 0x2f8   : > { %vm4818_vm9 = vcmp.lt.s32.totalorder %v4817_v60, 2  ;;  %v3073_v57 = vsel %vm3066_vm14, %v3069_v34, %v3072_v17  ;;  %vm3171_vm3 = vcmp.eq.s32.totalorder %v3169_v32, 0  ;;  %vm3174_vm11 = vcmp.eq.s32.totalorder %v3169_v32, 2  ;;  %v6966_v32 = vld [vmem:[%s10643_s15] sm:$0xff]  }
 0x2f9   : > { %vm4819_vm12 = vcmp.eq.s32.totalorder %v4817_v60, 0  ;;  %vm4822_vm8 = vcmp.eq.s32.totalorder %v4817_v60, 2  ;;  %v3074_v55 = vsel %vm3063_vm2, nan, %v3073_v57  ;;  %vm5841_vm1 = vcmask 523264  }
 0x2fa   : > { %v6735_v61 = vpop.f32.mrf.mxu0  ;;  %v5764_v3 = vadd.f32 %v10459_v12, %v10471_v18  ;;  %vm11148_vm6 = vcmask 441344   ;;  %v5781_v23 = vmax.f32 %v10475_v53, 0.0  ;;  %v6963_v18 = vld [vmem:[%s10643_s15 + $0x18] sm:$0xff]   ;;  %v6965_v53 = vld [vmem:[%s10643_s15 + $0x8] sm:$0xff]  }
 0x2fb   : > { %v5569_v21 = vadd.f32 %v6735_v61, %v5391_v30  ;;  %v4722_v61 = vsel %vm4715_vm7, %v4718_v41, %v4721_v27  ;;  %vm11149_vm4 = vmmov %vm11148_vm6  ;;  %6793 = vmatprep.subr.bf16.mxu1 %v6963_v18 }
 0x2fc   : > { %v5516_v58 = vpop.f32.mrf.mxu0  ;;  %v4723_v25 = vsel %vm3063_vm2, nan, %v4722_v61  ;;  %6794 = vmatpush3.bf16.msra.mxu1 %v6963_v18  ;;  %vm11150_vm2 = vcmask 23552  }
 0x2fd   : > { %v5567_v20 = vadd.f32 %v5516_v58, %v5389_v16  ;;  %v5780_v16 = vmax.f32 %v5764_v3, 0.0  ;;  %vm11151_vm10 = vmmov %vm11150_vm2 }
 0x2fe   : > { %v6736_v7 = vpop.f32.mrf.mxu0  ;;  %vm11153_vm14 = vmmov %vm11150_vm2 }
 0x2ff   : > { %v5570_v42 = vadd.f32 %v6736_v7, %v5392_v36  ;;  %v5794_v7 = vpack.c.bf16 %v5779_v31, %v5778_v19  ;;  %v5795_v37 = vpack.c.bf16 %v5781_v23, %v5780_v16  ;;  %v6964_v19 = vld [vmem:[%s10643_s15 + $0x10] sm:$0xff]   ;;  %vm11154_vm7 = vmmov %vm11150_vm2 }
 0x300   : > { %v5519_v47 = vpop.f32.mrf.mxu0  ;;  %6795 = vmatprep.subr.bf16.mxu1 %v6964_v19  ;;  %vm11155_vm15 = vmmov %vm11150_vm2 }
 0x301   : > { %v6759_v22 = vpop.f32.mrf.mxu1  ;;  %v5568_v50 = vadd.f32 %v5519_v47, %v5390_v54  ;;  %6796 = vmatpush3.bf16.msra.mxu1 %v6964_v19  ;;  %vm11156_vm0 = vmmov %vm11150_vm2 }
 0x302   : > { %v5745_v10 = vadd.f32 %v6759_v22, %v5569_v21  ;;  %6797 = vmatprep.subr.bf16.mxu1 %v6965_v53 }
 0x303   : > { %v5692_v11 = vpop.f32.mrf.mxu1  ;;  %v7028_v63 = vpop.eup %7027 }
 0x304   : > { %v7030_v26 = vpop.eup %7029  ;;  %v5768_v29 = vadd.f32 %v10459_v12, %v5745_v10  ;;  %v3175_v40 = vxor.u32 2147483648, %v7028_v63  ;;  %v5743_v24 = vadd.f32 %v5692_v11, %v5567_v20 }
 0x305   : > { %v6760_v49 = vpop.f32.mrf.mxu1  ;;  %v3172_v15 = vxor.u32 2147483648, %v7030_v26  ;;  %6798 = vmatpush3.bf16.msra.mxu1 %v6965_v53 }
 0x306   : > { %v5746_v51 = vadd.f32 %v6760_v49, %v5570_v42  ;;  %v3176_v43 = vsel %vm3174_vm11, %v3175_v40, %v7030_v26  ;;  %v4824_v30 = vsel %vm4822_vm8, %v3175_v40, %v7030_v26  ;;  %v5784_v38 = vmax.f32 %v5768_v29, 0.0  ;;  %6799 = vmatprep.subr.bf16.mxu1 %v6966_v32  ;;  %vm11160_vm11 = vmmov %vm11156_vm0 }
 0x307   : > { %v5695_v9 = vpop.f32.mrf.mxu1  ;;  %v3173_v6 = vsel %vm3171_vm3, %v7028_v63, %v3172_v15  ;;  %v4821_v14 = vsel %vm4819_vm12, %v7028_v63, %v3172_v15  ;;  %v5766_v33 = vadd.f32 %v10459_v12, %v5743_v24  ;;  %vm11159_vm3 = vmmov %vm11156_vm0 }
 0x308   : > { %v5769_v56 = vadd.f32 %v10459_v12, %v5746_v51  ;;  %v5744_v45 = vadd.f32 %v5695_v9, %v5568_v50  ;;  %v3177_v58 = vsel %vm3170_vm13, %v3173_v6, %v3176_v43  ;;  %v4825_v28 = vsel %vm4818_vm9, %v4821_v14, %v4824_v30  ;;  %vm11157_vm13 = vmmov %vm11156_vm0 }
 0x309   : > { %v3178_v8 = vsel %vm3167_vm5, nan, %v3177_v58  ;;  %v4826_v46 = vsel %vm3167_vm5, nan, %v4825_v28  ;;  %v5782_v2 = vmax.f32 %v5766_v33, 0.0  ;;  %6800 = vmatpush3.bf16.msra.mxu1 %v6966_v32  ;;  %vm11152_vm5 = vmmov %vm11150_vm2 }
 0x30a   : > { %v5785_v52 = vmax.f32 %v5769_v56, 0.0  ;;  %v5767_v44 = vadd.f32 %v10459_v12, %v5744_v45  ;;  %v5408_v36 = vpack.c.bf16 %v3178_v8, %v3074_v55  ;;  %v5586_v21 = vpack.c.bf16 %v4826_v46, %v4723_v25  ;;  %vm11158_vm9 = vmmov %vm11156_vm0 }
 0x30b   : > { %vm11161_vm12 = vmmov %vm11156_vm0 }
 0x30c   : > { %v5797_v5 = vpack.c.bf16 %v5785_v52, %v5784_v38  ;;  %6742 = vmatmul.mubr.msk.bf16.gmra.mxu0 %vm11148_vm6, %v5408_v36  ;;  %6766 = vmatmul.mubr.msk.bf16.gmra.mxu1 %vm11149_vm4, %v5586_v21  ;;  %v5783_v48 = vmax.f32 %v5767_v44, 0.0  ;;  %vm11162_vm8 = vmmov %vm11156_vm0 }
 0x30d   : > { %6777 = vmatprep.mubr.msk.bf16.mxu0 %vm5841_vm1, %v5794_v7  ;;  %vm11164_vm6 = vmmov %vm11156_vm0 }
 0x30e   : > { %v5796_v54 = vpack.c.bf16 %v5783_v48, %v5782_v2  ;;  %vm11165_vm4 = vmmov %vm11156_vm0 }
 0x314   : > { %6778 = vmatmul.mubr.msk.bf16.vlgmr.msra.gmra.mxu0 %vm5841_vm1, %v5795_v37 }
 0x315   : > { %6781 = vmatprep.mubr.msk.bf16.mxu0 %vm5841_vm1, %v5796_v54 }
 0x31c   : > { %6782 = vmatmul.mubr.msk.bf16.gmra.mxu0 %vm5841_vm1, %v5797_v5 }
 0x35d   : > { %v6739_v60 = vpop.f32.mrf.mxu0 }
 0x35e   : > { %v5573_v10 = vadd.f32 %v6739_v60, %v10277_v1 }
 0x35f   : > { %v5532_v31 = vpop.f32.mrf.mxu0 }
 0x360   : > { %v5571_v42 = vadd.f32 %v5532_v31, %v10284_v13 }
 0x361   : > { %v6740_v22 = vpop.f32.mrf.mxu0 }
 0x362   : > { %v5574_v11 = vadd.f32 %v6740_v22, %v10293_v0 }
 0x363   : > { %v5535_v17 = vpop.f32.mrf.mxu0 }
 0x364   : > { %v5572_v63 = vadd.f32 %v5535_v17, %v10295_v35 }
 0x375   : > { %v6763_v34 = vpop.f32.mrf.mxu1 }
 0x376   : > { %v5749_v47 = vadd.f32 %v6763_v34, %v5573_v10 }
 0x377   : > { %v5708_v41 = vpop.f32.mrf.mxu1 }
 0x378   : > { %v5747_v27 = vadd.f32 %v5708_v41, %v5571_v42  ;;  %v5772_v49 = vadd.f32 %v10459_v12, %v5749_v47 }
 0x379   : > { %v6764_v20 = vpop.f32.mrf.mxu1 }
 0x37a   : > { %v5750_v57 = vadd.f32 %v6764_v20, %v5574_v11  ;;  %v5770_v26 = vadd.f32 %v10459_v12, %v5747_v27  ;;  %v5788_v13 = vmax.f32 %v5772_v49, 0.0 }
 0x37b   : > { %v5711_v50 = vpop.f32.mrf.mxu1 }
 0x37c   : > { %v5773_v1 = vadd.f32 %v10459_v12, %v5750_v57  ;;  %v5748_v29 = vadd.f32 %v5711_v50, %v5572_v63  ;;  %v5786_v15 = vmax.f32 %v5770_v26, 0.0 }
 0x37e   : > { %v5789_v51 = vmax.f32 %v5773_v1, 0.0  ;;  %v5771_v40 = vadd.f32 %v10459_v12, %v5748_v29 }
 0x380   : > { %v5799_v0 = vpack.c.bf16 %v5789_v51, %v5788_v13  ;;  %v5787_v61 = vmax.f32 %v5771_v40, 0.0 }
 0x382   : > { %v5798_v56 = vpack.c.bf16 %v5787_v61, %v5786_v15 }
 0x384   : > { %6785 = vmatprep.mubr.msk.bf16.mxu0 %vm5841_vm1, %v5798_v56 }
 0x385   : > { %6786 = vmatmul.mubr.msk.bf16.gmra.mxu0 %vm5841_vm1, %v5799_v0 }
 0x3cc   : > { %v6743_v35 = vpop.f32.mrf.mxu0  ;;  %v6767_v55 = vpop.f32.mrf.mxu1 }
 0x3cd   : > { %v5577_v43 = vadd.f32 %v6743_v35, %v10297_v4 }
 0x3ce   : > { %v5548_v30 = vpop.f32.mrf.mxu0  ;;  %v5724_v9 = vpop.f32.mrf.mxu1 }
 0x3cf   : > { %v5753_v24 = vadd.f32 %v6767_v55, %v5577_v43  ;;  %v5575_v6 = vadd.f32 %v5548_v30, %v10321_v39 }
 0x3d0   : > { %v6744_v14 = vpop.f32.mrf.mxu0  ;;  %v6768_v45 = vpop.f32.mrf.mxu1 }
 0x3d1   : > { %v5751_v38 = vadd.f32 %v5724_v9, %v5575_v6  ;;  %v5578_v52 = vadd.f32 %v6744_v14, %v10330_v59  ;;  %v5776_v28 = vadd.f32 %v10459_v12, %v5753_v24  ;;  %v10538_v59 = vld [vmem:[%s10642_s14] ss:$0 sm:$0xff] }
 0x3d2   : > { %v5551_v58 = vpop.f32.mrf.mxu0  ;;  %v5727_v44 = vpop.f32.mrf.mxu1  ;;  %v10563_v14 = vld [vmem:[%s10644_s16] ss:$0 sm:$0xff] }
 0x3d3   : > { %v5754_v8 = vadd.f32 %v6768_v45, %v5578_v52  ;;  %v5576_v25 = vadd.f32 %v5551_v58, %v10349_v62  ;;  %v5774_v46 = vadd.f32 %v10459_v12, %v5751_v38  ;;  %v5792_v39 = vmax.f32 %v5776_v28, 0.0 }
 0x3d4   : > { %v6779_v4 = vpop.f32.mrf.mxu0 }
 0x3d5   : > { %v5777_v5 = vadd.f32 %v10459_v12, %v5754_v8  ;;  %v5752_v36 = vadd.f32 %v5727_v44, %v5576_v25  ;;  %v5790_v3 = vmax.f32 %v5774_v46, 0.0  ;;  %v5909_v54 = vadd.f32 %v6779_v4, %v10538_v59 }
 0x3d6   : > { %v5900_v21 = vpop.f32.mrf.mxu0 }
 0x3d7   : > { %v5793_v7 = vmax.f32 %v5777_v5, 0.0  ;;  %v5775_v33 = vadd.f32 %v10459_v12, %v5752_v36  ;;  %v5901_v2 = vadd.f32 %v10538_v59, %v5900_v21  ;;  %v5965_v31 = vmax.f32 %v5909_v54, 0.0 }
 0x3d8   : > { %v6780_v48 = vpop.f32.mrf.mxu0 }
 0x3d9   : > { %v5801_v62 = vpack.c.bf16 %v5793_v7, %v5792_v39  ;;  %v5791_v23 = vmax.f32 %v5775_v33, 0.0  ;;  %v5912_v16 = vadd.f32 %v6780_v48, %v10538_v59  ;;  %v5963_v32 = vmax.f32 %v5901_v2, 0.0 }
 0x3da   : > { %v5903_v37 = vpop.f32.mrf.mxu0 }
 0x3db   : > { %v5800_v18 = vpack.c.bf16 %v5791_v23, %v5790_v3  ;;  %v5904_v19 = vadd.f32 %v10538_v59, %v5903_v37  ;;  %v5966_v12 = vmax.f32 %v5912_v16, 0.0 }
 0x3dc   : > { %v6783_v53 = vpop.f32.mrf.mxu0 }
 0x3dd   : > { %v5964_v60 = vmax.f32 %v5904_v19, 0.0  ;;  %6789 = vmatprep.mubr.msk.bf16.mxu0 %vm5841_vm1, %v5800_v18  ;;  %v5980_v42 = vpack.c.bf16 %v5966_v12, %v5965_v31  ;;  %v5925_v11 = vadd.f32 %v6783_v53, %v10538_v59 }
 0x3de   : > { %v5916_v22 = vpop.f32.mrf.mxu0  ;;  %6790 = vmatmul.mubr.msk.bf16.gmra.mxu0 %vm5841_vm1, %v5801_v62 }
 0x3df   : > { %v5979_v10 = vpack.c.bf16 %v5964_v60, %v5963_v32  ;;  %v5917_v17 = vadd.f32 %v10538_v59, %v5916_v22  ;;  %v5969_v57 = vmax.f32 %v5925_v11, 0.0 }
 0x3e0   : > { %v6784_v34 = vpop.f32.mrf.mxu0 }
 0x3e1   : > { %v5928_v47 = vadd.f32 %v6784_v34, %v10538_v59  ;;  %6801 = vmatprep.mubr.msk.bf16.mxu1 %vm5841_vm1, %v5979_v10  ;;  %v5967_v20 = vmax.f32 %v5917_v17, 0.0 }
 0x3e2   : > { %v5919_v41 = vpop.f32.mrf.mxu0  ;;  %6802 = vmatmul.mubr.msk.bf16.vlgmr.msra.gmra.mxu1 %vm5841_vm1, %v5980_v42 }
 0x3e3   : > { %v5920_v27 = vadd.f32 %v10538_v59, %v5919_v41  ;;  %v5970_v63 = vmax.f32 %v5928_v47, 0.0 }
 0x3e5   : > { %v5968_v49 = vmax.f32 %v5920_v27, 0.0  ;;  %v5982_v26 = vpack.c.bf16 %v5970_v63, %v5969_v57 }
 0x3e7   : > { %v5981_v50 = vpack.c.bf16 %v5968_v49, %v5967_v20 }
 0x3e9   : > { %6805 = vmatprep.mubr.msk.bf16.mxu1 %vm5841_vm1, %v5981_v50 }
 0x3ea   : > { %6806 = vmatmul.mubr.msk.bf16.gmra.mxu1 %vm5841_vm1, %v5982_v26 }
 0x445   : > { %v6787_v1 = vpop.f32.mrf.mxu0 }
 0x446   : > { %v5941_v15 = vadd.f32 %v6787_v1, %v10538_v59 }
 0x447   : > { %v5932_v29 = vpop.f32.mrf.mxu0 }
 0x448   : > { %v5933_v51 = vadd.f32 %v10538_v59, %v5932_v29  ;;  %v5973_v43 = vmax.f32 %v5941_v15, 0.0 }
 0x449   : > { %v6788_v13 = vpop.f32.mrf.mxu0 }
 0x44a   : > { %v5944_v40 = vadd.f32 %v6788_v13, %v10538_v59  ;;  %v5971_v35 = vmax.f32 %v5933_v51, 0.0 }
 0x44b   : > { %v5935_v0 = vpop.f32.mrf.mxu0 }
 0x44c   : > { %v5936_v61 = vadd.f32 %v10538_v59, %v5935_v0  ;;  %v5974_v56 = vmax.f32 %v5944_v40, 0.0 }
 0x44e   : > { %v5972_v55 = vmax.f32 %v5936_v61, 0.0  ;;  %v5984_v9 = vpack.c.bf16 %v5974_v56, %v5973_v43 }
 0x450   : > { %v5983_v30 = vpack.c.bf16 %v5972_v55, %v5971_v35 }
 0x452   : > { %6809 = vmatprep.mubr.msk.bf16.mxu1 %vm5841_vm1, %v5983_v30 }
 0x453   : > { %6810 = vmatmul.mubr.msk.bf16.gmra.mxu1 %vm5841_vm1, %v5984_v9 }
 0x49e   : > { %v6791_v24 = vpop.f32.mrf.mxu0 }
 0x49f   : > { %v5957_v8 = vadd.f32 %v6791_v24, %v10538_v59 }
 0x4a0   : > { %v5948_v6 = vpop.f32.mrf.mxu0 }
 0x4a1   : > { %v5949_v52 = vadd.f32 %v10538_v59, %v5948_v6  ;;  %v5977_v48 = vmax.f32 %v5957_v8, 0.0 }
 0x4a2   : > { %v6792_v45 = vpop.f32.mrf.mxu0  ;;  %v6803_v38 = vpop.f32.mrf.mxu1 }
 0x4a3   : > { %v5960_v58 = vadd.f32 %v6792_v45, %v10538_v59  ;;  %v6093_v28 = vadd.f32 %v6803_v38, %v10563_v14  ;;  %v5975_v39 = vmax.f32 %v5949_v52, 0.0 }
 0x4a4   : > { %v5951_v25 = vpop.f32.mrf.mxu0  ;;  %v6084_v46 = vpop.f32.mrf.mxu1 }
 0x4a5   : > { %v6149_v44 = vsub.f32 0.0, %v6093_v28  ;;  %v5952_v4 = vadd.f32 %v10538_v59, %v5951_v25  ;;  %v6085_v5 = vadd.f32 %v10563_v14, %v6084_v46  ;;  %v5978_v36 = vmax.f32 %v5960_v58, 0.0 }
 0x4a6   : > { %v6804_v21 = vpop.f32.mrf.mxu1 }
 0x4a7   : > { %v6167_v7 = vmul.f32 1.442695, %v6149_v44  ;;  %v5976_v33 = vmax.f32 %v5952_v4, 0.0  ;;  %v6147_v3 = vsub.f32 0.0, %v6085_v5  ;;  %v6096_v62 = vadd.f32 %v6804_v21, %v10563_v14 }
 0x4a8   : > { %v6087_v23 = vpop.f32.mrf.mxu1  ;;  %v5986_v37 = vpack.c.bf16 %v5978_v36, %v5977_v48 }
 0x4a9   : > { %7031 = vpow2.f32 %v6167_v7  ;;  %v5985_v2 = vpack.c.bf16 %v5976_v33, %v5975_v39  ;;  %v6163_v16 = vmul.f32 1.442695, %v6147_v3  ;;  %v6088_v54 = vadd.f32 %v10563_v14, %v6087_v23 }
 0x4aa   : > { %v6150_v18 = vsub.f32 0.0, %v6096_v62  ;;  %v6807_v59 = vpop.f32.mrf.mxu1 }
 0x4ab   : > { %7033 = vpow2.f32 %v6163_v16  ;;  %v6148_v19 = vsub.f32 0.0, %v6088_v54  ;;  %v6109_v12 = vadd.f32 %v6807_v59, %v10563_v14  ;;  %6813 = vmatprep.mubr.msk.bf16.mxu1 %vm5841_vm1, %v5985_v2 }
 0x4ac   : > { %v6169_v53 = vmul.f32 1.442695, %v6150_v18  ;;  %v6100_v32 = vpop.f32.mrf.mxu1  ;;  %6814 = vmatmul.mubr.msk.bf16.gmra.mxu1 %vm5841_vm1, %v5986_v37  ;;  %vm11163_vm1 = vmmov %vm11156_vm0 }
 0x4ad   : > { %v6165_v60 = vmul.f32 1.442695, %v6148_v19  ;;  %v6153_v31 = vsub.f32 0.0, %v6109_v12  ;;  %v6101_v22 = vadd.f32 %v10563_v14, %v6100_v32 }
 0x4ae   : > { %7035 = vpow2.f32 %v6169_v53  ;;  %v6808_v10 = vpop.f32.mrf.mxu1 }
 0x4af   : > { %7037 = vpow2.f32 %v6165_v60  ;;  %v6175_v42 = vmul.f32 1.442695, %v6153_v31  ;;  %v6151_v34 = vsub.f32 0.0, %v6101_v22  ;;  %v6112_v17 = vadd.f32 %v6808_v10, %v10563_v14 }
 0x4b0   : > { %v6103_v47 = vpop.f32.mrf.mxu1 }
 0x4b1   : > { %7039 = vpow2.f32 %v6175_v42  ;;  %v6171_v11 = vmul.f32 1.442695, %v6151_v34  ;;  %v6154_v41 = vsub.f32 0.0, %v6112_v17  ;;  %v6104_v27 = vadd.f32 %v10563_v14, %v6103_v47 }
 0x4b3   : > { %7041 = vpow2.f32 %v6171_v11  ;;  %v6177_v63 = vmul.f32 1.442695, %v6154_v41  ;;  %v6152_v20 = vsub.f32 0.0, %v6104_v27 }
 0x4b5   : > { %7043 = vpow2.f32 %v6177_v63  ;;  %v6173_v49 = vmul.f32 1.442695, %v6152_v20 }
 0x4b6   : > { %v7032_v57 = vpop.eup %7031 }
 0x4b7   : > { %v6197_v50 = vadd.f32 1.0, %v7032_v57  ;;  %7045 = vpow2.f32 %v6173_v49 }
 0x4b8   : > { %v7034_v26 = vpop.eup %7033 }
 0x4b9   : > { %7047 = vrcp.f32 %v6197_v50  ;;  %v6195_v1 = vadd.f32 1.0, %v7034_v26 }
 0x4bb   : > { %v7036_v29 = vpop.eup %7035  ;;  %7049 = vrcp.f32 %v6195_v1 }
 0x4bc   : > { %v7038_v13 = vpop.eup %7037  ;;  %v6198_v51 = vadd.f32 1.0, %v7036_v29 }
 0x4bd   : > { %v6196_v40 = vadd.f32 1.0, %v7038_v13 }
 0x4be   : > { %v7040_v15 = vpop.eup %7039  ;;  %7051 = vrcp.f32 %v6198_v51 }
 0x4bf   : > { %7053 = vrcp.f32 %v6196_v40  ;;  %v6201_v0 = vadd.f32 1.0, %v7040_v15 }
 0x4c0   : > { %v7042_v61 = vpop.eup %7041 }
 0x4c1   : > { %7055 = vrcp.f32 %v6201_v0  ;;  %v6199_v56 = vadd.f32 1.0, %v7042_v61 }
 0x4c2   : > { %v7044_v35 = vpop.eup %7043 }
 0x4c3   : > { %7057 = vrcp.f32 %v6199_v56  ;;  %v6202_v55 = vadd.f32 1.0, %v7044_v35 }
 0x4c4   : > { %v7046_v43 = vpop.eup %7045 }
 0x4c5   : > { %7059 = vrcp.f32 %v6202_v55  ;;  %v6200_v30 = vadd.f32 1.0, %v7046_v43 }
 0x4c6   : > { %v7048_v9 = vpop.eup %7047 }
 0x4c7   : > { %6229 = vst.msk [vmem:[%s10583_s25 + $0x10] sm:$0xff] %vm11150_vm2, %v7048_v9  ;;  %7061 = vrcp.f32 %v6200_v30 }
 0x4c8   : > { %v7050_v24 = vpop.eup %7049 }
 0x4c9   : > { %6227 = vst.msk [vmem:[%s10583_s25] sm:$0xff] %vm11151_vm10, %v7050_v24 }
 0x4cb   : > { %v7052_v6 = vpop.eup %7051 }
 0x4cc   : > { %v7054_v45 = vpop.eup %7053  ;;  %6230 = vst.msk [vmem:[%s10583_s25 + $0x18] sm:$0xff] %vm11152_vm5, %v7052_v6 }
 0x4cd   : > { %6228 = vst.msk [vmem:[%s10583_s25 + $0x8] sm:$0xff] %vm11153_vm14, %v7054_v45 }
 0x4ce   : > { %v7056_v38 = vpop.eup %7055 }
 0x4cf   : > { %6233 = vst.msk [vmem:[%s10583_s25 + $0x30] sm:$0xff] %vm11154_vm7, %v7056_v38 }
 0x4d0   : > { %v7058_v52 = vpop.eup %7057 }
 0x4d1   : > { %6231 = vst.msk [vmem:[%s10583_s25 + $0x20] sm:$0xff] %vm11155_vm15, %v7058_v52 }
 0x4d2   : > { %v7060_v58 = vpop.eup %7059 }
 0x4d3   : > { %6234 = vst.msk [vmem:[%s10583_s25 + $0x38] sm:$0xff] %vm11156_vm0, %v7060_v58 }
 0x4d4   : > { %v7062_v28 = vpop.eup %7061 }
 0x4d5   : > { %6232 = vst.msk [vmem:[%s10583_s25 + $0x28] sm:$0xff] %vm11157_vm13, %v7062_v28 }
 0x513   : > { %v6811_v8 = vpop.f32.mrf.mxu1 }
 0x514   : > { %v6125_v25 = vadd.f32 %v6811_v8, %v10563_v14 }
 0x515   : > { %v6116_v46 = vpop.f32.mrf.mxu1 }
 0x516   : > { %v6157_v44 = vsub.f32 0.0, %v6125_v25  ;;  %v6117_v4 = vadd.f32 %v10563_v14, %v6116_v46 }
 0x517   : > { %v6812_v5 = vpop.f32.mrf.mxu1 }
 0x518   : > { %v6183_v36 = vmul.f32 1.442695, %v6157_v44  ;;  %v6155_v21 = vsub.f32 0.0, %v6117_v4  ;;  %v6128_v39 = vadd.f32 %v6812_v5, %v10563_v14 }
 0x519   : > { %v6119_v7 = vpop.f32.mrf.mxu1 }
 0x51a   : > { %7063 = vpow2.f32 %v6183_v36  ;;  %v6179_v33 = vmul.f32 1.442695, %v6155_v21  ;;  %v6158_v3 = vsub.f32 0.0, %v6128_v39  ;;  %v6120_v48 = vadd.f32 %v10563_v14, %v6119_v7 }
 0x51c   : > { %7065 = vpow2.f32 %v6179_v33  ;;  %v6185_v62 = vmul.f32 1.442695, %v6158_v3  ;;  %v6156_v23 = vsub.f32 0.0, %v6120_v48 }
 0x51e   : > { %7067 = vpow2.f32 %v6185_v62  ;;  %v6181_v2 = vmul.f32 1.442695, %v6156_v23 }
 0x520   : > { %7069 = vpow2.f32 %v6181_v2 }
 0x527   : > { %v7064_v16 = vpop.eup %7063 }
 0x528   : > { %v6205_v54 = vadd.f32 1.0, %v7064_v16 }
 0x529   : > { %v7066_v37 = vpop.eup %7065 }
 0x52a   : > { %7071 = vrcp.f32 %v6205_v54  ;;  %v6203_v18 = vadd.f32 1.0, %v7066_v37 }
 0x52b   : > { %v7068_v59 = vpop.eup %7067 }
 0x52c   : > { %7073 = vrcp.f32 %v6203_v18  ;;  %v6206_v19 = vadd.f32 1.0, %v7068_v59 }
 0x52d   : > { %v7070_v12 = vpop.eup %7069 }
 0x52e   : > { %7075 = vrcp.f32 %v6206_v19  ;;  %v6204_v53 = vadd.f32 1.0, %v7070_v12 }
 0x530   : > { %7077 = vrcp.f32 %v6204_v53 }
 0x537   : > { %v7072_v32 = vpop.eup %7071 }
 0x538   : > { %6237 = vst.msk [vmem:[%s10583_s25 + $0x50] sm:$0xff] %vm11158_vm9, %v7072_v32 }
 0x539   : > { %v7074_v60 = vpop.eup %7073 }
 0x53a   : > { %6235 = vst.msk [vmem:[%s10583_s25 + $0x40] sm:$0xff] %vm11159_vm3, %v7074_v60 }
 0x53b   : > { %v7076_v31 = vpop.eup %7075 }
 0x53c   : > { %6238 = vst.msk [vmem:[%s10583_s25 + $0x58] sm:$0xff] %vm11160_vm11, %v7076_v31 }
 0x53d   : > { %v7078_v22 = vpop.eup %7077 }
 0x53e   : > { %6236 = vst.msk [vmem:[%s10583_s25 + $0x48] sm:$0xff] %vm11161_vm12, %v7078_v22 }
 0x56c   : > { %v6815_v10 = vpop.f32.mrf.mxu1 }
 0x56d   : > { %v6141_v42 = vadd.f32 %v6815_v10, %v10563_v14 }
 0x56e   : > { %v6132_v34 = vpop.f32.mrf.mxu1 }
 0x56f   : > { %v6161_v17 = vsub.f32 0.0, %v6141_v42  ;;  %v6133_v47 = vadd.f32 %v10563_v14, %v6132_v34 }
 0x570   : > { %v6816_v11 = vpop.f32.mrf.mxu1 }
 0x571   : > { %v6191_v41 = vmul.f32 1.442695, %v6161_v17  ;;  %v6159_v27 = vsub.f32 0.0, %v6133_v47  ;;  %v6144_v63 = vadd.f32 %v6816_v11, %v10563_v14 }
 0x572   : > { %v6135_v20 = vpop.f32.mrf.mxu1 }
 0x573   : > { %7079 = vpow2.f32 %v6191_v41  ;;  %v6187_v49 = vmul.f32 1.442695, %v6159_v27  ;;  %v6162_v57 = vsub.f32 0.0, %v6144_v63  ;;  %v6136_v50 = vadd.f32 %v10563_v14, %v6135_v20 }
 0x575   : > { %7081 = vpow2.f32 %v6187_v49  ;;  %v6193_v26 = vmul.f32 1.442695, %v6162_v57  ;;  %v6160_v1 = vsub.f32 0.0, %v6136_v50 }
 0x577   : > { %7083 = vpow2.f32 %v6193_v26  ;;  %v6189_v29 = vmul.f32 1.442695, %v6160_v1 }
 0x579   : > { %7085 = vpow2.f32 %v6189_v29 }
 0x580   : > { %v7080_v13 = vpop.eup %7079 }
 0x581   : > { %v6209_v51 = vadd.f32 1.0, %v7080_v13 }
 0x582   : > { %v7082_v40 = vpop.eup %7081 }
 0x583   : > { %7087 = vrcp.f32 %v6209_v51  ;;  %v6207_v15 = vadd.f32 1.0, %v7082_v40 }
 0x584   : > { %v7084_v0 = vpop.eup %7083 }
 0x585   : > { %7089 = vrcp.f32 %v6207_v15  ;;  %v6210_v61 = vadd.f32 1.0, %v7084_v0 }
 0x586   : > { %v7086_v56 = vpop.eup %7085 }
 0x587   : > { %7091 = vrcp.f32 %v6210_v61  ;;  %v6208_v14 = vadd.f32 1.0, %v7086_v56 }
 0x589   : > { %7093 = vrcp.f32 %v6208_v14 }
 0x590   : > { %v7088_v35 = vpop.eup %7087 }
 0x591   : > { %6241 = vst.msk [vmem:[%s10583_s25 + $0x70] sm:$0xff] %vm11162_vm8, %v7088_v35 }
 0x592   : > { %v7090_v55 = vpop.eup %7089 }
 0x593   : > { %6239 = vst.msk [vmem:[%s10583_s25 + $0x60] sm:$0xff] %vm11163_vm1, %v7090_v55 }
 0x594   : > { %v7092_v43 = vpop.eup %7091 }
 0x595   : > { %6242 = vst.msk [vmem:[%s10583_s25 + $0x78] sm:$0xff] %vm11164_vm6, %v7092_v43 }
 0x596   : > { %v7094_v30 = vpop.eup %7093 }
 0x597   : > { %6240 = vst.msk [vmem:[%s10583_s25 + $0x68] sm:$0xff] %vm11165_vm4, %v7094_v30 }
 0x598 PF: > { %s27_s24 = sadd.s32 1, %s7119_s24  }
 0x599   : > { %p24_p4 = scmp.ge.s32.totalorder %s27_s24, 4  }
 0x59b   :  { %26 = sbr.rel (!%p24_p4) target bundleno = 3 (0x3), region = 127 }

</bundles_post_ra>
